<compile_context>
chip_gen: v5e
topology: v5e:2x2
jax: 0.10.0
libtpu: 0.0.40
codegen_flags: <defaults>
</compile_context>

<pallas_src>
import math

import jax
import jax.numpy as jnp
from jax.experimental import pallas as pl
from jax.experimental.pallas import tpu as pltpu

# ----------------------------- config (small, deterministic) -----------------------------
VOCAB = 50
D_MODEL = 32
N_HEADS = 4
D_K = D_MODEL // N_HEADS
D_FF = 64
N_LAYERS = 2
PAD_ID = 0
EPS = 1e-6  # LayerNorm eps (Annotated Transformer)
EMB_SCALE = math.sqrt(float(D_MODEL))
ATTN_SCALE = 1.0 / math.sqrt(float(D_K))


# ----------------------------- fused encoder-decoder kernel -----------------------------
def _fused_encdec_kernel(
    # per-batch (squeezed) inputs
    src_x_ref, tgt_x_ref, src_bias_ref, cross_bias_ref, tgt_bias_ref,
    # shared inputs
    pe_src_ref, pe_tgt_ref,
    e_wqkv, e_bqkv, e_wo, e_bo, e_w1, e_b1, e_w2, e_b2,
    e_ln1_g, e_ln1_b, e_ln2_g, e_ln2_b, e_ng, e_nb,
    d_swqkv, d_sbqkv, d_swo, d_sbo,
    d_cwqkv, d_cbqkv, d_cwo, d_cbo,
    d_w1, d_b1, d_w2, d_b2,
    d_ln1_g, d_ln1_b, d_ln2_g, d_ln2_b, d_ln3_g, d_ln3_b, d_ng, d_nb,
    # output
    o_ref,
):
    def layer_norm(x, g, b):
        # Matches torch ref: g * (x - mean) / (std_unbiased + eps) + b  (stats in f32)
        mean = jnp.mean(x, axis=-1, keepdims=True)
        diff = x - mean
        var = jnp.sum(diff * diff, axis=-1, keepdims=True) / (D_MODEL - 1)
        inv = pl.reciprocal(jnp.sqrt(var) + EPS, approx=True)
        return g * diff * inv + b

    def matmul(x_f32, w_bf16, b_f32):
        # bf16 MXU matmul with f32 accumulation, f32 bias add.
        return jnp.dot(x_f32.astype(jnp.bfloat16), w_bf16,
                       preferred_element_type=jnp.float32) + b_f32

    def attention(q_all, k_all, v_all, bias):
        # q_all: (Tq, D), k_all/v_all: (Tk, D), bias: (Tq, Tk) additive (0 / -1e9). All f32.
        outs = []
        for h in range(N_HEADS):
            sl = slice(h * D_K, (h + 1) * D_K)
            qh = q_all[:, sl].astype(jnp.bfloat16)
            kh = k_all[:, sl].astype(jnp.bfloat16)
            vh = v_all[:, sl].astype(jnp.bfloat16)
            s = jax.lax.dot_general(
                qh, kh, (((1,), (1,)), ((), ())),
                preferred_element_type=jnp.float32) * ATTN_SCALE
            s = s + bias
            m = jnp.max(s, axis=-1, keepdims=True)
            p = jnp.exp(s - m)
            p = p * pl.reciprocal(jnp.sum(p, axis=-1, keepdims=True), approx=True)
            outs.append(jnp.dot(p.astype(jnp.bfloat16), vh,
                                preferred_element_type=jnp.float32))
        return jnp.concatenate(outs, axis=-1)  # (Tq, D)

    # ---------------- encoder ----------------
    x = src_x_ref[...] * EMB_SCALE + pe_src_ref[...]        # (S, D)
    src_bias = src_bias_ref[...]                             # (S, S)

    for l in range(N_LAYERS):
        # self-attention sublayer (pre-norm residual)
        y = layer_norm(x, e_ln1_g[l], e_ln1_b[l])
        qkv = matmul(y, e_wqkv[l], e_bqkv[l])                # (S, 3D)
        attn = attention(qkv[:, :D_MODEL],
                         qkv[:, D_MODEL:2 * D_MODEL],
                         qkv[:, 2 * D_MODEL:], src_bias)
        x = x + matmul(attn, e_wo[l], e_bo[l])
        # feed-forward sublayer
        y = layer_norm(x, e_ln2_g[l], e_ln2_b[l])
        h = jnp.maximum(matmul(y, e_w1[l], e_b1[l]), 0.0)
        x = x + matmul(h, e_w2[l], e_b2[l])

    memory = layer_norm(x, e_ng[...], e_nb[...])             # (S, D)

    # ---------------- decoder ----------------
    t = tgt_x_ref[...] * EMB_SCALE + pe_tgt_ref[...]         # (T, D)
    tgt_bias = tgt_bias_ref[...]                             # (T, T)
    cross_bias = cross_bias_ref[...]                         # (T, S)

    for l in range(N_LAYERS):
        # masked self-attention
        y = layer_norm(t, d_ln1_g[l], d_ln1_b[l])
        qkv = matmul(y, d_swqkv[l], d_sbqkv[l])
        attn = attention(qkv[:, :D_MODEL],
                         qkv[:, D_MODEL:2 * D_MODEL],
                         qkv[:, 2 * D_MODEL:], tgt_bias)
        t = t + matmul(attn, d_swo[l], d_sbo[l])
        # cross-attention over encoder memory (same fused QKV weight, sliced)
        y = layer_norm(t, d_ln2_g[l], d_ln2_b[l])
        q = matmul(y, d_cwqkv[l][:, :D_MODEL], d_cbqkv[l][:, :D_MODEL])        # (T, D)
        kv = matmul(memory, d_cwqkv[l][:, D_MODEL:], d_cbqkv[l][:, D_MODEL:])  # (S, 2D)
        attn = attention(q, kv[:, :D_MODEL], kv[:, D_MODEL:], cross_bias)
        t = t + matmul(attn, d_cwo[l], d_cbo[l])
        # feed-forward
        y = layer_norm(t, d_ln3_g[l], d_ln3_b[l])
        h = jnp.maximum(matmul(y, d_w1[l], d_b1[l]), 0.0)
        t = t + matmul(h, d_w2[l], d_b2[l])

    o_ref[...] = layer_norm(t, d_ng[...], d_nb[...])         # (T, D)


# ----------------------------- wrapper -----------------------------
def encoder_decoder_forward(params, src, tgt, src_mask, tgt_mask):
    """memory = encode(src, src_mask); return decode(memory, src_mask, tgt, tgt_mask)."""
    B, S = src.shape
    T = tgt.shape[1]
    D = D_MODEL

    # TODO(synk): embedding-table gather is data-dependent; it stays in plain JAX (glue).
    # The sqrt(D) scale + positional-encoding add is fused inside the kernel.
    src_x = jnp.take(params["src_emb"], src, axis=0)   # (B, S, D)
    tgt_x = jnp.take(params["tgt_emb"], tgt, axis=0)   # (B, T, D)
    pe_src = params["pe"][:S]                          # (S, D)
    pe_tgt = params["pe"][:T]                          # (T, D)

    # Additive mask biases: 0 where attend, -1e9 where masked (matches masked_fill(mask==0, -1e9)).
    neg = jnp.float32(-1e9)
    src_m = src_mask.astype(jnp.float32)               # (B, 1, S)
    src_bias = (1.0 - jnp.broadcast_to(src_m, (B, S, S))) * neg
    cross_bias = (1.0 - jnp.broadcast_to(src_m, (B, T, S))) * neg
    tgt_bias = (1.0 - tgt_mask.astype(jnp.float32)) * neg  # (B, T, T)

    enc = params["encoder"]
    dec = params["decoder"]

    batched_inputs = [src_x, tgt_x, src_bias, cross_bias, tgt_bias]
    shared_inputs = [
        pe_src, pe_tgt,
        enc["wqkv"], enc["bqkv"], enc["wo"], enc["bo"],
        enc["w1"], enc["b1"], enc["w2"], enc["b2"],
        enc["ln1_g"], enc["ln1_b"], enc["ln2_g"], enc["ln2_b"],
        enc["norm_g"], enc["norm_b"],
        dec["swqkv"], dec["sbqkv"], dec["swo"], dec["sbo"],
        dec["cwqkv"], dec["cbqkv"], dec["cwo"], dec["cbo"],
        dec["w1"], dec["b1"], dec["w2"], dec["b2"],
        dec["ln1_g"], dec["ln1_b"], dec["ln2_g"], dec["ln2_b"],
        dec["ln3_g"], dec["ln3_b"],
        dec["norm_g"], dec["norm_b"],
    ]

    def batch_spec(a):  # block over the leading batch dim, squeeze it in the kernel
        nd = a.ndim
        return pl.BlockSpec((None,) + a.shape[1:],
                            lambda i, nd=nd: (i,) + (0,) * (nd - 1))

    def shared_spec(a):  # full array, same block for every grid step (weights stay resident)
        nd = a.ndim
        return pl.BlockSpec(a.shape, lambda i, nd=nd: (0,) * nd)

    in_specs = ([batch_spec(a) for a in batched_inputs]
                + [shared_spec(a) for a in shared_inputs])

    return pl.pallas_call(
        _fused_encdec_kernel,
        grid=(B,),
        in_specs=in_specs,
        out_specs=pl.BlockSpec((None, T, D), lambda i: (i, 0, 0)),
        out_shape=jax.ShapeDtypeStruct((B, T, D), jnp.float32),
        compiler_params=pltpu.CompilerParams(
            dimension_semantics=("parallel",),  # batch elements independent -> 2 TCs on v7x
        ),
    )(*batched_inputs, *shared_inputs)


# ----------------------------- deterministic parameter init -----------------------------
def _w(key, din, dout):
    return jax.random.normal(key, (din, dout), jnp.float32) / math.sqrt(din)


def _init_encoder(key):
    ks = jax.random.split(key, N_LAYERS)
    wqkv, wo, w1, w2 = [], [], [], []
    for kl in ks:
        k1, k2, k3, k4, k5, k6 = jax.random.split(kl, 6)
        wqkv.append(jnp.concatenate(
            [_w(k1, D_MODEL, D_MODEL), _w(k2, D_MODEL, D_MODEL), _w(k3, D_MODEL, D_MODEL)],
            axis=1))
        wo.append(_w(k4, D_MODEL, D_MODEL))
        w1.append(_w(k5, D_MODEL, D_FF))
        w2.append(_w(k6, D_FF, D_MODEL))
    L = N_LAYERS
    return {
        "wqkv": jnp.stack(wqkv).astype(jnp.bfloat16),
        "bqkv": jnp.zeros((L, 1, 3 * D_MODEL), jnp.float32),
        "wo": jnp.stack(wo).astype(jnp.bfloat16),
        "bo": jnp.zeros((L, 1, D_MODEL), jnp.float32),
        "w1": jnp.stack(w1).astype(jnp.bfloat16),
        "b1": jnp.zeros((L, 1, D_FF), jnp.float32),
        "w2": jnp.stack(w2).astype(jnp.bfloat16),
        "b2": jnp.zeros((L, 1, D_MODEL), jnp.float32),
        "ln1_g": jnp.ones((L, 1, D_MODEL), jnp.float32),
        "ln1_b": jnp.zeros((L, 1, D_MODEL), jnp.float32),
        "ln2_g": jnp.ones((L, 1, D_MODEL), jnp.float32),
        "ln2_b": jnp.zeros((L, 1, D_MODEL), jnp.float32),
        "norm_g": jnp.ones((1, D_MODEL), jnp.float32),
        "norm_b": jnp.zeros((1, D_MODEL), jnp.float32),
    }


def _init_decoder(key):
    ks = jax.random.split(key, N_LAYERS)
    swqkv, swo, cwqkv, cwo, w1, w2 = [], [], [], [], [], []
    for kl in ks:
        k = jax.random.split(kl, 10)
        swqkv.append(jnp.concatenate(
            [_w(k[0], D_MODEL, D_MODEL), _w(k[1], D_MODEL, D_MODEL), _w(k[2], D_MODEL, D_MODEL)],
            axis=1))
        swo.append(_w(k[3], D_MODEL, D_MODEL))
        cwqkv.append(jnp.concatenate(
            [_w(k[4], D_MODEL, D_MODEL), _w(k[5], D_MODEL, D_MODEL), _w(k[6], D_MODEL, D_MODEL)],
            axis=1))
        cwo.append(_w(k[7], D_MODEL, D_MODEL))
        w1.append(_w(k[8], D_MODEL, D_FF))
        w2.append(_w(k[9], D_FF, D_MODEL))
    L = N_LAYERS
    return {
        "swqkv": jnp.stack(swqkv).astype(jnp.bfloat16),
        "sbqkv": jnp.zeros((L, 1, 3 * D_MODEL), jnp.float32),
        "swo": jnp.stack(swo).astype(jnp.bfloat16),
        "sbo": jnp.zeros((L, 1, D_MODEL), jnp.float32),
        "cwqkv": jnp.stack(cwqkv).astype(jnp.bfloat16),
        "cbqkv": jnp.zeros((L, 1, 3 * D_MODEL), jnp.float32),
        "cwo": jnp.stack(cwo).astype(jnp.bfloat16),
        "cbo": jnp.zeros((L, 1, D_MODEL), jnp.float32),
        "w1": jnp.stack(w1).astype(jnp.bfloat16),
        "b1": jnp.zeros((L, 1, D_FF), jnp.float32),
        "w2": jnp.stack(w2).astype(jnp.bfloat16),
        "b2": jnp.zeros((L, 1, D_MODEL), jnp.float32),
        "ln1_g": jnp.ones((L, 1, D_MODEL), jnp.float32),
        "ln1_b": jnp.zeros((L, 1, D_MODEL), jnp.float32),
        "ln2_g": jnp.ones((L, 1, D_MODEL), jnp.float32),
        "ln2_b": jnp.zeros((L, 1, D_MODEL), jnp.float32),
        "ln3_g": jnp.ones((L, 1, D_MODEL), jnp.float32),
        "ln3_b": jnp.zeros((L, 1, D_MODEL), jnp.float32),
        "norm_g": jnp.ones((1, D_MODEL), jnp.float32),
        "norm_b": jnp.zeros((1, D_MODEL), jnp.float32),
    }


def make_positional_encoding(max_len, d):
    pos = jnp.arange(max_len, dtype=jnp.float32)[:, None]
    div = jnp.exp(jnp.arange(0, d, 2, dtype=jnp.float32) * (-math.log(10000.0) / d))
    pe = jnp.zeros((max_len, d), jnp.float32)
    pe = pe.at[:, 0::2].set(jnp.sin(pos * div))
    pe = pe.at[:, 1::2].set(jnp.cos(pos * div))
    return pe


def init_params(key):
    k_se, k_te, k_enc, k_dec = jax.random.split(key, 4)
    return {
        "src_emb": jax.random.normal(k_se, (VOCAB, D_MODEL), jnp.float32) * 0.1,
        "tgt_emb": jax.random.normal(k_te, (VOCAB, D_MODEL), jnp.float32) * 0.1,
        "pe": make_positional_encoding(64, D_MODEL),
        "encoder": _init_encoder(k_enc),
        "decoder": _init_decoder(k_dec),
    }


def subsequent_mask(t):
    return jnp.tril(jnp.ones((t, t), jnp.float32))


# ----------------------------- main -----------------------------
if __name__ == "__main__":
    key = jax.random.PRNGKey(0)
    kp, ks, kt = jax.random.split(key, 3)

    B, S, T = 2, 8, 8
    params = init_params(kp)

    src = jax.random.randint(ks, (B, S), 1, VOCAB).astype(jnp.int32)
    tgt = jax.random.randint(kt, (B, T), 1, VOCAB).astype(jnp.int32)
    # introduce some padding to exercise the masks
    src = src.at[1, S - 2:].set(PAD_ID)
    tgt = tgt.at[1, T - 1:].set(PAD_ID)

    src_mask = (src != PAD_ID).astype(jnp.float32)[:, None, :]            # (B, 1, S)
    tgt_pad = (tgt != PAD_ID).astype(jnp.float32)[:, None, :]             # (B, 1, T)
    tgt_mask = tgt_pad * subsequent_mask(T)[None, :, :]                   # (B, T, T)

    fwd = jax.jit(encoder_decoder_forward)
    out = jax.block_until_ready(fwd(params, src, tgt, src_mask, tgt_mask))

    assert out.shape == (B, T, D_MODEL), out.shape
    assert bool(jnp.all(jnp.isfinite(out)))
    print("KERNEL_OK")
</pallas_src>

<mosaic_0001>
module attributes {stable_mosaic.version = 11 : i64} {
  func.func @_fused_encdec_kernel(%arg0: i32, %arg1: memref<1x8x32xf32, #tpu.memory_space<vmem>>, %arg2: memref<1x8x32xf32, #tpu.memory_space<vmem>>, %arg3: memref<1x8x8xf32, #tpu.memory_space<vmem>>, %arg4: memref<1x8x8xf32, #tpu.memory_space<vmem>>, %arg5: memref<1x8x8xf32, #tpu.memory_space<vmem>>, %arg6: memref<8x32xf32, #tpu.memory_space<vmem>>, %arg7: memref<8x32xf32, #tpu.memory_space<vmem>>, %arg8: memref<2x32x96xbf16, #tpu.memory_space<vmem>>, %arg9: memref<2x1x96xf32, #tpu.memory_space<vmem>>, %arg10: memref<2x32x32xbf16, #tpu.memory_space<vmem>>, %arg11: memref<2x1x32xf32, #tpu.memory_space<vmem>>, %arg12: memref<2x32x64xbf16, #tpu.memory_space<vmem>>, %arg13: memref<2x1x64xf32, #tpu.memory_space<vmem>>, %arg14: memref<2x64x32xbf16, #tpu.memory_space<vmem>>, %arg15: memref<2x1x32xf32, #tpu.memory_space<vmem>>, %arg16: memref<2x1x32xf32, #tpu.memory_space<vmem>>, %arg17: memref<2x1x32xf32, #tpu.memory_space<vmem>>, %arg18: memref<2x1x32xf32, #tpu.memory_space<vmem>>, %arg19: memref<2x1x32xf32, #tpu.memory_space<vmem>>, %arg20: memref<1x32xf32, #tpu.memory_space<vmem>>, %arg21: memref<1x32xf32, #tpu.memory_space<vmem>>, %arg22: memref<2x32x96xbf16, #tpu.memory_space<vmem>>, %arg23: memref<2x1x96xf32, #tpu.memory_space<vmem>>, %arg24: memref<2x32x32xbf16, #tpu.memory_space<vmem>>, %arg25: memref<2x1x32xf32, #tpu.memory_space<vmem>>, %arg26: memref<2x32x96xbf16, #tpu.memory_space<vmem>>, %arg27: memref<2x1x96xf32, #tpu.memory_space<vmem>>, %arg28: memref<2x32x32xbf16, #tpu.memory_space<vmem>>, %arg29: memref<2x1x32xf32, #tpu.memory_space<vmem>>, %arg30: memref<2x32x64xbf16, #tpu.memory_space<vmem>>, %arg31: memref<2x1x64xf32, #tpu.memory_space<vmem>>, %arg32: memref<2x64x32xbf16, #tpu.memory_space<vmem>>, %arg33: memref<2x1x32xf32, #tpu.memory_space<vmem>>, %arg34: memref<2x1x32xf32, #tpu.memory_space<vmem>>, %arg35: memref<2x1x32xf32, #tpu.memory_space<vmem>>, %arg36: memref<2x1x32xf32, #tpu.memory_space<vmem>>, %arg37: memref<2x1x32xf32, #tpu.memory_space<vmem>>, %arg38: memref<2x1x32xf32, #tpu.memory_space<vmem>>, %arg39: memref<2x1x32xf32, #tpu.memory_space<vmem>>, %arg40: memref<1x32xf32, #tpu.memory_space<vmem>>, %arg41: memref<1x32xf32, #tpu.memory_space<vmem>>, %arg42: memref<1x8x32xf32, #tpu.memory_space<vmem>>) attributes {dimension_semantics = [#tpu.dimension_semantics<parallel>], iteration_bounds = array<i64: 2>, scalar_prefetch = 0 : i64, scratch_operands = 0 : i64, tpu.core_type = #tpu.core_type<tc>, window_params = [{transform_indices = @transform_0, window_bounds = array<i64: 1, 8, 32>}, {transform_indices = @transform_1, window_bounds = array<i64: 1, 8, 32>}, {transform_indices = @transform_2, window_bounds = array<i64: 1, 8, 8>}, {transform_indices = @transform_3, window_bounds = array<i64: 1, 8, 8>}, {transform_indices = @transform_4, window_bounds = array<i64: 1, 8, 8>}, {pipeline_mode = #tpu.pipeline_mode<synchronous>, transform_indices = @transform_5, window_bounds = array<i64: 8, 32>}, {pipeline_mode = #tpu.pipeline_mode<synchronous>, transform_indices = @transform_6, window_bounds = array<i64: 8, 32>}, {pipeline_mode = #tpu.pipeline_mode<synchronous>, transform_indices = @transform_7, window_bounds = array<i64: 2, 32, 96>}, {pipeline_mode = #tpu.pipeline_mode<synchronous>, transform_indices = @transform_8, window_bounds = array<i64: 2, 1, 96>}, {pipeline_mode = #tpu.pipeline_mode<synchronous>, transform_indices = @transform_9, window_bounds = array<i64: 2, 32, 32>}, {pipeline_mode = #tpu.pipeline_mode<synchronous>, transform_indices = @transform_10, window_bounds = array<i64: 2, 1, 32>}, {pipeline_mode = #tpu.pipeline_mode<synchronous>, transform_indices = @transform_11, window_bounds = array<i64: 2, 32, 64>}, {pipeline_mode = #tpu.pipeline_mode<synchronous>, transform_indices = @transform_12, window_bounds = array<i64: 2, 1, 64>}, {pipeline_mode = #tpu.pipeline_mode<synchronous>, transform_indices = @transform_13, window_bounds = array<i64: 2, 64, 32>}, {pipeline_mode = #tpu.pipeline_mode<synchronous>, transform_indices = @transform_14, window_bounds = array<i64: 2, 1, 32>}, {pipeline_mode = #tpu.pipeline_mode<synchronous>, transform_indices = @transform_15, window_bounds = array<i64: 2, 1, 32>}, {pipeline_mode = #tpu.pipeline_mode<synchronous>, transform_indices = @transform_16, window_bounds = array<i64: 2, 1, 32>}, {pipeline_mode = #tpu.pipeline_mode<synchronous>, transform_indices = @transform_17, window_bounds = array<i64: 2, 1, 32>}, {pipeline_mode = #tpu.pipeline_mode<synchronous>, transform_indices = @transform_18, window_bounds = array<i64: 2, 1, 32>}, {pipeline_mode = #tpu.pipeline_mode<synchronous>, transform_indices = @transform_19, window_bounds = array<i64: 1, 32>}, {pipeline_mode = #tpu.pipeline_mode<synchronous>, transform_indices = @transform_20, window_bounds = array<i64: 1, 32>}, {pipeline_mode = #tpu.pipeline_mode<synchronous>, transform_indices = @transform_21, window_bounds = array<i64: 2, 32, 96>}, {pipeline_mode = #tpu.pipeline_mode<synchronous>, transform_indices = @transform_22, window_bounds = array<i64: 2, 1, 96>}, {pipeline_mode = #tpu.pipeline_mode<synchronous>, transform_indices = @transform_23, window_bounds = array<i64: 2, 32, 32>}, {pipeline_mode = #tpu.pipeline_mode<synchronous>, transform_indices = @transform_24, window_bounds = array<i64: 2, 1, 32>}, {pipeline_mode = #tpu.pipeline_mode<synchronous>, transform_indices = @transform_25, window_bounds = array<i64: 2, 32, 96>}, {pipeline_mode = #tpu.pipeline_mode<synchronous>, transform_indices = @transform_26, window_bounds = array<i64: 2, 1, 96>}, {pipeline_mode = #tpu.pipeline_mode<synchronous>, transform_indices = @transform_27, window_bounds = array<i64: 2, 32, 32>}, {pipeline_mode = #tpu.pipeline_mode<synchronous>, transform_indices = @transform_28, window_bounds = array<i64: 2, 1, 32>}, {pipeline_mode = #tpu.pipeline_mode<synchronous>, transform_indices = @transform_29, window_bounds = array<i64: 2, 32, 64>}, {pipeline_mode = #tpu.pipeline_mode<synchronous>, transform_indices = @transform_30, window_bounds = array<i64: 2, 1, 64>}, {pipeline_mode = #tpu.pipeline_mode<synchronous>, transform_indices = @transform_31, window_bounds = array<i64: 2, 64, 32>}, {pipeline_mode = #tpu.pipeline_mode<synchronous>, transform_indices = @transform_32, window_bounds = array<i64: 2, 1, 32>}, {pipeline_mode = #tpu.pipeline_mode<synchronous>, transform_indices = @transform_33, window_bounds = array<i64: 2, 1, 32>}, {pipeline_mode = #tpu.pipeline_mode<synchronous>, transform_indices = @transform_34, window_bounds = array<i64: 2, 1, 32>}, {pipeline_mode = #tpu.pipeline_mode<synchronous>, transform_indices = @transform_35, window_bounds = array<i64: 2, 1, 32>}, {pipeline_mode = #tpu.pipeline_mode<synchronous>, transform_indices = @transform_36, window_bounds = array<i64: 2, 1, 32>}, {pipeline_mode = #tpu.pipeline_mode<synchronous>, transform_indices = @transform_37, window_bounds = array<i64: 2, 1, 32>}, {pipeline_mode = #tpu.pipeline_mode<synchronous>, transform_indices = @transform_38, window_bounds = array<i64: 2, 1, 32>}, {pipeline_mode = #tpu.pipeline_mode<synchronous>, transform_indices = @transform_39, window_bounds = array<i64: 1, 32>}, {pipeline_mode = #tpu.pipeline_mode<synchronous>, transform_indices = @transform_40, window_bounds = array<i64: 1, 32>}, {transform_indices = @transform_41, window_bounds = array<i64: 1, 8, 32>}]} {
    %c0 = arith.constant 0 : index
    %c0_0 = arith.constant 0 : index
    %c0_1 = arith.constant 0 : index
    %0 = vector.load %arg1[%c0, %c0_0, %c0_1] : memref<1x8x32xf32, #tpu.memory_space<vmem>>, vector<1x8x32xf32>
    %1 = vector.shape_cast %0 : vector<1x8x32xf32> to vector<8x32xf32>
    %cst = arith.constant 5.65685415 : f32
    %2 = vector.broadcast %cst : f32 to vector<8x32xf32>
    %3 = arith.mulf %1, %2 : vector<8x32xf32>
    %c0_2 = arith.constant 0 : index
    %c0_3 = arith.constant 0 : index
    %4 = vector.load %arg6[%c0_2, %c0_3] : memref<8x32xf32, #tpu.memory_space<vmem>>, vector<8x32xf32>
    %5 = arith.addf %3, %4 : vector<8x32xf32>
    %c0_4 = arith.constant 0 : index
    %c0_5 = arith.constant 0 : index
    %c0_6 = arith.constant 0 : index
    %6 = vector.load %arg3[%c0_4, %c0_5, %c0_6] : memref<1x8x8xf32, #tpu.memory_space<vmem>>, vector<1x8x8xf32>
    %7 = vector.shape_cast %6 : vector<1x8x8xf32> to vector<8x8xf32>
    %c0_7 = arith.constant 0 : index
    %c0_8 = arith.constant 0 : index
    %c0_9 = arith.constant 0 : index
    %8 = vector.load %arg16[%c0_7, %c0_8, %c0_9] : memref<2x1x32xf32, #tpu.memory_space<vmem>>, vector<1x1x32xf32>
    %9 = vector.shape_cast %8 : vector<1x1x32xf32> to vector<1x32xf32>
    %c0_10 = arith.constant 0 : index
    %c0_11 = arith.constant 0 : index
    %c0_12 = arith.constant 0 : index
    %10 = vector.load %arg17[%c0_10, %c0_11, %c0_12] : memref<2x1x32xf32, #tpu.memory_space<vmem>>, vector<1x1x32xf32>
    %11 = vector.shape_cast %10 : vector<1x1x32xf32> to vector<1x32xf32>
    %cst_13 = arith.constant dense<0.000000e+00> : vector<8xf32>
    %12 = vector.multi_reduction <add>, %5, %cst_13 [1] : vector<8x32xf32> to vector<8xf32>
    %13 = vector.shape_cast %12 : vector<8xf32> to vector<8x1xf32>
    %cst_14 = arith.constant 3.200000e+01 : f32
    %14 = vector.broadcast %cst_14 : f32 to vector<8x1xf32>
    %15 = arith.divf %13, %14 : vector<8x1xf32>
    %16 = vector.broadcast %15 : vector<8x1xf32> to vector<8x32xf32>
    %17 = arith.subf %5, %16 : vector<8x32xf32>
    %18 = arith.mulf %17, %17 : vector<8x32xf32>
    %cst_15 = arith.constant dense<0.000000e+00> : vector<8xf32>
    %19 = vector.multi_reduction <add>, %18, %cst_15 [1] : vector<8x32xf32> to vector<8xf32>
    %20 = vector.shape_cast %19 : vector<8xf32> to vector<8x1xf32>
    %cst_16 = arith.constant 3.100000e+01 : f32
    %21 = vector.broadcast %cst_16 : f32 to vector<8x1xf32>
    %22 = arith.divf %20, %21 : vector<8x1xf32>
    %23 = math.sqrt %22 : vector<8x1xf32>
    %cst_17 = arith.constant 9.99999997E-7 : f32
    %24 = vector.broadcast %cst_17 : f32 to vector<8x1xf32>
    %25 = arith.addf %23, %24 : vector<8x1xf32>
    %26 = tpu.reciprocal %25 {approx = true} : vector<8x1xf32> -> vector<8x1xf32>
    %27 = vector.broadcast %9 : vector<1x32xf32> to vector<8x32xf32>
    %28 = arith.mulf %27, %17 : vector<8x32xf32>
    %29 = vector.broadcast %26 : vector<8x1xf32> to vector<8x32xf32>
    %30 = arith.mulf %28, %29 : vector<8x32xf32>
    %31 = vector.broadcast %11 : vector<1x32xf32> to vector<8x32xf32>
    %32 = arith.addf %30, %31 : vector<8x32xf32>
    %c0_18 = arith.constant 0 : index
    %c0_19 = arith.constant 0 : index
    %c0_20 = arith.constant 0 : index
    %33 = vector.load %arg8[%c0_18, %c0_19, %c0_20] : memref<2x32x96xbf16, #tpu.memory_space<vmem>>, vector<1x32x96xbf16>
    %34 = vector.shape_cast %33 : vector<1x32x96xbf16> to vector<32x96xbf16>
    %c0_21 = arith.constant 0 : index
    %c0_22 = arith.constant 0 : index
    %c0_23 = arith.constant 0 : index
    %35 = vector.load %arg9[%c0_21, %c0_22, %c0_23] : memref<2x1x96xf32, #tpu.memory_space<vmem>>, vector<1x1x96xf32>
    %36 = vector.shape_cast %35 : vector<1x1x96xf32> to vector<1x96xf32>
    %37 = arith.truncf %32 : vector<8x32xf32> to vector<8x32xbf16>
    %cst_24 = arith.constant dense<0.000000e+00> : vector<8x96xf32>
    %38 = tpu.matmul %37, %34, %cst_24 {dimension_numbers = #tpu.dot_dimension_numbers<[1], [0], [0], [1], [0, 0, 1, 1], [], []>} : vector<8x32xbf16>, vector<32x96xbf16>, vector<8x96xf32> -> vector<8x96xf32>
    %39 = vector.broadcast %36 : vector<1x96xf32> to vector<8x96xf32>
    %40 = arith.addf %38, %39 : vector<8x96xf32>
    %41 = vector.extract_strided_slice %40 {offsets = [0, 0], sizes = [8, 32], strides = [1, 1]} : vector<8x96xf32> to vector<8x32xf32>
    %42 = vector.extract_strided_slice %40 {offsets = [0, 32], sizes = [8, 32], strides = [1, 1]} : vector<8x96xf32> to vector<8x32xf32>
    %43 = vector.extract_strided_slice %40 {offsets = [0, 64], sizes = [8, 32], strides = [1, 1]} : vector<8x96xf32> to vector<8x32xf32>
    %44 = vector.extract_strided_slice %41 {offsets = [0, 0], sizes = [8, 8], strides = [1, 1]} : vector<8x32xf32> to vector<8x8xf32>
    %45 = arith.truncf %44 : vector<8x8xf32> to vector<8x8xbf16>
    %46 = vector.extract_strided_slice %42 {offsets = [0, 0], sizes = [8, 8], strides = [1, 1]} : vector<8x32xf32> to vector<8x8xf32>
    %47 = arith.truncf %46 : vector<8x8xf32> to vector<8x8xbf16>
    %48 = vector.extract_strided_slice %43 {offsets = [0, 0], sizes = [8, 8], strides = [1, 1]} : vector<8x32xf32> to vector<8x8xf32>
    %49 = arith.truncf %48 : vector<8x8xf32> to vector<8x8xbf16>
    %cst_25 = arith.constant dense<0.000000e+00> : vector<8x8xf32>
    %50 = tpu.matmul %45, %47, %cst_25 {dimension_numbers = #tpu.dot_dimension_numbers<[1], [1], [0], [0], [0, 0, 1, 0], [], []>} : vector<8x8xbf16>, vector<8x8xbf16>, vector<8x8xf32> -> vector<8x8xf32>
    %cst_26 = arith.constant 0.353553385 : f32
    %51 = vector.broadcast %cst_26 : f32 to vector<8x8xf32>
    %52 = arith.mulf %50, %51 : vector<8x8xf32>
    %53 = arith.addf %52, %7 : vector<8x8xf32>
    %cst_27 = arith.constant dense<0xFF800000> : vector<8xf32>
    %54 = vector.multi_reduction <maximumf>, %53, %cst_27 [1] : vector<8x8xf32> to vector<8xf32>
    %55 = vector.shape_cast %54 : vector<8xf32> to vector<8x1xf32>
    %56 = vector.broadcast %55 : vector<8x1xf32> to vector<8x8xf32>
    %57 = arith.subf %53, %56 : vector<8x8xf32>
    %58 = math.exp %57 : vector<8x8xf32>
    %cst_28 = arith.constant dense<0.000000e+00> : vector<8xf32>
    %59 = vector.multi_reduction <add>, %58, %cst_28 [1] : vector<8x8xf32> to vector<8xf32>
    %60 = vector.shape_cast %59 : vector<8xf32> to vector<8x1xf32>
    %61 = tpu.reciprocal %60 {approx = true} : vector<8x1xf32> -> vector<8x1xf32>
    %62 = vector.broadcast %61 : vector<8x1xf32> to vector<8x8xf32>
    %63 = arith.mulf %58, %62 : vector<8x8xf32>
    %64 = arith.truncf %63 : vector<8x8xf32> to vector<8x8xbf16>
    %cst_29 = arith.constant dense<0.000000e+00> : vector<8x8xf32>
    %65 = tpu.matmul %64, %49, %cst_29 {dimension_numbers = #tpu.dot_dimension_numbers<[1], [0], [0], [1], [0, 0, 1, 1], [], []>} : vector<8x8xbf16>, vector<8x8xbf16>, vector<8x8xf32> -> vector<8x8xf32>
    %66 = vector.extract_strided_slice %41 {offsets = [0, 8], sizes = [8, 8], strides = [1, 1]} : vector<8x32xf32> to vector<8x8xf32>
    %67 = arith.truncf %66 : vector<8x8xf32> to vector<8x8xbf16>
    %68 = vector.extract_strided_slice %42 {offsets = [0, 8], sizes = [8, 8], strides = [1, 1]} : vector<8x32xf32> to vector<8x8xf32>
    %69 = arith.truncf %68 : vector<8x8xf32> to vector<8x8xbf16>
    %70 = vector.extract_strided_slice %43 {offsets = [0, 8], sizes = [8, 8], strides = [1, 1]} : vector<8x32xf32> to vector<8x8xf32>
    %71 = arith.truncf %70 : vector<8x8xf32> to vector<8x8xbf16>
    %cst_30 = arith.constant dense<0.000000e+00> : vector<8x8xf32>
    %72 = tpu.matmul %67, %69, %cst_30 {dimension_numbers = #tpu.dot_dimension_numbers<[1], [1], [0], [0], [0, 0, 1, 0], [], []>} : vector<8x8xbf16>, vector<8x8xbf16>, vector<8x8xf32> -> vector<8x8xf32>
    %cst_31 = arith.constant 0.353553385 : f32
    %73 = vector.broadcast %cst_31 : f32 to vector<8x8xf32>
    %74 = arith.mulf %72, %73 : vector<8x8xf32>
    %75 = arith.addf %74, %7 : vector<8x8xf32>
    %cst_32 = arith.constant dense<0xFF800000> : vector<8xf32>
    %76 = vector.multi_reduction <maximumf>, %75, %cst_32 [1] : vector<8x8xf32> to vector<8xf32>
    %77 = vector.shape_cast %76 : vector<8xf32> to vector<8x1xf32>
    %78 = vector.broadcast %77 : vector<8x1xf32> to vector<8x8xf32>
    %79 = arith.subf %75, %78 : vector<8x8xf32>
    %80 = math.exp %79 : vector<8x8xf32>
    %cst_33 = arith.constant dense<0.000000e+00> : vector<8xf32>
    %81 = vector.multi_reduction <add>, %80, %cst_33 [1] : vector<8x8xf32> to vector<8xf32>
    %82 = vector.shape_cast %81 : vector<8xf32> to vector<8x1xf32>
    %83 = tpu.reciprocal %82 {approx = true} : vector<8x1xf32> -> vector<8x1xf32>
    %84 = vector.broadcast %83 : vector<8x1xf32> to vector<8x8xf32>
    %85 = arith.mulf %80, %84 : vector<8x8xf32>
    %86 = arith.truncf %85 : vector<8x8xf32> to vector<8x8xbf16>
    %cst_34 = arith.constant dense<0.000000e+00> : vector<8x8xf32>
    %87 = tpu.matmul %86, %71, %cst_34 {dimension_numbers = #tpu.dot_dimension_numbers<[1], [0], [0], [1], [0, 0, 1, 1], [], []>} : vector<8x8xbf16>, vector<8x8xbf16>, vector<8x8xf32> -> vector<8x8xf32>
    %88 = vector.extract_strided_slice %41 {offsets = [0, 16], sizes = [8, 8], strides = [1, 1]} : vector<8x32xf32> to vector<8x8xf32>
    %89 = arith.truncf %88 : vector<8x8xf32> to vector<8x8xbf16>
    %90 = vector.extract_strided_slice %42 {offsets = [0, 16], sizes = [8, 8], strides = [1, 1]} : vector<8x32xf32> to vector<8x8xf32>
    %91 = arith.truncf %90 : vector<8x8xf32> to vector<8x8xbf16>
    %92 = vector.extract_strided_slice %43 {offsets = [0, 16], sizes = [8, 8], strides = [1, 1]} : vector<8x32xf32> to vector<8x8xf32>
    %93 = arith.truncf %92 : vector<8x8xf32> to vector<8x8xbf16>
    %cst_35 = arith.constant dense<0.000000e+00> : vector<8x8xf32>
    %94 = tpu.matmul %89, %91, %cst_35 {dimension_numbers = #tpu.dot_dimension_numbers<[1], [1], [0], [0], [0, 0, 1, 0], [], []>} : vector<8x8xbf16>, vector<8x8xbf16>, vector<8x8xf32> -> vector<8x8xf32>
    %cst_36 = arith.constant 0.353553385 : f32
    %95 = vector.broadcast %cst_36 : f32 to vector<8x8xf32>
    %96 = arith.mulf %94, %95 : vector<8x8xf32>
    %97 = arith.addf %96, %7 : vector<8x8xf32>
    %cst_37 = arith.constant dense<0xFF800000> : vector<8xf32>
    %98 = vector.multi_reduction <maximumf>, %97, %cst_37 [1] : vector<8x8xf32> to vector<8xf32>
    %99 = vector.shape_cast %98 : vector<8xf32> to vector<8x1xf32>
    %100 = vector.broadcast %99 : vector<8x1xf32> to vector<8x8xf32>
    %101 = arith.subf %97, %100 : vector<8x8xf32>
    %102 = math.exp %101 : vector<8x8xf32>
    %cst_38 = arith.constant dense<0.000000e+00> : vector<8xf32>
    %103 = vector.multi_reduction <add>, %102, %cst_38 [1] : vector<8x8xf32> to vector<8xf32>
    %104 = vector.shape_cast %103 : vector<8xf32> to vector<8x1xf32>
    %105 = tpu.reciprocal %104 {approx = true} : vector<8x1xf32> -> vector<8x1xf32>
    %106 = vector.broadcast %105 : vector<8x1xf32> to vector<8x8xf32>
    %107 = arith.mulf %102, %106 : vector<8x8xf32>
    %108 = arith.truncf %107 : vector<8x8xf32> to vector<8x8xbf16>
    %cst_39 = arith.constant dense<0.000000e+00> : vector<8x8xf32>
    %109 = tpu.matmul %108, %93, %cst_39 {dimension_numbers = #tpu.dot_dimension_numbers<[1], [0], [0], [1], [0, 0, 1, 1], [], []>} : vector<8x8xbf16>, vector<8x8xbf16>, vector<8x8xf32> -> vector<8x8xf32>
    %110 = vector.extract_strided_slice %41 {offsets = [0, 24], sizes = [8, 8], strides = [1, 1]} : vector<8x32xf32> to vector<8x8xf32>
    %111 = arith.truncf %110 : vector<8x8xf32> to vector<8x8xbf16>
    %112 = vector.extract_strided_slice %42 {offsets = [0, 24], sizes = [8, 8], strides = [1, 1]} : vector<8x32xf32> to vector<8x8xf32>
    %113 = arith.truncf %112 : vector<8x8xf32> to vector<8x8xbf16>
    %114 = vector.extract_strided_slice %43 {offsets = [0, 24], sizes = [8, 8], strides = [1, 1]} : vector<8x32xf32> to vector<8x8xf32>
    %115 = arith.truncf %114 : vector<8x8xf32> to vector<8x8xbf16>
    %cst_40 = arith.constant dense<0.000000e+00> : vector<8x8xf32>
    %116 = tpu.matmul %111, %113, %cst_40 {dimension_numbers = #tpu.dot_dimension_numbers<[1], [1], [0], [0], [0, 0, 1, 0], [], []>} : vector<8x8xbf16>, vector<8x8xbf16>, vector<8x8xf32> -> vector<8x8xf32>
    %cst_41 = arith.constant 0.353553385 : f32
    %117 = vector.broadcast %cst_41 : f32 to vector<8x8xf32>
    %118 = arith.mulf %116, %117 : vector<8x8xf32>
    %119 = arith.addf %118, %7 : vector<8x8xf32>
    %cst_42 = arith.constant dense<0xFF800000> : vector<8xf32>
    %120 = vector.multi_reduction <maximumf>, %119, %cst_42 [1] : vector<8x8xf32> to vector<8xf32>
    %121 = vector.shape_cast %120 : vector<8xf32> to vector<8x1xf32>
    %122 = vector.broadcast %121 : vector<8x1xf32> to vector<8x8xf32>
    %123 = arith.subf %119, %122 : vector<8x8xf32>
    %124 = math.exp %123 : vector<8x8xf32>
    %cst_43 = arith.constant dense<0.000000e+00> : vector<8xf32>
    %125 = vector.multi_reduction <add>, %124, %cst_43 [1] : vector<8x8xf32> to vector<8xf32>
    %126 = vector.shape_cast %125 : vector<8xf32> to vector<8x1xf32>
    %127 = tpu.reciprocal %126 {approx = true} : vector<8x1xf32> -> vector<8x1xf32>
    %128 = vector.broadcast %127 : vector<8x1xf32> to vector<8x8xf32>
    %129 = arith.mulf %124, %128 : vector<8x8xf32>
    %130 = arith.truncf %129 : vector<8x8xf32> to vector<8x8xbf16>
    %cst_44 = arith.constant dense<0.000000e+00> : vector<8x8xf32>
    %131 = tpu.matmul %130, %115, %cst_44 {dimension_numbers = #tpu.dot_dimension_numbers<[1], [0], [0], [1], [0, 0, 1, 1], [], []>} : vector<8x8xbf16>, vector<8x8xbf16>, vector<8x8xf32> -> vector<8x8xf32>
    %132 = tpu.concatenate %65, %87, %109, %131 in 1 : vector<8x8xf32>, vector<8x8xf32>, vector<8x8xf32>, vector<8x8xf32> -> vector<8x32xf32>
    %c0_45 = arith.constant 0 : index
    %c0_46 = arith.constant 0 : index
    %c0_47 = arith.constant 0 : index
    %133 = vector.load %arg10[%c0_45, %c0_46, %c0_47] : memref<2x32x32xbf16, #tpu.memory_space<vmem>>, vector<1x32x32xbf16>
    %134 = vector.shape_cast %133 : vector<1x32x32xbf16> to vector<32x32xbf16>
    %c0_48 = arith.constant 0 : index
    %c0_49 = arith.constant 0 : index
    %c0_50 = arith.constant 0 : index
    %135 = vector.load %arg11[%c0_48, %c0_49, %c0_50] : memref<2x1x32xf32, #tpu.memory_space<vmem>>, vector<1x1x32xf32>
    %136 = vector.shape_cast %135 : vector<1x1x32xf32> to vector<1x32xf32>
    %137 = arith.truncf %132 : vector<8x32xf32> to vector<8x32xbf16>
    %cst_51 = arith.constant dense<0.000000e+00> : vector<8x32xf32>
    %138 = tpu.matmul %137, %134, %cst_51 {dimension_numbers = #tpu.dot_dimension_numbers<[1], [0], [0], [1], [0, 0, 1, 1], [], []>} : vector<8x32xbf16>, vector<32x32xbf16>, vector<8x32xf32> -> vector<8x32xf32>
    %139 = vector.broadcast %136 : vector<1x32xf32> to vector<8x32xf32>
    %140 = arith.addf %138, %139 : vector<8x32xf32>
    %141 = arith.addf %5, %140 : vector<8x32xf32>
    %c0_52 = arith.constant 0 : index
    %c0_53 = arith.constant 0 : index
    %c0_54 = arith.constant 0 : index
    %142 = vector.load %arg18[%c0_52, %c0_53, %c0_54] : memref<2x1x32xf32, #tpu.memory_space<vmem>>, vector<1x1x32xf32>
    %143 = vector.shape_cast %142 : vector<1x1x32xf32> to vector<1x32xf32>
    %c0_55 = arith.constant 0 : index
    %c0_56 = arith.constant 0 : index
    %c0_57 = arith.constant 0 : index
    %144 = vector.load %arg19[%c0_55, %c0_56, %c0_57] : memref<2x1x32xf32, #tpu.memory_space<vmem>>, vector<1x1x32xf32>
    %145 = vector.shape_cast %144 : vector<1x1x32xf32> to vector<1x32xf32>
    %cst_58 = arith.constant dense<0.000000e+00> : vector<8xf32>
    %146 = vector.multi_reduction <add>, %141, %cst_58 [1] : vector<8x32xf32> to vector<8xf32>
    %147 = vector.shape_cast %146 : vector<8xf32> to vector<8x1xf32>
    %cst_59 = arith.constant 3.200000e+01 : f32
    %148 = vector.broadcast %cst_59 : f32 to vector<8x1xf32>
    %149 = arith.divf %147, %148 : vector<8x1xf32>
    %150 = vector.broadcast %149 : vector<8x1xf32> to vector<8x32xf32>
    %151 = arith.subf %141, %150 : vector<8x32xf32>
    %152 = arith.mulf %151, %151 : vector<8x32xf32>
    %cst_60 = arith.constant dense<0.000000e+00> : vector<8xf32>
    %153 = vector.multi_reduction <add>, %152, %cst_60 [1] : vector<8x32xf32> to vector<8xf32>
    %154 = vector.shape_cast %153 : vector<8xf32> to vector<8x1xf32>
    %cst_61 = arith.constant 3.100000e+01 : f32
    %155 = vector.broadcast %cst_61 : f32 to vector<8x1xf32>
    %156 = arith.divf %154, %155 : vector<8x1xf32>
    %157 = math.sqrt %156 : vector<8x1xf32>
    %cst_62 = arith.constant 9.99999997E-7 : f32
    %158 = vector.broadcast %cst_62 : f32 to vector<8x1xf32>
    %159 = arith.addf %157, %158 : vector<8x1xf32>
    %160 = tpu.reciprocal %159 {approx = true} : vector<8x1xf32> -> vector<8x1xf32>
    %161 = vector.broadcast %143 : vector<1x32xf32> to vector<8x32xf32>
    %162 = arith.mulf %161, %151 : vector<8x32xf32>
    %163 = vector.broadcast %160 : vector<8x1xf32> to vector<8x32xf32>
    %164 = arith.mulf %162, %163 : vector<8x32xf32>
    %165 = vector.broadcast %145 : vector<1x32xf32> to vector<8x32xf32>
    %166 = arith.addf %164, %165 : vector<8x32xf32>
    %c0_63 = arith.constant 0 : index
    %c0_64 = arith.constant 0 : index
    %c0_65 = arith.constant 0 : index
    %167 = vector.load %arg12[%c0_63, %c0_64, %c0_65] : memref<2x32x64xbf16, #tpu.memory_space<vmem>>, vector<1x32x64xbf16>
    %168 = vector.shape_cast %167 : vector<1x32x64xbf16> to vector<32x64xbf16>
    %c0_66 = arith.constant 0 : index
    %c0_67 = arith.constant 0 : index
    %c0_68 = arith.constant 0 : index
    %169 = vector.load %arg13[%c0_66, %c0_67, %c0_68] : memref<2x1x64xf32, #tpu.memory_space<vmem>>, vector<1x1x64xf32>
    %170 = vector.shape_cast %169 : vector<1x1x64xf32> to vector<1x64xf32>
    %171 = arith.truncf %166 : vector<8x32xf32> to vector<8x32xbf16>
    %cst_69 = arith.constant dense<0.000000e+00> : vector<8x64xf32>
    %172 = tpu.matmul %171, %168, %cst_69 {dimension_numbers = #tpu.dot_dimension_numbers<[1], [0], [0], [1], [0, 0, 1, 1], [], []>} : vector<8x32xbf16>, vector<32x64xbf16>, vector<8x64xf32> -> vector<8x64xf32>
    %173 = vector.broadcast %170 : vector<1x64xf32> to vector<8x64xf32>
    %174 = arith.addf %172, %173 : vector<8x64xf32>
    %cst_70 = arith.constant 0.000000e+00 : f32
    %175 = vector.broadcast %cst_70 : f32 to vector<8x64xf32>
    %176 = arith.maximumf %174, %175 : vector<8x64xf32>
    %c0_71 = arith.constant 0 : index
    %c0_72 = arith.constant 0 : index
    %c0_73 = arith.constant 0 : index
    %177 = vector.load %arg14[%c0_71, %c0_72, %c0_73] : memref<2x64x32xbf16, #tpu.memory_space<vmem>>, vector<1x64x32xbf16>
    %178 = vector.shape_cast %177 : vector<1x64x32xbf16> to vector<64x32xbf16>
    %c0_74 = arith.constant 0 : index
    %c0_75 = arith.constant 0 : index
    %c0_76 = arith.constant 0 : index
    %179 = vector.load %arg15[%c0_74, %c0_75, %c0_76] : memref<2x1x32xf32, #tpu.memory_space<vmem>>, vector<1x1x32xf32>
    %180 = vector.shape_cast %179 : vector<1x1x32xf32> to vector<1x32xf32>
    %181 = arith.truncf %176 : vector<8x64xf32> to vector<8x64xbf16>
    %cst_77 = arith.constant dense<0.000000e+00> : vector<8x32xf32>
    %182 = tpu.matmul %181, %178, %cst_77 {dimension_numbers = #tpu.dot_dimension_numbers<[1], [0], [0], [1], [0, 0, 1, 1], [], []>} : vector<8x64xbf16>, vector<64x32xbf16>, vector<8x32xf32> -> vector<8x32xf32>
    %183 = vector.broadcast %180 : vector<1x32xf32> to vector<8x32xf32>
    %184 = arith.addf %182, %183 : vector<8x32xf32>
    %185 = arith.addf %141, %184 : vector<8x32xf32>
    %c1 = arith.constant 1 : index
    %c0_78 = arith.constant 0 : index
    %c0_79 = arith.constant 0 : index
    %186 = vector.load %arg16[%c1, %c0_78, %c0_79] : memref<2x1x32xf32, #tpu.memory_space<vmem>>, vector<1x1x32xf32>
    %187 = vector.shape_cast %186 : vector<1x1x32xf32> to vector<1x32xf32>
    %c1_80 = arith.constant 1 : index
    %c0_81 = arith.constant 0 : index
    %c0_82 = arith.constant 0 : index
    %188 = vector.load %arg17[%c1_80, %c0_81, %c0_82] : memref<2x1x32xf32, #tpu.memory_space<vmem>>, vector<1x1x32xf32>
    %189 = vector.shape_cast %188 : vector<1x1x32xf32> to vector<1x32xf32>
    %cst_83 = arith.constant dense<0.000000e+00> : vector<8xf32>
    %190 = vector.multi_reduction <add>, %185, %cst_83 [1] : vector<8x32xf32> to vector<8xf32>
    %191 = vector.shape_cast %190 : vector<8xf32> to vector<8x1xf32>
    %cst_84 = arith.constant 3.200000e+01 : f32
    %192 = vector.broadcast %cst_84 : f32 to vector<8x1xf32>
    %193 = arith.divf %191, %192 : vector<8x1xf32>
    %194 = vector.broadcast %193 : vector<8x1xf32> to vector<8x32xf32>
    %195 = arith.subf %185, %194 : vector<8x32xf32>
    %196 = arith.mulf %195, %195 : vector<8x32xf32>
    %cst_85 = arith.constant dense<0.000000e+00> : vector<8xf32>
    %197 = vector.multi_reduction <add>, %196, %cst_85 [1] : vector<8x32xf32> to vector<8xf32>
    %198 = vector.shape_cast %197 : vector<8xf32> to vector<8x1xf32>
    %cst_86 = arith.constant 3.100000e+01 : f32
    %199 = vector.broadcast %cst_86 : f32 to vector<8x1xf32>
    %200 = arith.divf %198, %199 : vector<8x1xf32>
    %201 = math.sqrt %200 : vector<8x1xf32>
    %cst_87 = arith.constant 9.99999997E-7 : f32
    %202 = vector.broadcast %cst_87 : f32 to vector<8x1xf32>
    %203 = arith.addf %201, %202 : vector<8x1xf32>
    %204 = tpu.reciprocal %203 {approx = true} : vector<8x1xf32> -> vector<8x1xf32>
    %205 = vector.broadcast %187 : vector<1x32xf32> to vector<8x32xf32>
    %206 = arith.mulf %205, %195 : vector<8x32xf32>
    %207 = vector.broadcast %204 : vector<8x1xf32> to vector<8x32xf32>
    %208 = arith.mulf %206, %207 : vector<8x32xf32>
    %209 = vector.broadcast %189 : vector<1x32xf32> to vector<8x32xf32>
    %210 = arith.addf %208, %209 : vector<8x32xf32>
    %c1_88 = arith.constant 1 : index
    %c0_89 = arith.constant 0 : index
    %c0_90 = arith.constant 0 : index
    %211 = vector.load %arg8[%c1_88, %c0_89, %c0_90] : memref<2x32x96xbf16, #tpu.memory_space<vmem>>, vector<1x32x96xbf16>
    %212 = vector.shape_cast %211 : vector<1x32x96xbf16> to vector<32x96xbf16>
    %c1_91 = arith.constant 1 : index
    %c0_92 = arith.constant 0 : index
    %c0_93 = arith.constant 0 : index
    %213 = vector.load %arg9[%c1_91, %c0_92, %c0_93] : memref<2x1x96xf32, #tpu.memory_space<vmem>>, vector<1x1x96xf32>
    %214 = vector.shape_cast %213 : vector<1x1x96xf32> to vector<1x96xf32>
    %215 = arith.truncf %210 : vector<8x32xf32> to vector<8x32xbf16>
    %cst_94 = arith.constant dense<0.000000e+00> : vector<8x96xf32>
    %216 = tpu.matmul %215, %212, %cst_94 {dimension_numbers = #tpu.dot_dimension_numbers<[1], [0], [0], [1], [0, 0, 1, 1], [], []>} : vector<8x32xbf16>, vector<32x96xbf16>, vector<8x96xf32> -> vector<8x96xf32>
    %217 = vector.broadcast %214 : vector<1x96xf32> to vector<8x96xf32>
    %218 = arith.addf %216, %217 : vector<8x96xf32>
    %219 = vector.extract_strided_slice %218 {offsets = [0, 0], sizes = [8, 32], strides = [1, 1]} : vector<8x96xf32> to vector<8x32xf32>
    %220 = vector.extract_strided_slice %218 {offsets = [0, 32], sizes = [8, 32], strides = [1, 1]} : vector<8x96xf32> to vector<8x32xf32>
    %221 = vector.extract_strided_slice %218 {offsets = [0, 64], sizes = [8, 32], strides = [1, 1]} : vector<8x96xf32> to vector<8x32xf32>
    %222 = vector.extract_strided_slice %219 {offsets = [0, 0], sizes = [8, 8], strides = [1, 1]} : vector<8x32xf32> to vector<8x8xf32>
    %223 = arith.truncf %222 : vector<8x8xf32> to vector<8x8xbf16>
    %224 = vector.extract_strided_slice %220 {offsets = [0, 0], sizes = [8, 8], strides = [1, 1]} : vector<8x32xf32> to vector<8x8xf32>
    %225 = arith.truncf %224 : vector<8x8xf32> to vector<8x8xbf16>
    %226 = vector.extract_strided_slice %221 {offsets = [0, 0], sizes = [8, 8], strides = [1, 1]} : vector<8x32xf32> to vector<8x8xf32>
    %227 = arith.truncf %226 : vector<8x8xf32> to vector<8x8xbf16>
    %cst_95 = arith.constant dense<0.000000e+00> : vector<8x8xf32>
    %228 = tpu.matmul %223, %225, %cst_95 {dimension_numbers = #tpu.dot_dimension_numbers<[1], [1], [0], [0], [0, 0, 1, 0], [], []>} : vector<8x8xbf16>, vector<8x8xbf16>, vector<8x8xf32> -> vector<8x8xf32>
    %cst_96 = arith.constant 0.353553385 : f32
    %229 = vector.broadcast %cst_96 : f32 to vector<8x8xf32>
    %230 = arith.mulf %228, %229 : vector<8x8xf32>
    %231 = arith.addf %230, %7 : vector<8x8xf32>
    %cst_97 = arith.constant dense<0xFF800000> : vector<8xf32>
    %232 = vector.multi_reduction <maximumf>, %231, %cst_97 [1] : vector<8x8xf32> to vector<8xf32>
    %233 = vector.shape_cast %232 : vector<8xf32> to vector<8x1xf32>
    %234 = vector.broadcast %233 : vector<8x1xf32> to vector<8x8xf32>
    %235 = arith.subf %231, %234 : vector<8x8xf32>
    %236 = math.exp %235 : vector<8x8xf32>
    %cst_98 = arith.constant dense<0.000000e+00> : vector<8xf32>
    %237 = vector.multi_reduction <add>, %236, %cst_98 [1] : vector<8x8xf32> to vector<8xf32>
    %238 = vector.shape_cast %237 : vector<8xf32> to vector<8x1xf32>
    %239 = tpu.reciprocal %238 {approx = true} : vector<8x1xf32> -> vector<8x1xf32>
    %240 = vector.broadcast %239 : vector<8x1xf32> to vector<8x8xf32>
    %241 = arith.mulf %236, %240 : vector<8x8xf32>
    %242 = arith.truncf %241 : vector<8x8xf32> to vector<8x8xbf16>
    %cst_99 = arith.constant dense<0.000000e+00> : vector<8x8xf32>
    %243 = tpu.matmul %242, %227, %cst_99 {dimension_numbers = #tpu.dot_dimension_numbers<[1], [0], [0], [1], [0, 0, 1, 1], [], []>} : vector<8x8xbf16>, vector<8x8xbf16>, vector<8x8xf32> -> vector<8x8xf32>
    %244 = vector.extract_strided_slice %219 {offsets = [0, 8], sizes = [8, 8], strides = [1, 1]} : vector<8x32xf32> to vector<8x8xf32>
    %245 = arith.truncf %244 : vector<8x8xf32> to vector<8x8xbf16>
    %246 = vector.extract_strided_slice %220 {offsets = [0, 8], sizes = [8, 8], strides = [1, 1]} : vector<8x32xf32> to vector<8x8xf32>
    %247 = arith.truncf %246 : vector<8x8xf32> to vector<8x8xbf16>
    %248 = vector.extract_strided_slice %221 {offsets = [0, 8], sizes = [8, 8], strides = [1, 1]} : vector<8x32xf32> to vector<8x8xf32>
    %249 = arith.truncf %248 : vector<8x8xf32> to vector<8x8xbf16>
    %cst_100 = arith.constant dense<0.000000e+00> : vector<8x8xf32>
    %250 = tpu.matmul %245, %247, %cst_100 {dimension_numbers = #tpu.dot_dimension_numbers<[1], [1], [0], [0], [0, 0, 1, 0], [], []>} : vector<8x8xbf16>, vector<8x8xbf16>, vector<8x8xf32> -> vector<8x8xf32>
    %cst_101 = arith.constant 0.353553385 : f32
    %251 = vector.broadcast %cst_101 : f32 to vector<8x8xf32>
    %252 = arith.mulf %250, %251 : vector<8x8xf32>
    %253 = arith.addf %252, %7 : vector<8x8xf32>
    %cst_102 = arith.constant dense<0xFF800000> : vector<8xf32>
    %254 = vector.multi_reduction <maximumf>, %253, %cst_102 [1] : vector<8x8xf32> to vector<8xf32>
    %255 = vector.shape_cast %254 : vector<8xf32> to vector<8x1xf32>
    %256 = vector.broadcast %255 : vector<8x1xf32> to vector<8x8xf32>
    %257 = arith.subf %253, %256 : vector<8x8xf32>
    %258 = math.exp %257 : vector<8x8xf32>
    %cst_103 = arith.constant dense<0.000000e+00> : vector<8xf32>
    %259 = vector.multi_reduction <add>, %258, %cst_103 [1] : vector<8x8xf32> to vector<8xf32>
    %260 = vector.shape_cast %259 : vector<8xf32> to vector<8x1xf32>
    %261 = tpu.reciprocal %260 {approx = true} : vector<8x1xf32> -> vector<8x1xf32>
    %262 = vector.broadcast %261 : vector<8x1xf32> to vector<8x8xf32>
    %263 = arith.mulf %258, %262 : vector<8x8xf32>
    %264 = arith.truncf %263 : vector<8x8xf32> to vector<8x8xbf16>
    %cst_104 = arith.constant dense<0.000000e+00> : vector<8x8xf32>
    %265 = tpu.matmul %264, %249, %cst_104 {dimension_numbers = #tpu.dot_dimension_numbers<[1], [0], [0], [1], [0, 0, 1, 1], [], []>} : vector<8x8xbf16>, vector<8x8xbf16>, vector<8x8xf32> -> vector<8x8xf32>
    %266 = vector.extract_strided_slice %219 {offsets = [0, 16], sizes = [8, 8], strides = [1, 1]} : vector<8x32xf32> to vector<8x8xf32>
    %267 = arith.truncf %266 : vector<8x8xf32> to vector<8x8xbf16>
    %268 = vector.extract_strided_slice %220 {offsets = [0, 16], sizes = [8, 8], strides = [1, 1]} : vector<8x32xf32> to vector<8x8xf32>
    %269 = arith.truncf %268 : vector<8x8xf32> to vector<8x8xbf16>
    %270 = vector.extract_strided_slice %221 {offsets = [0, 16], sizes = [8, 8], strides = [1, 1]} : vector<8x32xf32> to vector<8x8xf32>
    %271 = arith.truncf %270 : vector<8x8xf32> to vector<8x8xbf16>
    %cst_105 = arith.constant dense<0.000000e+00> : vector<8x8xf32>
    %272 = tpu.matmul %267, %269, %cst_105 {dimension_numbers = #tpu.dot_dimension_numbers<[1], [1], [0], [0], [0, 0, 1, 0], [], []>} : vector<8x8xbf16>, vector<8x8xbf16>, vector<8x8xf32> -> vector<8x8xf32>
    %cst_106 = arith.constant 0.353553385 : f32
    %273 = vector.broadcast %cst_106 : f32 to vector<8x8xf32>
    %274 = arith.mulf %272, %273 : vector<8x8xf32>
    %275 = arith.addf %274, %7 : vector<8x8xf32>
    %cst_107 = arith.constant dense<0xFF800000> : vector<8xf32>
    %276 = vector.multi_reduction <maximumf>, %275, %cst_107 [1] : vector<8x8xf32> to vector<8xf32>
    %277 = vector.shape_cast %276 : vector<8xf32> to vector<8x1xf32>
    %278 = vector.broadcast %277 : vector<8x1xf32> to vector<8x8xf32>
    %279 = arith.subf %275, %278 : vector<8x8xf32>
    %280 = math.exp %279 : vector<8x8xf32>
    %cst_108 = arith.constant dense<0.000000e+00> : vector<8xf32>
    %281 = vector.multi_reduction <add>, %280, %cst_108 [1] : vector<8x8xf32> to vector<8xf32>
    %282 = vector.shape_cast %281 : vector<8xf32> to vector<8x1xf32>
    %283 = tpu.reciprocal %282 {approx = true} : vector<8x1xf32> -> vector<8x1xf32>
    %284 = vector.broadcast %283 : vector<8x1xf32> to vector<8x8xf32>
    %285 = arith.mulf %280, %284 : vector<8x8xf32>
    %286 = arith.truncf %285 : vector<8x8xf32> to vector<8x8xbf16>
    %cst_109 = arith.constant dense<0.000000e+00> : vector<8x8xf32>
    %287 = tpu.matmul %286, %271, %cst_109 {dimension_numbers = #tpu.dot_dimension_numbers<[1], [0], [0], [1], [0, 0, 1, 1], [], []>} : vector<8x8xbf16>, vector<8x8xbf16>, vector<8x8xf32> -> vector<8x8xf32>
    %288 = vector.extract_strided_slice %219 {offsets = [0, 24], sizes = [8, 8], strides = [1, 1]} : vector<8x32xf32> to vector<8x8xf32>
    %289 = arith.truncf %288 : vector<8x8xf32> to vector<8x8xbf16>
    %290 = vector.extract_strided_slice %220 {offsets = [0, 24], sizes = [8, 8], strides = [1, 1]} : vector<8x32xf32> to vector<8x8xf32>
    %291 = arith.truncf %290 : vector<8x8xf32> to vector<8x8xbf16>
    %292 = vector.extract_strided_slice %221 {offsets = [0, 24], sizes = [8, 8], strides = [1, 1]} : vector<8x32xf32> to vector<8x8xf32>
    %293 = arith.truncf %292 : vector<8x8xf32> to vector<8x8xbf16>
    %cst_110 = arith.constant dense<0.000000e+00> : vector<8x8xf32>
    %294 = tpu.matmul %289, %291, %cst_110 {dimension_numbers = #tpu.dot_dimension_numbers<[1], [1], [0], [0], [0, 0, 1, 0], [], []>} : vector<8x8xbf16>, vector<8x8xbf16>, vector<8x8xf32> -> vector<8x8xf32>
    %cst_111 = arith.constant 0.353553385 : f32
    %295 = vector.broadcast %cst_111 : f32 to vector<8x8xf32>
    %296 = arith.mulf %294, %295 : vector<8x8xf32>
    %297 = arith.addf %296, %7 : vector<8x8xf32>
    %cst_112 = arith.constant dense<0xFF800000> : vector<8xf32>
    %298 = vector.multi_reduction <maximumf>, %297, %cst_112 [1] : vector<8x8xf32> to vector<8xf32>
    %299 = vector.shape_cast %298 : vector<8xf32> to vector<8x1xf32>
    %300 = vector.broadcast %299 : vector<8x1xf32> to vector<8x8xf32>
    %301 = arith.subf %297, %300 : vector<8x8xf32>
    %302 = math.exp %301 : vector<8x8xf32>
    %cst_113 = arith.constant dense<0.000000e+00> : vector<8xf32>
    %303 = vector.multi_reduction <add>, %302, %cst_113 [1] : vector<8x8xf32> to vector<8xf32>
    %304 = vector.shape_cast %303 : vector<8xf32> to vector<8x1xf32>
    %305 = tpu.reciprocal %304 {approx = true} : vector<8x1xf32> -> vector<8x1xf32>
    %306 = vector.broadcast %305 : vector<8x1xf32> to vector<8x8xf32>
    %307 = arith.mulf %302, %306 : vector<8x8xf32>
    %308 = arith.truncf %307 : vector<8x8xf32> to vector<8x8xbf16>
    %cst_114 = arith.constant dense<0.000000e+00> : vector<8x8xf32>
    %309 = tpu.matmul %308, %293, %cst_114 {dimension_numbers = #tpu.dot_dimension_numbers<[1], [0], [0], [1], [0, 0, 1, 1], [], []>} : vector<8x8xbf16>, vector<8x8xbf16>, vector<8x8xf32> -> vector<8x8xf32>
    %310 = tpu.concatenate %243, %265, %287, %309 in 1 : vector<8x8xf32>, vector<8x8xf32>, vector<8x8xf32>, vector<8x8xf32> -> vector<8x32xf32>
    %c1_115 = arith.constant 1 : index
    %c0_116 = arith.constant 0 : index
    %c0_117 = arith.constant 0 : index
    %311 = vector.load %arg10[%c1_115, %c0_116, %c0_117] : memref<2x32x32xbf16, #tpu.memory_space<vmem>>, vector<1x32x32xbf16>
    %312 = vector.shape_cast %311 : vector<1x32x32xbf16> to vector<32x32xbf16>
    %c1_118 = arith.constant 1 : index
    %c0_119 = arith.constant 0 : index
    %c0_120 = arith.constant 0 : index
    %313 = vector.load %arg11[%c1_118, %c0_119, %c0_120] : memref<2x1x32xf32, #tpu.memory_space<vmem>>, vector<1x1x32xf32>
    %314 = vector.shape_cast %313 : vector<1x1x32xf32> to vector<1x32xf32>
    %315 = arith.truncf %310 : vector<8x32xf32> to vector<8x32xbf16>
    %cst_121 = arith.constant dense<0.000000e+00> : vector<8x32xf32>
    %316 = tpu.matmul %315, %312, %cst_121 {dimension_numbers = #tpu.dot_dimension_numbers<[1], [0], [0], [1], [0, 0, 1, 1], [], []>} : vector<8x32xbf16>, vector<32x32xbf16>, vector<8x32xf32> -> vector<8x32xf32>
    %317 = vector.broadcast %314 : vector<1x32xf32> to vector<8x32xf32>
    %318 = arith.addf %316, %317 : vector<8x32xf32>
    %319 = arith.addf %185, %318 : vector<8x32xf32>
    %c1_122 = arith.constant 1 : index
    %c0_123 = arith.constant 0 : index
    %c0_124 = arith.constant 0 : index
    %320 = vector.load %arg18[%c1_122, %c0_123, %c0_124] : memref<2x1x32xf32, #tpu.memory_space<vmem>>, vector<1x1x32xf32>
    %321 = vector.shape_cast %320 : vector<1x1x32xf32> to vector<1x32xf32>
    %c1_125 = arith.constant 1 : index
    %c0_126 = arith.constant 0 : index
    %c0_127 = arith.constant 0 : index
    %322 = vector.load %arg19[%c1_125, %c0_126, %c0_127] : memref<2x1x32xf32, #tpu.memory_space<vmem>>, vector<1x1x32xf32>
    %323 = vector.shape_cast %322 : vector<1x1x32xf32> to vector<1x32xf32>
    %cst_128 = arith.constant dense<0.000000e+00> : vector<8xf32>
    %324 = vector.multi_reduction <add>, %319, %cst_128 [1] : vector<8x32xf32> to vector<8xf32>
    %325 = vector.shape_cast %324 : vector<8xf32> to vector<8x1xf32>
    %cst_129 = arith.constant 3.200000e+01 : f32
    %326 = vector.broadcast %cst_129 : f32 to vector<8x1xf32>
    %327 = arith.divf %325, %326 : vector<8x1xf32>
    %328 = vector.broadcast %327 : vector<8x1xf32> to vector<8x32xf32>
    %329 = arith.subf %319, %328 : vector<8x32xf32>
    %330 = arith.mulf %329, %329 : vector<8x32xf32>
    %cst_130 = arith.constant dense<0.000000e+00> : vector<8xf32>
    %331 = vector.multi_reduction <add>, %330, %cst_130 [1] : vector<8x32xf32> to vector<8xf32>
    %332 = vector.shape_cast %331 : vector<8xf32> to vector<8x1xf32>
    %cst_131 = arith.constant 3.100000e+01 : f32
    %333 = vector.broadcast %cst_131 : f32 to vector<8x1xf32>
    %334 = arith.divf %332, %333 : vector<8x1xf32>
    %335 = math.sqrt %334 : vector<8x1xf32>
    %cst_132 = arith.constant 9.99999997E-7 : f32
    %336 = vector.broadcast %cst_132 : f32 to vector<8x1xf32>
    %337 = arith.addf %335, %336 : vector<8x1xf32>
    %338 = tpu.reciprocal %337 {approx = true} : vector<8x1xf32> -> vector<8x1xf32>
    %339 = vector.broadcast %321 : vector<1x32xf32> to vector<8x32xf32>
    %340 = arith.mulf %339, %329 : vector<8x32xf32>
    %341 = vector.broadcast %338 : vector<8x1xf32> to vector<8x32xf32>
    %342 = arith.mulf %340, %341 : vector<8x32xf32>
    %343 = vector.broadcast %323 : vector<1x32xf32> to vector<8x32xf32>
    %344 = arith.addf %342, %343 : vector<8x32xf32>
    %c1_133 = arith.constant 1 : index
    %c0_134 = arith.constant 0 : index
    %c0_135 = arith.constant 0 : index
    %345 = vector.load %arg12[%c1_133, %c0_134, %c0_135] : memref<2x32x64xbf16, #tpu.memory_space<vmem>>, vector<1x32x64xbf16>
    %346 = vector.shape_cast %345 : vector<1x32x64xbf16> to vector<32x64xbf16>
    %c1_136 = arith.constant 1 : index
    %c0_137 = arith.constant 0 : index
    %c0_138 = arith.constant 0 : index
    %347 = vector.load %arg13[%c1_136, %c0_137, %c0_138] : memref<2x1x64xf32, #tpu.memory_space<vmem>>, vector<1x1x64xf32>
    %348 = vector.shape_cast %347 : vector<1x1x64xf32> to vector<1x64xf32>
    %349 = arith.truncf %344 : vector<8x32xf32> to vector<8x32xbf16>
    %cst_139 = arith.constant dense<0.000000e+00> : vector<8x64xf32>
    %350 = tpu.matmul %349, %346, %cst_139 {dimension_numbers = #tpu.dot_dimension_numbers<[1], [0], [0], [1], [0, 0, 1, 1], [], []>} : vector<8x32xbf16>, vector<32x64xbf16>, vector<8x64xf32> -> vector<8x64xf32>
    %351 = vector.broadcast %348 : vector<1x64xf32> to vector<8x64xf32>
    %352 = arith.addf %350, %351 : vector<8x64xf32>
    %cst_140 = arith.constant 0.000000e+00 : f32
    %353 = vector.broadcast %cst_140 : f32 to vector<8x64xf32>
    %354 = arith.maximumf %352, %353 : vector<8x64xf32>
    %c1_141 = arith.constant 1 : index
    %c0_142 = arith.constant 0 : index
    %c0_143 = arith.constant 0 : index
    %355 = vector.load %arg14[%c1_141, %c0_142, %c0_143] : memref<2x64x32xbf16, #tpu.memory_space<vmem>>, vector<1x64x32xbf16>
    %356 = vector.shape_cast %355 : vector<1x64x32xbf16> to vector<64x32xbf16>
    %c1_144 = arith.constant 1 : index
    %c0_145 = arith.constant 0 : index
    %c0_146 = arith.constant 0 : index
    %357 = vector.load %arg15[%c1_144, %c0_145, %c0_146] : memref<2x1x32xf32, #tpu.memory_space<vmem>>, vector<1x1x32xf32>
    %358 = vector.shape_cast %357 : vector<1x1x32xf32> to vector<1x32xf32>
    %359 = arith.truncf %354 : vector<8x64xf32> to vector<8x64xbf16>
    %cst_147 = arith.constant dense<0.000000e+00> : vector<8x32xf32>
    %360 = tpu.matmul %359, %356, %cst_147 {dimension_numbers = #tpu.dot_dimension_numbers<[1], [0], [0], [1], [0, 0, 1, 1], [], []>} : vector<8x64xbf16>, vector<64x32xbf16>, vector<8x32xf32> -> vector<8x32xf32>
    %361 = vector.broadcast %358 : vector<1x32xf32> to vector<8x32xf32>
    %362 = arith.addf %360, %361 : vector<8x32xf32>
    %363 = arith.addf %319, %362 : vector<8x32xf32>
    %c0_148 = arith.constant 0 : index
    %c0_149 = arith.constant 0 : index
    %364 = vector.load %arg20[%c0_148, %c0_149] : memref<1x32xf32, #tpu.memory_space<vmem>>, vector<1x32xf32>
    %c0_150 = arith.constant 0 : index
    %c0_151 = arith.constant 0 : index
    %365 = vector.load %arg21[%c0_150, %c0_151] : memref<1x32xf32, #tpu.memory_space<vmem>>, vector<1x32xf32>
    %cst_152 = arith.constant dense<0.000000e+00> : vector<8xf32>
    %366 = vector.multi_reduction <add>, %363, %cst_152 [1] : vector<8x32xf32> to vector<8xf32>
    %367 = vector.shape_cast %366 : vector<8xf32> to vector<8x1xf32>
    %cst_153 = arith.constant 3.200000e+01 : f32
    %368 = vector.broadcast %cst_153 : f32 to vector<8x1xf32>
    %369 = arith.divf %367, %368 : vector<8x1xf32>
    %370 = vector.broadcast %369 : vector<8x1xf32> to vector<8x32xf32>
    %371 = arith.subf %363, %370 : vector<8x32xf32>
    %372 = arith.mulf %371, %371 : vector<8x32xf32>
    %cst_154 = arith.constant dense<0.000000e+00> : vector<8xf32>
    %373 = vector.multi_reduction <add>, %372, %cst_154 [1] : vector<8x32xf32> to vector<8xf32>
    %374 = vector.shape_cast %373 : vector<8xf32> to vector<8x1xf32>
    %cst_155 = arith.constant 3.100000e+01 : f32
    %375 = vector.broadcast %cst_155 : f32 to vector<8x1xf32>
    %376 = arith.divf %374, %375 : vector<8x1xf32>
    %377 = math.sqrt %376 : vector<8x1xf32>
    %cst_156 = arith.constant 9.99999997E-7 : f32
    %378 = vector.broadcast %cst_156 : f32 to vector<8x1xf32>
    %379 = arith.addf %377, %378 : vector<8x1xf32>
    %380 = tpu.reciprocal %379 {approx = true} : vector<8x1xf32> -> vector<8x1xf32>
    %381 = vector.broadcast %364 : vector<1x32xf32> to vector<8x32xf32>
    %382 = arith.mulf %381, %371 : vector<8x32xf32>
    %383 = vector.broadcast %380 : vector<8x1xf32> to vector<8x32xf32>
    %384 = arith.mulf %382, %383 : vector<8x32xf32>
    %385 = vector.broadcast %365 : vector<1x32xf32> to vector<8x32xf32>
    %386 = arith.addf %384, %385 : vector<8x32xf32>
    %c0_157 = arith.constant 0 : index
    %c0_158 = arith.constant 0 : index
    %c0_159 = arith.constant 0 : index
    %387 = vector.load %arg2[%c0_157, %c0_158, %c0_159] : memref<1x8x32xf32, #tpu.memory_space<vmem>>, vector<1x8x32xf32>
    %388 = vector.shape_cast %387 : vector<1x8x32xf32> to vector<8x32xf32>
    %cst_160 = arith.constant 5.65685415 : f32
    %389 = vector.broadcast %cst_160 : f32 to vector<8x32xf32>
    %390 = arith.mulf %388, %389 : vector<8x32xf32>
    %c0_161 = arith.constant 0 : index
    %c0_162 = arith.constant 0 : index
    %391 = vector.load %arg7[%c0_161, %c0_162] : memref<8x32xf32, #tpu.memory_space<vmem>>, vector<8x32xf32>
    %392 = arith.addf %390, %391 : vector<8x32xf32>
    %c0_163 = arith.constant 0 : index
    %c0_164 = arith.constant 0 : index
    %c0_165 = arith.constant 0 : index
    %393 = vector.load %arg5[%c0_163, %c0_164, %c0_165] : memref<1x8x8xf32, #tpu.memory_space<vmem>>, vector<1x8x8xf32>
    %394 = vector.shape_cast %393 : vector<1x8x8xf32> to vector<8x8xf32>
    %c0_166 = arith.constant 0 : index
    %c0_167 = arith.constant 0 : index
    %c0_168 = arith.constant 0 : index
    %395 = vector.load %arg4[%c0_166, %c0_167, %c0_168] : memref<1x8x8xf32, #tpu.memory_space<vmem>>, vector<1x8x8xf32>
    %396 = vector.shape_cast %395 : vector<1x8x8xf32> to vector<8x8xf32>
    %c0_169 = arith.constant 0 : index
    %c0_170 = arith.constant 0 : index
    %c0_171 = arith.constant 0 : index
    %397 = vector.load %arg34[%c0_169, %c0_170, %c0_171] : memref<2x1x32xf32, #tpu.memory_space<vmem>>, vector<1x1x32xf32>
    %398 = vector.shape_cast %397 : vector<1x1x32xf32> to vector<1x32xf32>
    %c0_172 = arith.constant 0 : index
    %c0_173 = arith.constant 0 : index
    %c0_174 = arith.constant 0 : index
    %399 = vector.load %arg35[%c0_172, %c0_173, %c0_174] : memref<2x1x32xf32, #tpu.memory_space<vmem>>, vector<1x1x32xf32>
    %400 = vector.shape_cast %399 : vector<1x1x32xf32> to vector<1x32xf32>
    %cst_175 = arith.constant dense<0.000000e+00> : vector<8xf32>
    %401 = vector.multi_reduction <add>, %392, %cst_175 [1] : vector<8x32xf32> to vector<8xf32>
    %402 = vector.shape_cast %401 : vector<8xf32> to vector<8x1xf32>
    %cst_176 = arith.constant 3.200000e+01 : f32
    %403 = vector.broadcast %cst_176 : f32 to vector<8x1xf32>
    %404 = arith.divf %402, %403 : vector<8x1xf32>
    %405 = vector.broadcast %404 : vector<8x1xf32> to vector<8x32xf32>
    %406 = arith.subf %392, %405 : vector<8x32xf32>
    %407 = arith.mulf %406, %406 : vector<8x32xf32>
    %cst_177 = arith.constant dense<0.000000e+00> : vector<8xf32>
    %408 = vector.multi_reduction <add>, %407, %cst_177 [1] : vector<8x32xf32> to vector<8xf32>
    %409 = vector.shape_cast %408 : vector<8xf32> to vector<8x1xf32>
    %cst_178 = arith.constant 3.100000e+01 : f32
    %410 = vector.broadcast %cst_178 : f32 to vector<8x1xf32>
    %411 = arith.divf %409, %410 : vector<8x1xf32>
    %412 = math.sqrt %411 : vector<8x1xf32>
    %cst_179 = arith.constant 9.99999997E-7 : f32
    %413 = vector.broadcast %cst_179 : f32 to vector<8x1xf32>
    %414 = arith.addf %412, %413 : vector<8x1xf32>
    %415 = tpu.reciprocal %414 {approx = true} : vector<8x1xf32> -> vector<8x1xf32>
    %416 = vector.broadcast %398 : vector<1x32xf32> to vector<8x32xf32>
    %417 = arith.mulf %416, %406 : vector<8x32xf32>
    %418 = vector.broadcast %415 : vector<8x1xf32> to vector<8x32xf32>
    %419 = arith.mulf %417, %418 : vector<8x32xf32>
    %420 = vector.broadcast %400 : vector<1x32xf32> to vector<8x32xf32>
    %421 = arith.addf %419, %420 : vector<8x32xf32>
    %c0_180 = arith.constant 0 : index
    %c0_181 = arith.constant 0 : index
    %c0_182 = arith.constant 0 : index
    %422 = vector.load %arg22[%c0_180, %c0_181, %c0_182] : memref<2x32x96xbf16, #tpu.memory_space<vmem>>, vector<1x32x96xbf16>
    %423 = vector.shape_cast %422 : vector<1x32x96xbf16> to vector<32x96xbf16>
    %c0_183 = arith.constant 0 : index
    %c0_184 = arith.constant 0 : index
    %c0_185 = arith.constant 0 : index
    %424 = vector.load %arg23[%c0_183, %c0_184, %c0_185] : memref<2x1x96xf32, #tpu.memory_space<vmem>>, vector<1x1x96xf32>
    %425 = vector.shape_cast %424 : vector<1x1x96xf32> to vector<1x96xf32>
    %426 = arith.truncf %421 : vector<8x32xf32> to vector<8x32xbf16>
    %cst_186 = arith.constant dense<0.000000e+00> : vector<8x96xf32>
    %427 = tpu.matmul %426, %423, %cst_186 {dimension_numbers = #tpu.dot_dimension_numbers<[1], [0], [0], [1], [0, 0, 1, 1], [], []>} : vector<8x32xbf16>, vector<32x96xbf16>, vector<8x96xf32> -> vector<8x96xf32>
    %428 = vector.broadcast %425 : vector<1x96xf32> to vector<8x96xf32>
    %429 = arith.addf %427, %428 : vector<8x96xf32>
    %430 = vector.extract_strided_slice %429 {offsets = [0, 0], sizes = [8, 32], strides = [1, 1]} : vector<8x96xf32> to vector<8x32xf32>
    %431 = vector.extract_strided_slice %429 {offsets = [0, 32], sizes = [8, 32], strides = [1, 1]} : vector<8x96xf32> to vector<8x32xf32>
    %432 = vector.extract_strided_slice %429 {offsets = [0, 64], sizes = [8, 32], strides = [1, 1]} : vector<8x96xf32> to vector<8x32xf32>
    %433 = vector.extract_strided_slice %430 {offsets = [0, 0], sizes = [8, 8], strides = [1, 1]} : vector<8x32xf32> to vector<8x8xf32>
    %434 = arith.truncf %433 : vector<8x8xf32> to vector<8x8xbf16>
    %435 = vector.extract_strided_slice %431 {offsets = [0, 0], sizes = [8, 8], strides = [1, 1]} : vector<8x32xf32> to vector<8x8xf32>
    %436 = arith.truncf %435 : vector<8x8xf32> to vector<8x8xbf16>
    %437 = vector.extract_strided_slice %432 {offsets = [0, 0], sizes = [8, 8], strides = [1, 1]} : vector<8x32xf32> to vector<8x8xf32>
    %438 = arith.truncf %437 : vector<8x8xf32> to vector<8x8xbf16>
    %cst_187 = arith.constant dense<0.000000e+00> : vector<8x8xf32>
    %439 = tpu.matmul %434, %436, %cst_187 {dimension_numbers = #tpu.dot_dimension_numbers<[1], [1], [0], [0], [0, 0, 1, 0], [], []>} : vector<8x8xbf16>, vector<8x8xbf16>, vector<8x8xf32> -> vector<8x8xf32>
    %cst_188 = arith.constant 0.353553385 : f32
    %440 = vector.broadcast %cst_188 : f32 to vector<8x8xf32>
    %441 = arith.mulf %439, %440 : vector<8x8xf32>
    %442 = arith.addf %441, %394 : vector<8x8xf32>
    %cst_189 = arith.constant dense<0xFF800000> : vector<8xf32>
    %443 = vector.multi_reduction <maximumf>, %442, %cst_189 [1] : vector<8x8xf32> to vector<8xf32>
    %444 = vector.shape_cast %443 : vector<8xf32> to vector<8x1xf32>
    %445 = vector.broadcast %444 : vector<8x1xf32> to vector<8x8xf32>
    %446 = arith.subf %442, %445 : vector<8x8xf32>
    %447 = math.exp %446 : vector<8x8xf32>
    %cst_190 = arith.constant dense<0.000000e+00> : vector<8xf32>
    %448 = vector.multi_reduction <add>, %447, %cst_190 [1] : vector<8x8xf32> to vector<8xf32>
    %449 = vector.shape_cast %448 : vector<8xf32> to vector<8x1xf32>
    %450 = tpu.reciprocal %449 {approx = true} : vector<8x1xf32> -> vector<8x1xf32>
    %451 = vector.broadcast %450 : vector<8x1xf32> to vector<8x8xf32>
    %452 = arith.mulf %447, %451 : vector<8x8xf32>
    %453 = arith.truncf %452 : vector<8x8xf32> to vector<8x8xbf16>
    %cst_191 = arith.constant dense<0.000000e+00> : vector<8x8xf32>
    %454 = tpu.matmul %453, %438, %cst_191 {dimension_numbers = #tpu.dot_dimension_numbers<[1], [0], [0], [1], [0, 0, 1, 1], [], []>} : vector<8x8xbf16>, vector<8x8xbf16>, vector<8x8xf32> -> vector<8x8xf32>
    %455 = vector.extract_strided_slice %430 {offsets = [0, 8], sizes = [8, 8], strides = [1, 1]} : vector<8x32xf32> to vector<8x8xf32>
    %456 = arith.truncf %455 : vector<8x8xf32> to vector<8x8xbf16>
    %457 = vector.extract_strided_slice %431 {offsets = [0, 8], sizes = [8, 8], strides = [1, 1]} : vector<8x32xf32> to vector<8x8xf32>
    %458 = arith.truncf %457 : vector<8x8xf32> to vector<8x8xbf16>
    %459 = vector.extract_strided_slice %432 {offsets = [0, 8], sizes = [8, 8], strides = [1, 1]} : vector<8x32xf32> to vector<8x8xf32>
    %460 = arith.truncf %459 : vector<8x8xf32> to vector<8x8xbf16>
    %cst_192 = arith.constant dense<0.000000e+00> : vector<8x8xf32>
    %461 = tpu.matmul %456, %458, %cst_192 {dimension_numbers = #tpu.dot_dimension_numbers<[1], [1], [0], [0], [0, 0, 1, 0], [], []>} : vector<8x8xbf16>, vector<8x8xbf16>, vector<8x8xf32> -> vector<8x8xf32>
    %cst_193 = arith.constant 0.353553385 : f32
    %462 = vector.broadcast %cst_193 : f32 to vector<8x8xf32>
    %463 = arith.mulf %461, %462 : vector<8x8xf32>
    %464 = arith.addf %463, %394 : vector<8x8xf32>
    %cst_194 = arith.constant dense<0xFF800000> : vector<8xf32>
    %465 = vector.multi_reduction <maximumf>, %464, %cst_194 [1] : vector<8x8xf32> to vector<8xf32>
    %466 = vector.shape_cast %465 : vector<8xf32> to vector<8x1xf32>
    %467 = vector.broadcast %466 : vector<8x1xf32> to vector<8x8xf32>
    %468 = arith.subf %464, %467 : vector<8x8xf32>
    %469 = math.exp %468 : vector<8x8xf32>
    %cst_195 = arith.constant dense<0.000000e+00> : vector<8xf32>
    %470 = vector.multi_reduction <add>, %469, %cst_195 [1] : vector<8x8xf32> to vector<8xf32>
    %471 = vector.shape_cast %470 : vector<8xf32> to vector<8x1xf32>
    %472 = tpu.reciprocal %471 {approx = true} : vector<8x1xf32> -> vector<8x1xf32>
    %473 = vector.broadcast %472 : vector<8x1xf32> to vector<8x8xf32>
    %474 = arith.mulf %469, %473 : vector<8x8xf32>
    %475 = arith.truncf %474 : vector<8x8xf32> to vector<8x8xbf16>
    %cst_196 = arith.constant dense<0.000000e+00> : vector<8x8xf32>
    %476 = tpu.matmul %475, %460, %cst_196 {dimension_numbers = #tpu.dot_dimension_numbers<[1], [0], [0], [1], [0, 0, 1, 1], [], []>} : vector<8x8xbf16>, vector<8x8xbf16>, vector<8x8xf32> -> vector<8x8xf32>
    %477 = vector.extract_strided_slice %430 {offsets = [0, 16], sizes = [8, 8], strides = [1, 1]} : vector<8x32xf32> to vector<8x8xf32>
    %478 = arith.truncf %477 : vector<8x8xf32> to vector<8x8xbf16>
    %479 = vector.extract_strided_slice %431 {offsets = [0, 16], sizes = [8, 8], strides = [1, 1]} : vector<8x32xf32> to vector<8x8xf32>
    %480 = arith.truncf %479 : vector<8x8xf32> to vector<8x8xbf16>
    %481 = vector.extract_strided_slice %432 {offsets = [0, 16], sizes = [8, 8], strides = [1, 1]} : vector<8x32xf32> to vector<8x8xf32>
    %482 = arith.truncf %481 : vector<8x8xf32> to vector<8x8xbf16>
    %cst_197 = arith.constant dense<0.000000e+00> : vector<8x8xf32>
    %483 = tpu.matmul %478, %480, %cst_197 {dimension_numbers = #tpu.dot_dimension_numbers<[1], [1], [0], [0], [0, 0, 1, 0], [], []>} : vector<8x8xbf16>, vector<8x8xbf16>, vector<8x8xf32> -> vector<8x8xf32>
    %cst_198 = arith.constant 0.353553385 : f32
    %484 = vector.broadcast %cst_198 : f32 to vector<8x8xf32>
    %485 = arith.mulf %483, %484 : vector<8x8xf32>
    %486 = arith.addf %485, %394 : vector<8x8xf32>
    %cst_199 = arith.constant dense<0xFF800000> : vector<8xf32>
    %487 = vector.multi_reduction <maximumf>, %486, %cst_199 [1] : vector<8x8xf32> to vector<8xf32>
    %488 = vector.shape_cast %487 : vector<8xf32> to vector<8x1xf32>
    %489 = vector.broadcast %488 : vector<8x1xf32> to vector<8x8xf32>
    %490 = arith.subf %486, %489 : vector<8x8xf32>
    %491 = math.exp %490 : vector<8x8xf32>
    %cst_200 = arith.constant dense<0.000000e+00> : vector<8xf32>
    %492 = vector.multi_reduction <add>, %491, %cst_200 [1] : vector<8x8xf32> to vector<8xf32>
    %493 = vector.shape_cast %492 : vector<8xf32> to vector<8x1xf32>
    %494 = tpu.reciprocal %493 {approx = true} : vector<8x1xf32> -> vector<8x1xf32>
    %495 = vector.broadcast %494 : vector<8x1xf32> to vector<8x8xf32>
    %496 = arith.mulf %491, %495 : vector<8x8xf32>
    %497 = arith.truncf %496 : vector<8x8xf32> to vector<8x8xbf16>
    %cst_201 = arith.constant dense<0.000000e+00> : vector<8x8xf32>
    %498 = tpu.matmul %497, %482, %cst_201 {dimension_numbers = #tpu.dot_dimension_numbers<[1], [0], [0], [1], [0, 0, 1, 1], [], []>} : vector<8x8xbf16>, vector<8x8xbf16>, vector<8x8xf32> -> vector<8x8xf32>
    %499 = vector.extract_strided_slice %430 {offsets = [0, 24], sizes = [8, 8], strides = [1, 1]} : vector<8x32xf32> to vector<8x8xf32>
    %500 = arith.truncf %499 : vector<8x8xf32> to vector<8x8xbf16>
    %501 = vector.extract_strided_slice %431 {offsets = [0, 24], sizes = [8, 8], strides = [1, 1]} : vector<8x32xf32> to vector<8x8xf32>
    %502 = arith.truncf %501 : vector<8x8xf32> to vector<8x8xbf16>
    %503 = vector.extract_strided_slice %432 {offsets = [0, 24], sizes = [8, 8], strides = [1, 1]} : vector<8x32xf32> to vector<8x8xf32>
    %504 = arith.truncf %503 : vector<8x8xf32> to vector<8x8xbf16>
    %cst_202 = arith.constant dense<0.000000e+00> : vector<8x8xf32>
    %505 = tpu.matmul %500, %502, %cst_202 {dimension_numbers = #tpu.dot_dimension_numbers<[1], [1], [0], [0], [0, 0, 1, 0], [], []>} : vector<8x8xbf16>, vector<8x8xbf16>, vector<8x8xf32> -> vector<8x8xf32>
    %cst_203 = arith.constant 0.353553385 : f32
    %506 = vector.broadcast %cst_203 : f32 to vector<8x8xf32>
    %507 = arith.mulf %505, %506 : vector<8x8xf32>
    %508 = arith.addf %507, %394 : vector<8x8xf32>
    %cst_204 = arith.constant dense<0xFF800000> : vector<8xf32>
    %509 = vector.multi_reduction <maximumf>, %508, %cst_204 [1] : vector<8x8xf32> to vector<8xf32>
    %510 = vector.shape_cast %509 : vector<8xf32> to vector<8x1xf32>
    %511 = vector.broadcast %510 : vector<8x1xf32> to vector<8x8xf32>
    %512 = arith.subf %508, %511 : vector<8x8xf32>
    %513 = math.exp %512 : vector<8x8xf32>
    %cst_205 = arith.constant dense<0.000000e+00> : vector<8xf32>
    %514 = vector.multi_reduction <add>, %513, %cst_205 [1] : vector<8x8xf32> to vector<8xf32>
    %515 = vector.shape_cast %514 : vector<8xf32> to vector<8x1xf32>
    %516 = tpu.reciprocal %515 {approx = true} : vector<8x1xf32> -> vector<8x1xf32>
    %517 = vector.broadcast %516 : vector<8x1xf32> to vector<8x8xf32>
    %518 = arith.mulf %513, %517 : vector<8x8xf32>
    %519 = arith.truncf %518 : vector<8x8xf32> to vector<8x8xbf16>
    %cst_206 = arith.constant dense<0.000000e+00> : vector<8x8xf32>
    %520 = tpu.matmul %519, %504, %cst_206 {dimension_numbers = #tpu.dot_dimension_numbers<[1], [0], [0], [1], [0, 0, 1, 1], [], []>} : vector<8x8xbf16>, vector<8x8xbf16>, vector<8x8xf32> -> vector<8x8xf32>
    %521 = tpu.concatenate %454, %476, %498, %520 in 1 : vector<8x8xf32>, vector<8x8xf32>, vector<8x8xf32>, vector<8x8xf32> -> vector<8x32xf32>
    %c0_207 = arith.constant 0 : index
    %c0_208 = arith.constant 0 : index
    %c0_209 = arith.constant 0 : index
    %522 = vector.load %arg24[%c0_207, %c0_208, %c0_209] : memref<2x32x32xbf16, #tpu.memory_space<vmem>>, vector<1x32x32xbf16>
    %523 = vector.shape_cast %522 : vector<1x32x32xbf16> to vector<32x32xbf16>
    %c0_210 = arith.constant 0 : index
    %c0_211 = arith.constant 0 : index
    %c0_212 = arith.constant 0 : index
    %524 = vector.load %arg25[%c0_210, %c0_211, %c0_212] : memref<2x1x32xf32, #tpu.memory_space<vmem>>, vector<1x1x32xf32>
    %525 = vector.shape_cast %524 : vector<1x1x32xf32> to vector<1x32xf32>
    %526 = arith.truncf %521 : vector<8x32xf32> to vector<8x32xbf16>
    %cst_213 = arith.constant dense<0.000000e+00> : vector<8x32xf32>
    %527 = tpu.matmul %526, %523, %cst_213 {dimension_numbers = #tpu.dot_dimension_numbers<[1], [0], [0], [1], [0, 0, 1, 1], [], []>} : vector<8x32xbf16>, vector<32x32xbf16>, vector<8x32xf32> -> vector<8x32xf32>
    %528 = vector.broadcast %525 : vector<1x32xf32> to vector<8x32xf32>
    %529 = arith.addf %527, %528 : vector<8x32xf32>
    %530 = arith.addf %392, %529 : vector<8x32xf32>
    %c0_214 = arith.constant 0 : index
    %c0_215 = arith.constant 0 : index
    %c0_216 = arith.constant 0 : index
    %531 = vector.load %arg36[%c0_214, %c0_215, %c0_216] : memref<2x1x32xf32, #tpu.memory_space<vmem>>, vector<1x1x32xf32>
    %532 = vector.shape_cast %531 : vector<1x1x32xf32> to vector<1x32xf32>
    %c0_217 = arith.constant 0 : index
    %c0_218 = arith.constant 0 : index
    %c0_219 = arith.constant 0 : index
    %533 = vector.load %arg37[%c0_217, %c0_218, %c0_219] : memref<2x1x32xf32, #tpu.memory_space<vmem>>, vector<1x1x32xf32>
    %534 = vector.shape_cast %533 : vector<1x1x32xf32> to vector<1x32xf32>
    %cst_220 = arith.constant dense<0.000000e+00> : vector<8xf32>
    %535 = vector.multi_reduction <add>, %530, %cst_220 [1] : vector<8x32xf32> to vector<8xf32>
    %536 = vector.shape_cast %535 : vector<8xf32> to vector<8x1xf32>
    %cst_221 = arith.constant 3.200000e+01 : f32
    %537 = vector.broadcast %cst_221 : f32 to vector<8x1xf32>
    %538 = arith.divf %536, %537 : vector<8x1xf32>
    %539 = vector.broadcast %538 : vector<8x1xf32> to vector<8x32xf32>
    %540 = arith.subf %530, %539 : vector<8x32xf32>
    %541 = arith.mulf %540, %540 : vector<8x32xf32>
    %cst_222 = arith.constant dense<0.000000e+00> : vector<8xf32>
    %542 = vector.multi_reduction <add>, %541, %cst_222 [1] : vector<8x32xf32> to vector<8xf32>
    %543 = vector.shape_cast %542 : vector<8xf32> to vector<8x1xf32>
    %cst_223 = arith.constant 3.100000e+01 : f32
    %544 = vector.broadcast %cst_223 : f32 to vector<8x1xf32>
    %545 = arith.divf %543, %544 : vector<8x1xf32>
    %546 = math.sqrt %545 : vector<8x1xf32>
    %cst_224 = arith.constant 9.99999997E-7 : f32
    %547 = vector.broadcast %cst_224 : f32 to vector<8x1xf32>
    %548 = arith.addf %546, %547 : vector<8x1xf32>
    %549 = tpu.reciprocal %548 {approx = true} : vector<8x1xf32> -> vector<8x1xf32>
    %550 = vector.broadcast %532 : vector<1x32xf32> to vector<8x32xf32>
    %551 = arith.mulf %550, %540 : vector<8x32xf32>
    %552 = vector.broadcast %549 : vector<8x1xf32> to vector<8x32xf32>
    %553 = arith.mulf %551, %552 : vector<8x32xf32>
    %554 = vector.broadcast %534 : vector<1x32xf32> to vector<8x32xf32>
    %555 = arith.addf %553, %554 : vector<8x32xf32>
    %c0_225 = arith.constant 0 : index
    %c0_226 = arith.constant 0 : index
    %c0_227 = arith.constant 0 : index
    %556 = vector.load %arg26[%c0_225, %c0_226, %c0_227] : memref<2x32x96xbf16, #tpu.memory_space<vmem>>, vector<1x32x96xbf16>
    %557 = vector.shape_cast %556 : vector<1x32x96xbf16> to vector<32x96xbf16>
    %558 = vector.extract_strided_slice %557 {offsets = [0, 0], sizes = [32, 32], strides = [1, 1]} : vector<32x96xbf16> to vector<32x32xbf16>
    %c0_228 = arith.constant 0 : index
    %c0_229 = arith.constant 0 : index
    %c0_230 = arith.constant 0 : index
    %559 = vector.load %arg27[%c0_228, %c0_229, %c0_230] : memref<2x1x96xf32, #tpu.memory_space<vmem>>, vector<1x1x96xf32>
    %560 = vector.shape_cast %559 : vector<1x1x96xf32> to vector<1x96xf32>
    %561 = vector.extract_strided_slice %560 {offsets = [0, 0], sizes = [1, 32], strides = [1, 1]} : vector<1x96xf32> to vector<1x32xf32>
    %562 = arith.truncf %555 : vector<8x32xf32> to vector<8x32xbf16>
    %cst_231 = arith.constant dense<0.000000e+00> : vector<8x32xf32>
    %563 = tpu.matmul %562, %558, %cst_231 {dimension_numbers = #tpu.dot_dimension_numbers<[1], [0], [0], [1], [0, 0, 1, 1], [], []>} : vector<8x32xbf16>, vector<32x32xbf16>, vector<8x32xf32> -> vector<8x32xf32>
    %564 = vector.broadcast %561 : vector<1x32xf32> to vector<8x32xf32>
    %565 = arith.addf %563, %564 : vector<8x32xf32>
    %c0_232 = arith.constant 0 : index
    %c0_233 = arith.constant 0 : index
    %c0_234 = arith.constant 0 : index
    %566 = vector.load %arg26[%c0_232, %c0_233, %c0_234] : memref<2x32x96xbf16, #tpu.memory_space<vmem>>, vector<1x32x96xbf16>
    %567 = vector.shape_cast %566 : vector<1x32x96xbf16> to vector<32x96xbf16>
    %568 = vector.extract_strided_slice %567 {offsets = [0, 32], sizes = [32, 64], strides = [1, 1]} : vector<32x96xbf16> to vector<32x64xbf16>
    %c0_235 = arith.constant 0 : index
    %c0_236 = arith.constant 0 : index
    %c0_237 = arith.constant 0 : index
    %569 = vector.load %arg27[%c0_235, %c0_236, %c0_237] : memref<2x1x96xf32, #tpu.memory_space<vmem>>, vector<1x1x96xf32>
    %570 = vector.shape_cast %569 : vector<1x1x96xf32> to vector<1x96xf32>
    %571 = vector.extract_strided_slice %570 {offsets = [0, 32], sizes = [1, 64], strides = [1, 1]} : vector<1x96xf32> to vector<1x64xf32>
    %572 = arith.truncf %386 : vector<8x32xf32> to vector<8x32xbf16>
    %cst_238 = arith.constant dense<0.000000e+00> : vector<8x64xf32>
    %573 = tpu.matmul %572, %568, %cst_238 {dimension_numbers = #tpu.dot_dimension_numbers<[1], [0], [0], [1], [0, 0, 1, 1], [], []>} : vector<8x32xbf16>, vector<32x64xbf16>, vector<8x64xf32> -> vector<8x64xf32>
    %574 = vector.broadcast %571 : vector<1x64xf32> to vector<8x64xf32>
    %575 = arith.addf %573, %574 : vector<8x64xf32>
    %576 = vector.extract_strided_slice %575 {offsets = [0, 0], sizes = [8, 32], strides = [1, 1]} : vector<8x64xf32> to vector<8x32xf32>
    %577 = vector.extract_strided_slice %575 {offsets = [0, 32], sizes = [8, 32], strides = [1, 1]} : vector<8x64xf32> to vector<8x32xf32>
    %578 = vector.extract_strided_slice %565 {offsets = [0, 0], sizes = [8, 8], strides = [1, 1]} : vector<8x32xf32> to vector<8x8xf32>
    %579 = arith.truncf %578 : vector<8x8xf32> to vector<8x8xbf16>
    %580 = vector.extract_strided_slice %576 {offsets = [0, 0], sizes = [8, 8], strides = [1, 1]} : vector<8x32xf32> to vector<8x8xf32>
    %581 = arith.truncf %580 : vector<8x8xf32> to vector<8x8xbf16>
    %582 = vector.extract_strided_slice %577 {offsets = [0, 0], sizes = [8, 8], strides = [1, 1]} : vector<8x32xf32> to vector<8x8xf32>
    %583 = arith.truncf %582 : vector<8x8xf32> to vector<8x8xbf16>
    %cst_239 = arith.constant dense<0.000000e+00> : vector<8x8xf32>
    %584 = tpu.matmul %579, %581, %cst_239 {dimension_numbers = #tpu.dot_dimension_numbers<[1], [1], [0], [0], [0, 0, 1, 0], [], []>} : vector<8x8xbf16>, vector<8x8xbf16>, vector<8x8xf32> -> vector<8x8xf32>
    %cst_240 = arith.constant 0.353553385 : f32
    %585 = vector.broadcast %cst_240 : f32 to vector<8x8xf32>
    %586 = arith.mulf %584, %585 : vector<8x8xf32>
    %587 = arith.addf %586, %396 : vector<8x8xf32>
    %cst_241 = arith.constant dense<0xFF800000> : vector<8xf32>
    %588 = vector.multi_reduction <maximumf>, %587, %cst_241 [1] : vector<8x8xf32> to vector<8xf32>
    %589 = vector.shape_cast %588 : vector<8xf32> to vector<8x1xf32>
    %590 = vector.broadcast %589 : vector<8x1xf32> to vector<8x8xf32>
    %591 = arith.subf %587, %590 : vector<8x8xf32>
    %592 = math.exp %591 : vector<8x8xf32>
    %cst_242 = arith.constant dense<0.000000e+00> : vector<8xf32>
    %593 = vector.multi_reduction <add>, %592, %cst_242 [1] : vector<8x8xf32> to vector<8xf32>
    %594 = vector.shape_cast %593 : vector<8xf32> to vector<8x1xf32>
    %595 = tpu.reciprocal %594 {approx = true} : vector<8x1xf32> -> vector<8x1xf32>
    %596 = vector.broadcast %595 : vector<8x1xf32> to vector<8x8xf32>
    %597 = arith.mulf %592, %596 : vector<8x8xf32>
    %598 = arith.truncf %597 : vector<8x8xf32> to vector<8x8xbf16>
    %cst_243 = arith.constant dense<0.000000e+00> : vector<8x8xf32>
    %599 = tpu.matmul %598, %583, %cst_243 {dimension_numbers = #tpu.dot_dimension_numbers<[1], [0], [0], [1], [0, 0, 1, 1], [], []>} : vector<8x8xbf16>, vector<8x8xbf16>, vector<8x8xf32> -> vector<8x8xf32>
    %600 = vector.extract_strided_slice %565 {offsets = [0, 8], sizes = [8, 8], strides = [1, 1]} : vector<8x32xf32> to vector<8x8xf32>
    %601 = arith.truncf %600 : vector<8x8xf32> to vector<8x8xbf16>
    %602 = vector.extract_strided_slice %576 {offsets = [0, 8], sizes = [8, 8], strides = [1, 1]} : vector<8x32xf32> to vector<8x8xf32>
    %603 = arith.truncf %602 : vector<8x8xf32> to vector<8x8xbf16>
    %604 = vector.extract_strided_slice %577 {offsets = [0, 8], sizes = [8, 8], strides = [1, 1]} : vector<8x32xf32> to vector<8x8xf32>
    %605 = arith.truncf %604 : vector<8x8xf32> to vector<8x8xbf16>
    %cst_244 = arith.constant dense<0.000000e+00> : vector<8x8xf32>
    %606 = tpu.matmul %601, %603, %cst_244 {dimension_numbers = #tpu.dot_dimension_numbers<[1], [1], [0], [0], [0, 0, 1, 0], [], []>} : vector<8x8xbf16>, vector<8x8xbf16>, vector<8x8xf32> -> vector<8x8xf32>
    %cst_245 = arith.constant 0.353553385 : f32
    %607 = vector.broadcast %cst_245 : f32 to vector<8x8xf32>
    %608 = arith.mulf %606, %607 : vector<8x8xf32>
    %609 = arith.addf %608, %396 : vector<8x8xf32>
    %cst_246 = arith.constant dense<0xFF800000> : vector<8xf32>
    %610 = vector.multi_reduction <maximumf>, %609, %cst_246 [1] : vector<8x8xf32> to vector<8xf32>
    %611 = vector.shape_cast %610 : vector<8xf32> to vector<8x1xf32>
    %612 = vector.broadcast %611 : vector<8x1xf32> to vector<8x8xf32>
    %613 = arith.subf %609, %612 : vector<8x8xf32>
    %614 = math.exp %613 : vector<8x8xf32>
    %cst_247 = arith.constant dense<0.000000e+00> : vector<8xf32>
    %615 = vector.multi_reduction <add>, %614, %cst_247 [1] : vector<8x8xf32> to vector<8xf32>
    %616 = vector.shape_cast %615 : vector<8xf32> to vector<8x1xf32>
    %617 = tpu.reciprocal %616 {approx = true} : vector<8x1xf32> -> vector<8x1xf32>
    %618 = vector.broadcast %617 : vector<8x1xf32> to vector<8x8xf32>
    %619 = arith.mulf %614, %618 : vector<8x8xf32>
    %620 = arith.truncf %619 : vector<8x8xf32> to vector<8x8xbf16>
    %cst_248 = arith.constant dense<0.000000e+00> : vector<8x8xf32>
    %621 = tpu.matmul %620, %605, %cst_248 {dimension_numbers = #tpu.dot_dimension_numbers<[1], [0], [0], [1], [0, 0, 1, 1], [], []>} : vector<8x8xbf16>, vector<8x8xbf16>, vector<8x8xf32> -> vector<8x8xf32>
    %622 = vector.extract_strided_slice %565 {offsets = [0, 16], sizes = [8, 8], strides = [1, 1]} : vector<8x32xf32> to vector<8x8xf32>
    %623 = arith.truncf %622 : vector<8x8xf32> to vector<8x8xbf16>
    %624 = vector.extract_strided_slice %576 {offsets = [0, 16], sizes = [8, 8], strides = [1, 1]} : vector<8x32xf32> to vector<8x8xf32>
    %625 = arith.truncf %624 : vector<8x8xf32> to vector<8x8xbf16>
    %626 = vector.extract_strided_slice %577 {offsets = [0, 16], sizes = [8, 8], strides = [1, 1]} : vector<8x32xf32> to vector<8x8xf32>
    %627 = arith.truncf %626 : vector<8x8xf32> to vector<8x8xbf16>
    %cst_249 = arith.constant dense<0.000000e+00> : vector<8x8xf32>
    %628 = tpu.matmul %623, %625, %cst_249 {dimension_numbers = #tpu.dot_dimension_numbers<[1], [1], [0], [0], [0, 0, 1, 0], [], []>} : vector<8x8xbf16>, vector<8x8xbf16>, vector<8x8xf32> -> vector<8x8xf32>
    %cst_250 = arith.constant 0.353553385 : f32
    %629 = vector.broadcast %cst_250 : f32 to vector<8x8xf32>
    %630 = arith.mulf %628, %629 : vector<8x8xf32>
    %631 = arith.addf %630, %396 : vector<8x8xf32>
    %cst_251 = arith.constant dense<0xFF800000> : vector<8xf32>
    %632 = vector.multi_reduction <maximumf>, %631, %cst_251 [1] : vector<8x8xf32> to vector<8xf32>
    %633 = vector.shape_cast %632 : vector<8xf32> to vector<8x1xf32>
    %634 = vector.broadcast %633 : vector<8x1xf32> to vector<8x8xf32>
    %635 = arith.subf %631, %634 : vector<8x8xf32>
    %636 = math.exp %635 : vector<8x8xf32>
    %cst_252 = arith.constant dense<0.000000e+00> : vector<8xf32>
    %637 = vector.multi_reduction <add>, %636, %cst_252 [1] : vector<8x8xf32> to vector<8xf32>
    %638 = vector.shape_cast %637 : vector<8xf32> to vector<8x1xf32>
    %639 = tpu.reciprocal %638 {approx = true} : vector<8x1xf32> -> vector<8x1xf32>
    %640 = vector.broadcast %639 : vector<8x1xf32> to vector<8x8xf32>
    %641 = arith.mulf %636, %640 : vector<8x8xf32>
    %642 = arith.truncf %641 : vector<8x8xf32> to vector<8x8xbf16>
    %cst_253 = arith.constant dense<0.000000e+00> : vector<8x8xf32>
    %643 = tpu.matmul %642, %627, %cst_253 {dimension_numbers = #tpu.dot_dimension_numbers<[1], [0], [0], [1], [0, 0, 1, 1], [], []>} : vector<8x8xbf16>, vector<8x8xbf16>, vector<8x8xf32> -> vector<8x8xf32>
    %644 = vector.extract_strided_slice %565 {offsets = [0, 24], sizes = [8, 8], strides = [1, 1]} : vector<8x32xf32> to vector<8x8xf32>
    %645 = arith.truncf %644 : vector<8x8xf32> to vector<8x8xbf16>
    %646 = vector.extract_strided_slice %576 {offsets = [0, 24], sizes = [8, 8], strides = [1, 1]} : vector<8x32xf32> to vector<8x8xf32>
    %647 = arith.truncf %646 : vector<8x8xf32> to vector<8x8xbf16>
    %648 = vector.extract_strided_slice %577 {offsets = [0, 24], sizes = [8, 8], strides = [1, 1]} : vector<8x32xf32> to vector<8x8xf32>
    %649 = arith.truncf %648 : vector<8x8xf32> to vector<8x8xbf16>
    %cst_254 = arith.constant dense<0.000000e+00> : vector<8x8xf32>
    %650 = tpu.matmul %645, %647, %cst_254 {dimension_numbers = #tpu.dot_dimension_numbers<[1], [1], [0], [0], [0, 0, 1, 0], [], []>} : vector<8x8xbf16>, vector<8x8xbf16>, vector<8x8xf32> -> vector<8x8xf32>
    %cst_255 = arith.constant 0.353553385 : f32
    %651 = vector.broadcast %cst_255 : f32 to vector<8x8xf32>
    %652 = arith.mulf %650, %651 : vector<8x8xf32>
    %653 = arith.addf %652, %396 : vector<8x8xf32>
    %cst_256 = arith.constant dense<0xFF800000> : vector<8xf32>
    %654 = vector.multi_reduction <maximumf>, %653, %cst_256 [1] : vector<8x8xf32> to vector<8xf32>
    %655 = vector.shape_cast %654 : vector<8xf32> to vector<8x1xf32>
    %656 = vector.broadcast %655 : vector<8x1xf32> to vector<8x8xf32>
    %657 = arith.subf %653, %656 : vector<8x8xf32>
    %658 = math.exp %657 : vector<8x8xf32>
    %cst_257 = arith.constant dense<0.000000e+00> : vector<8xf32>
    %659 = vector.multi_reduction <add>, %658, %cst_257 [1] : vector<8x8xf32> to vector<8xf32>
    %660 = vector.shape_cast %659 : vector<8xf32> to vector<8x1xf32>
    %661 = tpu.reciprocal %660 {approx = true} : vector<8x1xf32> -> vector<8x1xf32>
    %662 = vector.broadcast %661 : vector<8x1xf32> to vector<8x8xf32>
    %663 = arith.mulf %658, %662 : vector<8x8xf32>
    %664 = arith.truncf %663 : vector<8x8xf32> to vector<8x8xbf16>
    %cst_258 = arith.constant dense<0.000000e+00> : vector<8x8xf32>
    %665 = tpu.matmul %664, %649, %cst_258 {dimension_numbers = #tpu.dot_dimension_numbers<[1], [0], [0], [1], [0, 0, 1, 1], [], []>} : vector<8x8xbf16>, vector<8x8xbf16>, vector<8x8xf32> -> vector<8x8xf32>
    %666 = tpu.concatenate %599, %621, %643, %665 in 1 : vector<8x8xf32>, vector<8x8xf32>, vector<8x8xf32>, vector<8x8xf32> -> vector<8x32xf32>
    %c0_259 = arith.constant 0 : index
    %c0_260 = arith.constant 0 : index
    %c0_261 = arith.constant 0 : index
    %667 = vector.load %arg28[%c0_259, %c0_260, %c0_261] : memref<2x32x32xbf16, #tpu.memory_space<vmem>>, vector<1x32x32xbf16>
    %668 = vector.shape_cast %667 : vector<1x32x32xbf16> to vector<32x32xbf16>
    %c0_262 = arith.constant 0 : index
    %c0_263 = arith.constant 0 : index
    %c0_264 = arith.constant 0 : index
    %669 = vector.load %arg29[%c0_262, %c0_263, %c0_264] : memref<2x1x32xf32, #tpu.memory_space<vmem>>, vector<1x1x32xf32>
    %670 = vector.shape_cast %669 : vector<1x1x32xf32> to vector<1x32xf32>
    %671 = arith.truncf %666 : vector<8x32xf32> to vector<8x32xbf16>
    %cst_265 = arith.constant dense<0.000000e+00> : vector<8x32xf32>
    %672 = tpu.matmul %671, %668, %cst_265 {dimension_numbers = #tpu.dot_dimension_numbers<[1], [0], [0], [1], [0, 0, 1, 1], [], []>} : vector<8x32xbf16>, vector<32x32xbf16>, vector<8x32xf32> -> vector<8x32xf32>
    %673 = vector.broadcast %670 : vector<1x32xf32> to vector<8x32xf32>
    %674 = arith.addf %672, %673 : vector<8x32xf32>
    %675 = arith.addf %530, %674 : vector<8x32xf32>
    %c0_266 = arith.constant 0 : index
    %c0_267 = arith.constant 0 : index
    %c0_268 = arith.constant 0 : index
    %676 = vector.load %arg38[%c0_266, %c0_267, %c0_268] : memref<2x1x32xf32, #tpu.memory_space<vmem>>, vector<1x1x32xf32>
    %677 = vector.shape_cast %676 : vector<1x1x32xf32> to vector<1x32xf32>
    %c0_269 = arith.constant 0 : index
    %c0_270 = arith.constant 0 : index
    %c0_271 = arith.constant 0 : index
    %678 = vector.load %arg39[%c0_269, %c0_270, %c0_271] : memref<2x1x32xf32, #tpu.memory_space<vmem>>, vector<1x1x32xf32>
    %679 = vector.shape_cast %678 : vector<1x1x32xf32> to vector<1x32xf32>
    %cst_272 = arith.constant dense<0.000000e+00> : vector<8xf32>
    %680 = vector.multi_reduction <add>, %675, %cst_272 [1] : vector<8x32xf32> to vector<8xf32>
    %681 = vector.shape_cast %680 : vector<8xf32> to vector<8x1xf32>
    %cst_273 = arith.constant 3.200000e+01 : f32
    %682 = vector.broadcast %cst_273 : f32 to vector<8x1xf32>
    %683 = arith.divf %681, %682 : vector<8x1xf32>
    %684 = vector.broadcast %683 : vector<8x1xf32> to vector<8x32xf32>
    %685 = arith.subf %675, %684 : vector<8x32xf32>
    %686 = arith.mulf %685, %685 : vector<8x32xf32>
    %cst_274 = arith.constant dense<0.000000e+00> : vector<8xf32>
    %687 = vector.multi_reduction <add>, %686, %cst_274 [1] : vector<8x32xf32> to vector<8xf32>
    %688 = vector.shape_cast %687 : vector<8xf32> to vector<8x1xf32>
    %cst_275 = arith.constant 3.100000e+01 : f32
    %689 = vector.broadcast %cst_275 : f32 to vector<8x1xf32>
    %690 = arith.divf %688, %689 : vector<8x1xf32>
    %691 = math.sqrt %690 : vector<8x1xf32>
    %cst_276 = arith.constant 9.99999997E-7 : f32
    %692 = vector.broadcast %cst_276 : f32 to vector<8x1xf32>
    %693 = arith.addf %691, %692 : vector<8x1xf32>
    %694 = tpu.reciprocal %693 {approx = true} : vector<8x1xf32> -> vector<8x1xf32>
    %695 = vector.broadcast %677 : vector<1x32xf32> to vector<8x32xf32>
    %696 = arith.mulf %695, %685 : vector<8x32xf32>
    %697 = vector.broadcast %694 : vector<8x1xf32> to vector<8x32xf32>
    %698 = arith.mulf %696, %697 : vector<8x32xf32>
    %699 = vector.broadcast %679 : vector<1x32xf32> to vector<8x32xf32>
    %700 = arith.addf %698, %699 : vector<8x32xf32>
    %c0_277 = arith.constant 0 : index
    %c0_278 = arith.constant 0 : index
    %c0_279 = arith.constant 0 : index
    %701 = vector.load %arg30[%c0_277, %c0_278, %c0_279] : memref<2x32x64xbf16, #tpu.memory_space<vmem>>, vector<1x32x64xbf16>
    %702 = vector.shape_cast %701 : vector<1x32x64xbf16> to vector<32x64xbf16>
    %c0_280 = arith.constant 0 : index
    %c0_281 = arith.constant 0 : index
    %c0_282 = arith.constant 0 : index
    %703 = vector.load %arg31[%c0_280, %c0_281, %c0_282] : memref<2x1x64xf32, #tpu.memory_space<vmem>>, vector<1x1x64xf32>
    %704 = vector.shape_cast %703 : vector<1x1x64xf32> to vector<1x64xf32>
    %705 = arith.truncf %700 : vector<8x32xf32> to vector<8x32xbf16>
    %cst_283 = arith.constant dense<0.000000e+00> : vector<8x64xf32>
    %706 = tpu.matmul %705, %702, %cst_283 {dimension_numbers = #tpu.dot_dimension_numbers<[1], [0], [0], [1], [0, 0, 1, 1], [], []>} : vector<8x32xbf16>, vector<32x64xbf16>, vector<8x64xf32> -> vector<8x64xf32>
    %707 = vector.broadcast %704 : vector<1x64xf32> to vector<8x64xf32>
    %708 = arith.addf %706, %707 : vector<8x64xf32>
    %cst_284 = arith.constant 0.000000e+00 : f32
    %709 = vector.broadcast %cst_284 : f32 to vector<8x64xf32>
    %710 = arith.maximumf %708, %709 : vector<8x64xf32>
    %c0_285 = arith.constant 0 : index
    %c0_286 = arith.constant 0 : index
    %c0_287 = arith.constant 0 : index
    %711 = vector.load %arg32[%c0_285, %c0_286, %c0_287] : memref<2x64x32xbf16, #tpu.memory_space<vmem>>, vector<1x64x32xbf16>
    %712 = vector.shape_cast %711 : vector<1x64x32xbf16> to vector<64x32xbf16>
    %c0_288 = arith.constant 0 : index
    %c0_289 = arith.constant 0 : index
    %c0_290 = arith.constant 0 : index
    %713 = vector.load %arg33[%c0_288, %c0_289, %c0_290] : memref<2x1x32xf32, #tpu.memory_space<vmem>>, vector<1x1x32xf32>
    %714 = vector.shape_cast %713 : vector<1x1x32xf32> to vector<1x32xf32>
    %715 = arith.truncf %710 : vector<8x64xf32> to vector<8x64xbf16>
    %cst_291 = arith.constant dense<0.000000e+00> : vector<8x32xf32>
    %716 = tpu.matmul %715, %712, %cst_291 {dimension_numbers = #tpu.dot_dimension_numbers<[1], [0], [0], [1], [0, 0, 1, 1], [], []>} : vector<8x64xbf16>, vector<64x32xbf16>, vector<8x32xf32> -> vector<8x32xf32>
    %717 = vector.broadcast %714 : vector<1x32xf32> to vector<8x32xf32>
    %718 = arith.addf %716, %717 : vector<8x32xf32>
    %719 = arith.addf %675, %718 : vector<8x32xf32>
    %c1_292 = arith.constant 1 : index
    %c0_293 = arith.constant 0 : index
    %c0_294 = arith.constant 0 : index
    %720 = vector.load %arg34[%c1_292, %c0_293, %c0_294] : memref<2x1x32xf32, #tpu.memory_space<vmem>>, vector<1x1x32xf32>
    %721 = vector.shape_cast %720 : vector<1x1x32xf32> to vector<1x32xf32>
    %c1_295 = arith.constant 1 : index
    %c0_296 = arith.constant 0 : index
    %c0_297 = arith.constant 0 : index
    %722 = vector.load %arg35[%c1_295, %c0_296, %c0_297] : memref<2x1x32xf32, #tpu.memory_space<vmem>>, vector<1x1x32xf32>
    %723 = vector.shape_cast %722 : vector<1x1x32xf32> to vector<1x32xf32>
    %cst_298 = arith.constant dense<0.000000e+00> : vector<8xf32>
    %724 = vector.multi_reduction <add>, %719, %cst_298 [1] : vector<8x32xf32> to vector<8xf32>
    %725 = vector.shape_cast %724 : vector<8xf32> to vector<8x1xf32>
    %cst_299 = arith.constant 3.200000e+01 : f32
    %726 = vector.broadcast %cst_299 : f32 to vector<8x1xf32>
    %727 = arith.divf %725, %726 : vector<8x1xf32>
    %728 = vector.broadcast %727 : vector<8x1xf32> to vector<8x32xf32>
    %729 = arith.subf %719, %728 : vector<8x32xf32>
    %730 = arith.mulf %729, %729 : vector<8x32xf32>
    %cst_300 = arith.constant dense<0.000000e+00> : vector<8xf32>
    %731 = vector.multi_reduction <add>, %730, %cst_300 [1] : vector<8x32xf32> to vector<8xf32>
    %732 = vector.shape_cast %731 : vector<8xf32> to vector<8x1xf32>
    %cst_301 = arith.constant 3.100000e+01 : f32
    %733 = vector.broadcast %cst_301 : f32 to vector<8x1xf32>
    %734 = arith.divf %732, %733 : vector<8x1xf32>
    %735 = math.sqrt %734 : vector<8x1xf32>
    %cst_302 = arith.constant 9.99999997E-7 : f32
    %736 = vector.broadcast %cst_302 : f32 to vector<8x1xf32>
    %737 = arith.addf %735, %736 : vector<8x1xf32>
    %738 = tpu.reciprocal %737 {approx = true} : vector<8x1xf32> -> vector<8x1xf32>
    %739 = vector.broadcast %721 : vector<1x32xf32> to vector<8x32xf32>
    %740 = arith.mulf %739, %729 : vector<8x32xf32>
    %741 = vector.broadcast %738 : vector<8x1xf32> to vector<8x32xf32>
    %742 = arith.mulf %740, %741 : vector<8x32xf32>
    %743 = vector.broadcast %723 : vector<1x32xf32> to vector<8x32xf32>
    %744 = arith.addf %742, %743 : vector<8x32xf32>
    %c1_303 = arith.constant 1 : index
    %c0_304 = arith.constant 0 : index
    %c0_305 = arith.constant 0 : index
    %745 = vector.load %arg22[%c1_303, %c0_304, %c0_305] : memref<2x32x96xbf16, #tpu.memory_space<vmem>>, vector<1x32x96xbf16>
    %746 = vector.shape_cast %745 : vector<1x32x96xbf16> to vector<32x96xbf16>
    %c1_306 = arith.constant 1 : index
    %c0_307 = arith.constant 0 : index
    %c0_308 = arith.constant 0 : index
    %747 = vector.load %arg23[%c1_306, %c0_307, %c0_308] : memref<2x1x96xf32, #tpu.memory_space<vmem>>, vector<1x1x96xf32>
    %748 = vector.shape_cast %747 : vector<1x1x96xf32> to vector<1x96xf32>
    %749 = arith.truncf %744 : vector<8x32xf32> to vector<8x32xbf16>
    %cst_309 = arith.constant dense<0.000000e+00> : vector<8x96xf32>
    %750 = tpu.matmul %749, %746, %cst_309 {dimension_numbers = #tpu.dot_dimension_numbers<[1], [0], [0], [1], [0, 0, 1, 1], [], []>} : vector<8x32xbf16>, vector<32x96xbf16>, vector<8x96xf32> -> vector<8x96xf32>
    %751 = vector.broadcast %748 : vector<1x96xf32> to vector<8x96xf32>
    %752 = arith.addf %750, %751 : vector<8x96xf32>
    %753 = vector.extract_strided_slice %752 {offsets = [0, 0], sizes = [8, 32], strides = [1, 1]} : vector<8x96xf32> to vector<8x32xf32>
    %754 = vector.extract_strided_slice %752 {offsets = [0, 32], sizes = [8, 32], strides = [1, 1]} : vector<8x96xf32> to vector<8x32xf32>
    %755 = vector.extract_strided_slice %752 {offsets = [0, 64], sizes = [8, 32], strides = [1, 1]} : vector<8x96xf32> to vector<8x32xf32>
    %756 = vector.extract_strided_slice %753 {offsets = [0, 0], sizes = [8, 8], strides = [1, 1]} : vector<8x32xf32> to vector<8x8xf32>
    %757 = arith.truncf %756 : vector<8x8xf32> to vector<8x8xbf16>
    %758 = vector.extract_strided_slice %754 {offsets = [0, 0], sizes = [8, 8], strides = [1, 1]} : vector<8x32xf32> to vector<8x8xf32>
    %759 = arith.truncf %758 : vector<8x8xf32> to vector<8x8xbf16>
    %760 = vector.extract_strided_slice %755 {offsets = [0, 0], sizes = [8, 8], strides = [1, 1]} : vector<8x32xf32> to vector<8x8xf32>
    %761 = arith.truncf %760 : vector<8x8xf32> to vector<8x8xbf16>
    %cst_310 = arith.constant dense<0.000000e+00> : vector<8x8xf32>
    %762 = tpu.matmul %757, %759, %cst_310 {dimension_numbers = #tpu.dot_dimension_numbers<[1], [1], [0], [0], [0, 0, 1, 0], [], []>} : vector<8x8xbf16>, vector<8x8xbf16>, vector<8x8xf32> -> vector<8x8xf32>
    %cst_311 = arith.constant 0.353553385 : f32
    %763 = vector.broadcast %cst_311 : f32 to vector<8x8xf32>
    %764 = arith.mulf %762, %763 : vector<8x8xf32>
    %765 = arith.addf %764, %394 : vector<8x8xf32>
    %cst_312 = arith.constant dense<0xFF800000> : vector<8xf32>
    %766 = vector.multi_reduction <maximumf>, %765, %cst_312 [1] : vector<8x8xf32> to vector<8xf32>
    %767 = vector.shape_cast %766 : vector<8xf32> to vector<8x1xf32>
    %768 = vector.broadcast %767 : vector<8x1xf32> to vector<8x8xf32>
    %769 = arith.subf %765, %768 : vector<8x8xf32>
    %770 = math.exp %769 : vector<8x8xf32>
    %cst_313 = arith.constant dense<0.000000e+00> : vector<8xf32>
    %771 = vector.multi_reduction <add>, %770, %cst_313 [1] : vector<8x8xf32> to vector<8xf32>
    %772 = vector.shape_cast %771 : vector<8xf32> to vector<8x1xf32>
    %773 = tpu.reciprocal %772 {approx = true} : vector<8x1xf32> -> vector<8x1xf32>
    %774 = vector.broadcast %773 : vector<8x1xf32> to vector<8x8xf32>
    %775 = arith.mulf %770, %774 : vector<8x8xf32>
    %776 = arith.truncf %775 : vector<8x8xf32> to vector<8x8xbf16>
    %cst_314 = arith.constant dense<0.000000e+00> : vector<8x8xf32>
    %777 = tpu.matmul %776, %761, %cst_314 {dimension_numbers = #tpu.dot_dimension_numbers<[1], [0], [0], [1], [0, 0, 1, 1], [], []>} : vector<8x8xbf16>, vector<8x8xbf16>, vector<8x8xf32> -> vector<8x8xf32>
    %778 = vector.extract_strided_slice %753 {offsets = [0, 8], sizes = [8, 8], strides = [1, 1]} : vector<8x32xf32> to vector<8x8xf32>
    %779 = arith.truncf %778 : vector<8x8xf32> to vector<8x8xbf16>
    %780 = vector.extract_strided_slice %754 {offsets = [0, 8], sizes = [8, 8], strides = [1, 1]} : vector<8x32xf32> to vector<8x8xf32>
    %781 = arith.truncf %780 : vector<8x8xf32> to vector<8x8xbf16>
    %782 = vector.extract_strided_slice %755 {offsets = [0, 8], sizes = [8, 8], strides = [1, 1]} : vector<8x32xf32> to vector<8x8xf32>
    %783 = arith.truncf %782 : vector<8x8xf32> to vector<8x8xbf16>
    %cst_315 = arith.constant dense<0.000000e+00> : vector<8x8xf32>
    %784 = tpu.matmul %779, %781, %cst_315 {dimension_numbers = #tpu.dot_dimension_numbers<[1], [1], [0], [0], [0, 0, 1, 0], [], []>} : vector<8x8xbf16>, vector<8x8xbf16>, vector<8x8xf32> -> vector<8x8xf32>
    %cst_316 = arith.constant 0.353553385 : f32
    %785 = vector.broadcast %cst_316 : f32 to vector<8x8xf32>
    %786 = arith.mulf %784, %785 : vector<8x8xf32>
    %787 = arith.addf %786, %394 : vector<8x8xf32>
    %cst_317 = arith.constant dense<0xFF800000> : vector<8xf32>
    %788 = vector.multi_reduction <maximumf>, %787, %cst_317 [1] : vector<8x8xf32> to vector<8xf32>
    %789 = vector.shape_cast %788 : vector<8xf32> to vector<8x1xf32>
    %790 = vector.broadcast %789 : vector<8x1xf32> to vector<8x8xf32>
    %791 = arith.subf %787, %790 : vector<8x8xf32>
    %792 = math.exp %791 : vector<8x8xf32>
    %cst_318 = arith.constant dense<0.000000e+00> : vector<8xf32>
    %793 = vector.multi_reduction <add>, %792, %cst_318 [1] : vector<8x8xf32> to vector<8xf32>
    %794 = vector.shape_cast %793 : vector<8xf32> to vector<8x1xf32>
    %795 = tpu.reciprocal %794 {approx = true} : vector<8x1xf32> -> vector<8x1xf32>
    %796 = vector.broadcast %795 : vector<8x1xf32> to vector<8x8xf32>
    %797 = arith.mulf %792, %796 : vector<8x8xf32>
    %798 = arith.truncf %797 : vector<8x8xf32> to vector<8x8xbf16>
    %cst_319 = arith.constant dense<0.000000e+00> : vector<8x8xf32>
    %799 = tpu.matmul %798, %783, %cst_319 {dimension_numbers = #tpu.dot_dimension_numbers<[1], [0], [0], [1], [0, 0, 1, 1], [], []>} : vector<8x8xbf16>, vector<8x8xbf16>, vector<8x8xf32> -> vector<8x8xf32>
    %800 = vector.extract_strided_slice %753 {offsets = [0, 16], sizes = [8, 8], strides = [1, 1]} : vector<8x32xf32> to vector<8x8xf32>
    %801 = arith.truncf %800 : vector<8x8xf32> to vector<8x8xbf16>
    %802 = vector.extract_strided_slice %754 {offsets = [0, 16], sizes = [8, 8], strides = [1, 1]} : vector<8x32xf32> to vector<8x8xf32>
    %803 = arith.truncf %802 : vector<8x8xf32> to vector<8x8xbf16>
    %804 = vector.extract_strided_slice %755 {offsets = [0, 16], sizes = [8, 8], strides = [1, 1]} : vector<8x32xf32> to vector<8x8xf32>
    %805 = arith.truncf %804 : vector<8x8xf32> to vector<8x8xbf16>
    %cst_320 = arith.constant dense<0.000000e+00> : vector<8x8xf32>
    %806 = tpu.matmul %801, %803, %cst_320 {dimension_numbers = #tpu.dot_dimension_numbers<[1], [1], [0], [0], [0, 0, 1, 0], [], []>} : vector<8x8xbf16>, vector<8x8xbf16>, vector<8x8xf32> -> vector<8x8xf32>
    %cst_321 = arith.constant 0.353553385 : f32
    %807 = vector.broadcast %cst_321 : f32 to vector<8x8xf32>
    %808 = arith.mulf %806, %807 : vector<8x8xf32>
    %809 = arith.addf %808, %394 : vector<8x8xf32>
    %cst_322 = arith.constant dense<0xFF800000> : vector<8xf32>
    %810 = vector.multi_reduction <maximumf>, %809, %cst_322 [1] : vector<8x8xf32> to vector<8xf32>
    %811 = vector.shape_cast %810 : vector<8xf32> to vector<8x1xf32>
    %812 = vector.broadcast %811 : vector<8x1xf32> to vector<8x8xf32>
    %813 = arith.subf %809, %812 : vector<8x8xf32>
    %814 = math.exp %813 : vector<8x8xf32>
    %cst_323 = arith.constant dense<0.000000e+00> : vector<8xf32>
    %815 = vector.multi_reduction <add>, %814, %cst_323 [1] : vector<8x8xf32> to vector<8xf32>
    %816 = vector.shape_cast %815 : vector<8xf32> to vector<8x1xf32>
    %817 = tpu.reciprocal %816 {approx = true} : vector<8x1xf32> -> vector<8x1xf32>
    %818 = vector.broadcast %817 : vector<8x1xf32> to vector<8x8xf32>
    %819 = arith.mulf %814, %818 : vector<8x8xf32>
    %820 = arith.truncf %819 : vector<8x8xf32> to vector<8x8xbf16>
    %cst_324 = arith.constant dense<0.000000e+00> : vector<8x8xf32>
    %821 = tpu.matmul %820, %805, %cst_324 {dimension_numbers = #tpu.dot_dimension_numbers<[1], [0], [0], [1], [0, 0, 1, 1], [], []>} : vector<8x8xbf16>, vector<8x8xbf16>, vector<8x8xf32> -> vector<8x8xf32>
    %822 = vector.extract_strided_slice %753 {offsets = [0, 24], sizes = [8, 8], strides = [1, 1]} : vector<8x32xf32> to vector<8x8xf32>
    %823 = arith.truncf %822 : vector<8x8xf32> to vector<8x8xbf16>
    %824 = vector.extract_strided_slice %754 {offsets = [0, 24], sizes = [8, 8], strides = [1, 1]} : vector<8x32xf32> to vector<8x8xf32>
    %825 = arith.truncf %824 : vector<8x8xf32> to vector<8x8xbf16>
    %826 = vector.extract_strided_slice %755 {offsets = [0, 24], sizes = [8, 8], strides = [1, 1]} : vector<8x32xf32> to vector<8x8xf32>
    %827 = arith.truncf %826 : vector<8x8xf32> to vector<8x8xbf16>
    %cst_325 = arith.constant dense<0.000000e+00> : vector<8x8xf32>
    %828 = tpu.matmul %823, %825, %cst_325 {dimension_numbers = #tpu.dot_dimension_numbers<[1], [1], [0], [0], [0, 0, 1, 0], [], []>} : vector<8x8xbf16>, vector<8x8xbf16>, vector<8x8xf32> -> vector<8x8xf32>
    %cst_326 = arith.constant 0.353553385 : f32
    %829 = vector.broadcast %cst_326 : f32 to vector<8x8xf32>
    %830 = arith.mulf %828, %829 : vector<8x8xf32>
    %831 = arith.addf %830, %394 : vector<8x8xf32>
    %cst_327 = arith.constant dense<0xFF800000> : vector<8xf32>
    %832 = vector.multi_reduction <maximumf>, %831, %cst_327 [1] : vector<8x8xf32> to vector<8xf32>
    %833 = vector.shape_cast %832 : vector<8xf32> to vector<8x1xf32>
    %834 = vector.broadcast %833 : vector<8x1xf32> to vector<8x8xf32>
    %835 = arith.subf %831, %834 : vector<8x8xf32>
    %836 = math.exp %835 : vector<8x8xf32>
    %cst_328 = arith.constant dense<0.000000e+00> : vector<8xf32>
    %837 = vector.multi_reduction <add>, %836, %cst_328 [1] : vector<8x8xf32> to vector<8xf32>
    %838 = vector.shape_cast %837 : vector<8xf32> to vector<8x1xf32>
    %839 = tpu.reciprocal %838 {approx = true} : vector<8x1xf32> -> vector<8x1xf32>
    %840 = vector.broadcast %839 : vector<8x1xf32> to vector<8x8xf32>
    %841 = arith.mulf %836, %840 : vector<8x8xf32>
    %842 = arith.truncf %841 : vector<8x8xf32> to vector<8x8xbf16>
    %cst_329 = arith.constant dense<0.000000e+00> : vector<8x8xf32>
    %843 = tpu.matmul %842, %827, %cst_329 {dimension_numbers = #tpu.dot_dimension_numbers<[1], [0], [0], [1], [0, 0, 1, 1], [], []>} : vector<8x8xbf16>, vector<8x8xbf16>, vector<8x8xf32> -> vector<8x8xf32>
    %844 = tpu.concatenate %777, %799, %821, %843 in 1 : vector<8x8xf32>, vector<8x8xf32>, vector<8x8xf32>, vector<8x8xf32> -> vector<8x32xf32>
    %c1_330 = arith.constant 1 : index
    %c0_331 = arith.constant 0 : index
    %c0_332 = arith.constant 0 : index
    %845 = vector.load %arg24[%c1_330, %c0_331, %c0_332] : memref<2x32x32xbf16, #tpu.memory_space<vmem>>, vector<1x32x32xbf16>
    %846 = vector.shape_cast %845 : vector<1x32x32xbf16> to vector<32x32xbf16>
    %c1_333 = arith.constant 1 : index
    %c0_334 = arith.constant 0 : index
    %c0_335 = arith.constant 0 : index
    %847 = vector.load %arg25[%c1_333, %c0_334, %c0_335] : memref<2x1x32xf32, #tpu.memory_space<vmem>>, vector<1x1x32xf32>
    %848 = vector.shape_cast %847 : vector<1x1x32xf32> to vector<1x32xf32>
    %849 = arith.truncf %844 : vector<8x32xf32> to vector<8x32xbf16>
    %cst_336 = arith.constant dense<0.000000e+00> : vector<8x32xf32>
    %850 = tpu.matmul %849, %846, %cst_336 {dimension_numbers = #tpu.dot_dimension_numbers<[1], [0], [0], [1], [0, 0, 1, 1], [], []>} : vector<8x32xbf16>, vector<32x32xbf16>, vector<8x32xf32> -> vector<8x32xf32>
    %851 = vector.broadcast %848 : vector<1x32xf32> to vector<8x32xf32>
    %852 = arith.addf %850, %851 : vector<8x32xf32>
    %853 = arith.addf %719, %852 : vector<8x32xf32>
    %c1_337 = arith.constant 1 : index
    %c0_338 = arith.constant 0 : index
    %c0_339 = arith.constant 0 : index
    %854 = vector.load %arg36[%c1_337, %c0_338, %c0_339] : memref<2x1x32xf32, #tpu.memory_space<vmem>>, vector<1x1x32xf32>
    %855 = vector.shape_cast %854 : vector<1x1x32xf32> to vector<1x32xf32>
    %c1_340 = arith.constant 1 : index
    %c0_341 = arith.constant 0 : index
    %c0_342 = arith.constant 0 : index
    %856 = vector.load %arg37[%c1_340, %c0_341, %c0_342] : memref<2x1x32xf32, #tpu.memory_space<vmem>>, vector<1x1x32xf32>
    %857 = vector.shape_cast %856 : vector<1x1x32xf32> to vector<1x32xf32>
    %cst_343 = arith.constant dense<0.000000e+00> : vector<8xf32>
    %858 = vector.multi_reduction <add>, %853, %cst_343 [1] : vector<8x32xf32> to vector<8xf32>
    %859 = vector.shape_cast %858 : vector<8xf32> to vector<8x1xf32>
    %cst_344 = arith.constant 3.200000e+01 : f32
    %860 = vector.broadcast %cst_344 : f32 to vector<8x1xf32>
    %861 = arith.divf %859, %860 : vector<8x1xf32>
    %862 = vector.broadcast %861 : vector<8x1xf32> to vector<8x32xf32>
    %863 = arith.subf %853, %862 : vector<8x32xf32>
    %864 = arith.mulf %863, %863 : vector<8x32xf32>
    %cst_345 = arith.constant dense<0.000000e+00> : vector<8xf32>
    %865 = vector.multi_reduction <add>, %864, %cst_345 [1] : vector<8x32xf32> to vector<8xf32>
    %866 = vector.shape_cast %865 : vector<8xf32> to vector<8x1xf32>
    %cst_346 = arith.constant 3.100000e+01 : f32
    %867 = vector.broadcast %cst_346 : f32 to vector<8x1xf32>
    %868 = arith.divf %866, %867 : vector<8x1xf32>
    %869 = math.sqrt %868 : vector<8x1xf32>
    %cst_347 = arith.constant 9.99999997E-7 : f32
    %870 = vector.broadcast %cst_347 : f32 to vector<8x1xf32>
    %871 = arith.addf %869, %870 : vector<8x1xf32>
    %872 = tpu.reciprocal %871 {approx = true} : vector<8x1xf32> -> vector<8x1xf32>
    %873 = vector.broadcast %855 : vector<1x32xf32> to vector<8x32xf32>
    %874 = arith.mulf %873, %863 : vector<8x32xf32>
    %875 = vector.broadcast %872 : vector<8x1xf32> to vector<8x32xf32>
    %876 = arith.mulf %874, %875 : vector<8x32xf32>
    %877 = vector.broadcast %857 : vector<1x32xf32> to vector<8x32xf32>
    %878 = arith.addf %876, %877 : vector<8x32xf32>
    %c1_348 = arith.constant 1 : index
    %c0_349 = arith.constant 0 : index
    %c0_350 = arith.constant 0 : index
    %879 = vector.load %arg26[%c1_348, %c0_349, %c0_350] : memref<2x32x96xbf16, #tpu.memory_space<vmem>>, vector<1x32x96xbf16>
    %880 = vector.shape_cast %879 : vector<1x32x96xbf16> to vector<32x96xbf16>
    %881 = vector.extract_strided_slice %880 {offsets = [0, 0], sizes = [32, 32], strides = [1, 1]} : vector<32x96xbf16> to vector<32x32xbf16>
    %c1_351 = arith.constant 1 : index
    %c0_352 = arith.constant 0 : index
    %c0_353 = arith.constant 0 : index
    %882 = vector.load %arg27[%c1_351, %c0_352, %c0_353] : memref<2x1x96xf32, #tpu.memory_space<vmem>>, vector<1x1x96xf32>
    %883 = vector.shape_cast %882 : vector<1x1x96xf32> to vector<1x96xf32>
    %884 = vector.extract_strided_slice %883 {offsets = [0, 0], sizes = [1, 32], strides = [1, 1]} : vector<1x96xf32> to vector<1x32xf32>
    %885 = arith.truncf %878 : vector<8x32xf32> to vector<8x32xbf16>
    %cst_354 = arith.constant dense<0.000000e+00> : vector<8x32xf32>
    %886 = tpu.matmul %885, %881, %cst_354 {dimension_numbers = #tpu.dot_dimension_numbers<[1], [0], [0], [1], [0, 0, 1, 1], [], []>} : vector<8x32xbf16>, vector<32x32xbf16>, vector<8x32xf32> -> vector<8x32xf32>
    %887 = vector.broadcast %884 : vector<1x32xf32> to vector<8x32xf32>
    %888 = arith.addf %886, %887 : vector<8x32xf32>
    %c1_355 = arith.constant 1 : index
    %c0_356 = arith.constant 0 : index
    %c0_357 = arith.constant 0 : index
    %889 = vector.load %arg26[%c1_355, %c0_356, %c0_357] : memref<2x32x96xbf16, #tpu.memory_space<vmem>>, vector<1x32x96xbf16>
    %890 = vector.shape_cast %889 : vector<1x32x96xbf16> to vector<32x96xbf16>
    %891 = vector.extract_strided_slice %890 {offsets = [0, 32], sizes = [32, 64], strides = [1, 1]} : vector<32x96xbf16> to vector<32x64xbf16>
    %c1_358 = arith.constant 1 : index
    %c0_359 = arith.constant 0 : index
    %c0_360 = arith.constant 0 : index
    %892 = vector.load %arg27[%c1_358, %c0_359, %c0_360] : memref<2x1x96xf32, #tpu.memory_space<vmem>>, vector<1x1x96xf32>
    %893 = vector.shape_cast %892 : vector<1x1x96xf32> to vector<1x96xf32>
    %894 = vector.extract_strided_slice %893 {offsets = [0, 32], sizes = [1, 64], strides = [1, 1]} : vector<1x96xf32> to vector<1x64xf32>
    %895 = arith.truncf %386 : vector<8x32xf32> to vector<8x32xbf16>
    %cst_361 = arith.constant dense<0.000000e+00> : vector<8x64xf32>
    %896 = tpu.matmul %895, %891, %cst_361 {dimension_numbers = #tpu.dot_dimension_numbers<[1], [0], [0], [1], [0, 0, 1, 1], [], []>} : vector<8x32xbf16>, vector<32x64xbf16>, vector<8x64xf32> -> vector<8x64xf32>
    %897 = vector.broadcast %894 : vector<1x64xf32> to vector<8x64xf32>
    %898 = arith.addf %896, %897 : vector<8x64xf32>
    %899 = vector.extract_strided_slice %898 {offsets = [0, 0], sizes = [8, 32], strides = [1, 1]} : vector<8x64xf32> to vector<8x32xf32>
    %900 = vector.extract_strided_slice %898 {offsets = [0, 32], sizes = [8, 32], strides = [1, 1]} : vector<8x64xf32> to vector<8x32xf32>
    %901 = vector.extract_strided_slice %888 {offsets = [0, 0], sizes = [8, 8], strides = [1, 1]} : vector<8x32xf32> to vector<8x8xf32>
    %902 = arith.truncf %901 : vector<8x8xf32> to vector<8x8xbf16>
    %903 = vector.extract_strided_slice %899 {offsets = [0, 0], sizes = [8, 8], strides = [1, 1]} : vector<8x32xf32> to vector<8x8xf32>
    %904 = arith.truncf %903 : vector<8x8xf32> to vector<8x8xbf16>
    %905 = vector.extract_strided_slice %900 {offsets = [0, 0], sizes = [8, 8], strides = [1, 1]} : vector<8x32xf32> to vector<8x8xf32>
    %906 = arith.truncf %905 : vector<8x8xf32> to vector<8x8xbf16>
    %cst_362 = arith.constant dense<0.000000e+00> : vector<8x8xf32>
    %907 = tpu.matmul %902, %904, %cst_362 {dimension_numbers = #tpu.dot_dimension_numbers<[1], [1], [0], [0], [0, 0, 1, 0], [], []>} : vector<8x8xbf16>, vector<8x8xbf16>, vector<8x8xf32> -> vector<8x8xf32>
    %cst_363 = arith.constant 0.353553385 : f32
    %908 = vector.broadcast %cst_363 : f32 to vector<8x8xf32>
    %909 = arith.mulf %907, %908 : vector<8x8xf32>
    %910 = arith.addf %909, %396 : vector<8x8xf32>
    %cst_364 = arith.constant dense<0xFF800000> : vector<8xf32>
    %911 = vector.multi_reduction <maximumf>, %910, %cst_364 [1] : vector<8x8xf32> to vector<8xf32>
    %912 = vector.shape_cast %911 : vector<8xf32> to vector<8x1xf32>
    %913 = vector.broadcast %912 : vector<8x1xf32> to vector<8x8xf32>
    %914 = arith.subf %910, %913 : vector<8x8xf32>
    %915 = math.exp %914 : vector<8x8xf32>
    %cst_365 = arith.constant dense<0.000000e+00> : vector<8xf32>
    %916 = vector.multi_reduction <add>, %915, %cst_365 [1] : vector<8x8xf32> to vector<8xf32>
    %917 = vector.shape_cast %916 : vector<8xf32> to vector<8x1xf32>
    %918 = tpu.reciprocal %917 {approx = true} : vector<8x1xf32> -> vector<8x1xf32>
    %919 = vector.broadcast %918 : vector<8x1xf32> to vector<8x8xf32>
    %920 = arith.mulf %915, %919 : vector<8x8xf32>
    %921 = arith.truncf %920 : vector<8x8xf32> to vector<8x8xbf16>
    %cst_366 = arith.constant dense<0.000000e+00> : vector<8x8xf32>
    %922 = tpu.matmul %921, %906, %cst_366 {dimension_numbers = #tpu.dot_dimension_numbers<[1], [0], [0], [1], [0, 0, 1, 1], [], []>} : vector<8x8xbf16>, vector<8x8xbf16>, vector<8x8xf32> -> vector<8x8xf32>
    %923 = vector.extract_strided_slice %888 {offsets = [0, 8], sizes = [8, 8], strides = [1, 1]} : vector<8x32xf32> to vector<8x8xf32>
    %924 = arith.truncf %923 : vector<8x8xf32> to vector<8x8xbf16>
    %925 = vector.extract_strided_slice %899 {offsets = [0, 8], sizes = [8, 8], strides = [1, 1]} : vector<8x32xf32> to vector<8x8xf32>
    %926 = arith.truncf %925 : vector<8x8xf32> to vector<8x8xbf16>
    %927 = vector.extract_strided_slice %900 {offsets = [0, 8], sizes = [8, 8], strides = [1, 1]} : vector<8x32xf32> to vector<8x8xf32>
    %928 = arith.truncf %927 : vector<8x8xf32> to vector<8x8xbf16>
    %cst_367 = arith.constant dense<0.000000e+00> : vector<8x8xf32>
    %929 = tpu.matmul %924, %926, %cst_367 {dimension_numbers = #tpu.dot_dimension_numbers<[1], [1], [0], [0], [0, 0, 1, 0], [], []>} : vector<8x8xbf16>, vector<8x8xbf16>, vector<8x8xf32> -> vector<8x8xf32>
    %cst_368 = arith.constant 0.353553385 : f32
    %930 = vector.broadcast %cst_368 : f32 to vector<8x8xf32>
    %931 = arith.mulf %929, %930 : vector<8x8xf32>
    %932 = arith.addf %931, %396 : vector<8x8xf32>
    %cst_369 = arith.constant dense<0xFF800000> : vector<8xf32>
    %933 = vector.multi_reduction <maximumf>, %932, %cst_369 [1] : vector<8x8xf32> to vector<8xf32>
    %934 = vector.shape_cast %933 : vector<8xf32> to vector<8x1xf32>
    %935 = vector.broadcast %934 : vector<8x1xf32> to vector<8x8xf32>
    %936 = arith.subf %932, %935 : vector<8x8xf32>
    %937 = math.exp %936 : vector<8x8xf32>
    %cst_370 = arith.constant dense<0.000000e+00> : vector<8xf32>
    %938 = vector.multi_reduction <add>, %937, %cst_370 [1] : vector<8x8xf32> to vector<8xf32>
    %939 = vector.shape_cast %938 : vector<8xf32> to vector<8x1xf32>
    %940 = tpu.reciprocal %939 {approx = true} : vector<8x1xf32> -> vector<8x1xf32>
    %941 = vector.broadcast %940 : vector<8x1xf32> to vector<8x8xf32>
    %942 = arith.mulf %937, %941 : vector<8x8xf32>
    %943 = arith.truncf %942 : vector<8x8xf32> to vector<8x8xbf16>
    %cst_371 = arith.constant dense<0.000000e+00> : vector<8x8xf32>
    %944 = tpu.matmul %943, %928, %cst_371 {dimension_numbers = #tpu.dot_dimension_numbers<[1], [0], [0], [1], [0, 0, 1, 1], [], []>} : vector<8x8xbf16>, vector<8x8xbf16>, vector<8x8xf32> -> vector<8x8xf32>
    %945 = vector.extract_strided_slice %888 {offsets = [0, 16], sizes = [8, 8], strides = [1, 1]} : vector<8x32xf32> to vector<8x8xf32>
    %946 = arith.truncf %945 : vector<8x8xf32> to vector<8x8xbf16>
    %947 = vector.extract_strided_slice %899 {offsets = [0, 16], sizes = [8, 8], strides = [1, 1]} : vector<8x32xf32> to vector<8x8xf32>
    %948 = arith.truncf %947 : vector<8x8xf32> to vector<8x8xbf16>
    %949 = vector.extract_strided_slice %900 {offsets = [0, 16], sizes = [8, 8], strides = [1, 1]} : vector<8x32xf32> to vector<8x8xf32>
    %950 = arith.truncf %949 : vector<8x8xf32> to vector<8x8xbf16>
    %cst_372 = arith.constant dense<0.000000e+00> : vector<8x8xf32>
    %951 = tpu.matmul %946, %948, %cst_372 {dimension_numbers = #tpu.dot_dimension_numbers<[1], [1], [0], [0], [0, 0, 1, 0], [], []>} : vector<8x8xbf16>, vector<8x8xbf16>, vector<8x8xf32> -> vector<8x8xf32>
    %cst_373 = arith.constant 0.353553385 : f32
    %952 = vector.broadcast %cst_373 : f32 to vector<8x8xf32>
    %953 = arith.mulf %951, %952 : vector<8x8xf32>
    %954 = arith.addf %953, %396 : vector<8x8xf32>
    %cst_374 = arith.constant dense<0xFF800000> : vector<8xf32>
    %955 = vector.multi_reduction <maximumf>, %954, %cst_374 [1] : vector<8x8xf32> to vector<8xf32>
    %956 = vector.shape_cast %955 : vector<8xf32> to vector<8x1xf32>
    %957 = vector.broadcast %956 : vector<8x1xf32> to vector<8x8xf32>
    %958 = arith.subf %954, %957 : vector<8x8xf32>
    %959 = math.exp %958 : vector<8x8xf32>
    %cst_375 = arith.constant dense<0.000000e+00> : vector<8xf32>
    %960 = vector.multi_reduction <add>, %959, %cst_375 [1] : vector<8x8xf32> to vector<8xf32>
    %961 = vector.shape_cast %960 : vector<8xf32> to vector<8x1xf32>
    %962 = tpu.reciprocal %961 {approx = true} : vector<8x1xf32> -> vector<8x1xf32>
    %963 = vector.broadcast %962 : vector<8x1xf32> to vector<8x8xf32>
    %964 = arith.mulf %959, %963 : vector<8x8xf32>
    %965 = arith.truncf %964 : vector<8x8xf32> to vector<8x8xbf16>
    %cst_376 = arith.constant dense<0.000000e+00> : vector<8x8xf32>
    %966 = tpu.matmul %965, %950, %cst_376 {dimension_numbers = #tpu.dot_dimension_numbers<[1], [0], [0], [1], [0, 0, 1, 1], [], []>} : vector<8x8xbf16>, vector<8x8xbf16>, vector<8x8xf32> -> vector<8x8xf32>
    %967 = vector.extract_strided_slice %888 {offsets = [0, 24], sizes = [8, 8], strides = [1, 1]} : vector<8x32xf32> to vector<8x8xf32>
    %968 = arith.truncf %967 : vector<8x8xf32> to vector<8x8xbf16>
    %969 = vector.extract_strided_slice %899 {offsets = [0, 24], sizes = [8, 8], strides = [1, 1]} : vector<8x32xf32> to vector<8x8xf32>
    %970 = arith.truncf %969 : vector<8x8xf32> to vector<8x8xbf16>
    %971 = vector.extract_strided_slice %900 {offsets = [0, 24], sizes = [8, 8], strides = [1, 1]} : vector<8x32xf32> to vector<8x8xf32>
    %972 = arith.truncf %971 : vector<8x8xf32> to vector<8x8xbf16>
    %cst_377 = arith.constant dense<0.000000e+00> : vector<8x8xf32>
    %973 = tpu.matmul %968, %970, %cst_377 {dimension_numbers = #tpu.dot_dimension_numbers<[1], [1], [0], [0], [0, 0, 1, 0], [], []>} : vector<8x8xbf16>, vector<8x8xbf16>, vector<8x8xf32> -> vector<8x8xf32>
    %cst_378 = arith.constant 0.353553385 : f32
    %974 = vector.broadcast %cst_378 : f32 to vector<8x8xf32>
    %975 = arith.mulf %973, %974 : vector<8x8xf32>
    %976 = arith.addf %975, %396 : vector<8x8xf32>
    %cst_379 = arith.constant dense<0xFF800000> : vector<8xf32>
    %977 = vector.multi_reduction <maximumf>, %976, %cst_379 [1] : vector<8x8xf32> to vector<8xf32>
    %978 = vector.shape_cast %977 : vector<8xf32> to vector<8x1xf32>
    %979 = vector.broadcast %978 : vector<8x1xf32> to vector<8x8xf32>
    %980 = arith.subf %976, %979 : vector<8x8xf32>
    %981 = math.exp %980 : vector<8x8xf32>
    %cst_380 = arith.constant dense<0.000000e+00> : vector<8xf32>
    %982 = vector.multi_reduction <add>, %981, %cst_380 [1] : vector<8x8xf32> to vector<8xf32>
    %983 = vector.shape_cast %982 : vector<8xf32> to vector<8x1xf32>
    %984 = tpu.reciprocal %983 {approx = true} : vector<8x1xf32> -> vector<8x1xf32>
    %985 = vector.broadcast %984 : vector<8x1xf32> to vector<8x8xf32>
    %986 = arith.mulf %981, %985 : vector<8x8xf32>
    %987 = arith.truncf %986 : vector<8x8xf32> to vector<8x8xbf16>
    %cst_381 = arith.constant dense<0.000000e+00> : vector<8x8xf32>
    %988 = tpu.matmul %987, %972, %cst_381 {dimension_numbers = #tpu.dot_dimension_numbers<[1], [0], [0], [1], [0, 0, 1, 1], [], []>} : vector<8x8xbf16>, vector<8x8xbf16>, vector<8x8xf32> -> vector<8x8xf32>
    %989 = tpu.concatenate %922, %944, %966, %988 in 1 : vector<8x8xf32>, vector<8x8xf32>, vector<8x8xf32>, vector<8x8xf32> -> vector<8x32xf32>
    %c1_382 = arith.constant 1 : index
    %c0_383 = arith.constant 0 : index
    %c0_384 = arith.constant 0 : index
    %990 = vector.load %arg28[%c1_382, %c0_383, %c0_384] : memref<2x32x32xbf16, #tpu.memory_space<vmem>>, vector<1x32x32xbf16>
    %991 = vector.shape_cast %990 : vector<1x32x32xbf16> to vector<32x32xbf16>
    %c1_385 = arith.constant 1 : index
    %c0_386 = arith.constant 0 : index
    %c0_387 = arith.constant 0 : index
    %992 = vector.load %arg29[%c1_385, %c0_386, %c0_387] : memref<2x1x32xf32, #tpu.memory_space<vmem>>, vector<1x1x32xf32>
    %993 = vector.shape_cast %992 : vector<1x1x32xf32> to vector<1x32xf32>
    %994 = arith.truncf %989 : vector<8x32xf32> to vector<8x32xbf16>
    %cst_388 = arith.constant dense<0.000000e+00> : vector<8x32xf32>
    %995 = tpu.matmul %994, %991, %cst_388 {dimension_numbers = #tpu.dot_dimension_numbers<[1], [0], [0], [1], [0, 0, 1, 1], [], []>} : vector<8x32xbf16>, vector<32x32xbf16>, vector<8x32xf32> -> vector<8x32xf32>
    %996 = vector.broadcast %993 : vector<1x32xf32> to vector<8x32xf32>
    %997 = arith.addf %995, %996 : vector<8x32xf32>
    %998 = arith.addf %853, %997 : vector<8x32xf32>
    %c1_389 = arith.constant 1 : index
    %c0_390 = arith.constant 0 : index
    %c0_391 = arith.constant 0 : index
    %999 = vector.load %arg38[%c1_389, %c0_390, %c0_391] : memref<2x1x32xf32, #tpu.memory_space<vmem>>, vector<1x1x32xf32>
    %1000 = vector.shape_cast %999 : vector<1x1x32xf32> to vector<1x32xf32>
    %c1_392 = arith.constant 1 : index
    %c0_393 = arith.constant 0 : index
    %c0_394 = arith.constant 0 : index
    %1001 = vector.load %arg39[%c1_392, %c0_393, %c0_394] : memref<2x1x32xf32, #tpu.memory_space<vmem>>, vector<1x1x32xf32>
    %1002 = vector.shape_cast %1001 : vector<1x1x32xf32> to vector<1x32xf32>
    %cst_395 = arith.constant dense<0.000000e+00> : vector<8xf32>
    %1003 = vector.multi_reduction <add>, %998, %cst_395 [1] : vector<8x32xf32> to vector<8xf32>
    %1004 = vector.shape_cast %1003 : vector<8xf32> to vector<8x1xf32>
    %cst_396 = arith.constant 3.200000e+01 : f32
    %1005 = vector.broadcast %cst_396 : f32 to vector<8x1xf32>
    %1006 = arith.divf %1004, %1005 : vector<8x1xf32>
    %1007 = vector.broadcast %1006 : vector<8x1xf32> to vector<8x32xf32>
    %1008 = arith.subf %998, %1007 : vector<8x32xf32>
    %1009 = arith.mulf %1008, %1008 : vector<8x32xf32>
    %cst_397 = arith.constant dense<0.000000e+00> : vector<8xf32>
    %1010 = vector.multi_reduction <add>, %1009, %cst_397 [1] : vector<8x32xf32> to vector<8xf32>
    %1011 = vector.shape_cast %1010 : vector<8xf32> to vector<8x1xf32>
    %cst_398 = arith.constant 3.100000e+01 : f32
    %1012 = vector.broadcast %cst_398 : f32 to vector<8x1xf32>
    %1013 = arith.divf %1011, %1012 : vector<8x1xf32>
    %1014 = math.sqrt %1013 : vector<8x1xf32>
    %cst_399 = arith.constant 9.99999997E-7 : f32
    %1015 = vector.broadcast %cst_399 : f32 to vector<8x1xf32>
    %1016 = arith.addf %1014, %1015 : vector<8x1xf32>
    %1017 = tpu.reciprocal %1016 {approx = true} : vector<8x1xf32> -> vector<8x1xf32>
    %1018 = vector.broadcast %1000 : vector<1x32xf32> to vector<8x32xf32>
    %1019 = arith.mulf %1018, %1008 : vector<8x32xf32>
    %1020 = vector.broadcast %1017 : vector<8x1xf32> to vector<8x32xf32>
    %1021 = arith.mulf %1019, %1020 : vector<8x32xf32>
    %1022 = vector.broadcast %1002 : vector<1x32xf32> to vector<8x32xf32>
    %1023 = arith.addf %1021, %1022 : vector<8x32xf32>
    %c1_400 = arith.constant 1 : index
    %c0_401 = arith.constant 0 : index
    %c0_402 = arith.constant 0 : index
    %1024 = vector.load %arg30[%c1_400, %c0_401, %c0_402] : memref<2x32x64xbf16, #tpu.memory_space<vmem>>, vector<1x32x64xbf16>
    %1025 = vector.shape_cast %1024 : vector<1x32x64xbf16> to vector<32x64xbf16>
    %c1_403 = arith.constant 1 : index
    %c0_404 = arith.constant 0 : index
    %c0_405 = arith.constant 0 : index
    %1026 = vector.load %arg31[%c1_403, %c0_404, %c0_405] : memref<2x1x64xf32, #tpu.memory_space<vmem>>, vector<1x1x64xf32>
    %1027 = vector.shape_cast %1026 : vector<1x1x64xf32> to vector<1x64xf32>
    %1028 = arith.truncf %1023 : vector<8x32xf32> to vector<8x32xbf16>
    %cst_406 = arith.constant dense<0.000000e+00> : vector<8x64xf32>
    %1029 = tpu.matmul %1028, %1025, %cst_406 {dimension_numbers = #tpu.dot_dimension_numbers<[1], [0], [0], [1], [0, 0, 1, 1], [], []>} : vector<8x32xbf16>, vector<32x64xbf16>, vector<8x64xf32> -> vector<8x64xf32>
    %1030 = vector.broadcast %1027 : vector<1x64xf32> to vector<8x64xf32>
    %1031 = arith.addf %1029, %1030 : vector<8x64xf32>
    %cst_407 = arith.constant 0.000000e+00 : f32
    %1032 = vector.broadcast %cst_407 : f32 to vector<8x64xf32>
    %1033 = arith.maximumf %1031, %1032 : vector<8x64xf32>
    %c1_408 = arith.constant 1 : index
    %c0_409 = arith.constant 0 : index
    %c0_410 = arith.constant 0 : index
    %1034 = vector.load %arg32[%c1_408, %c0_409, %c0_410] : memref<2x64x32xbf16, #tpu.memory_space<vmem>>, vector<1x64x32xbf16>
    %1035 = vector.shape_cast %1034 : vector<1x64x32xbf16> to vector<64x32xbf16>
    %c1_411 = arith.constant 1 : index
    %c0_412 = arith.constant 0 : index
    %c0_413 = arith.constant 0 : index
    %1036 = vector.load %arg33[%c1_411, %c0_412, %c0_413] : memref<2x1x32xf32, #tpu.memory_space<vmem>>, vector<1x1x32xf32>
    %1037 = vector.shape_cast %1036 : vector<1x1x32xf32> to vector<1x32xf32>
    %1038 = arith.truncf %1033 : vector<8x64xf32> to vector<8x64xbf16>
    %cst_414 = arith.constant dense<0.000000e+00> : vector<8x32xf32>
    %1039 = tpu.matmul %1038, %1035, %cst_414 {dimension_numbers = #tpu.dot_dimension_numbers<[1], [0], [0], [1], [0, 0, 1, 1], [], []>} : vector<8x64xbf16>, vector<64x32xbf16>, vector<8x32xf32> -> vector<8x32xf32>
    %1040 = vector.broadcast %1037 : vector<1x32xf32> to vector<8x32xf32>
    %1041 = arith.addf %1039, %1040 : vector<8x32xf32>
    %1042 = arith.addf %998, %1041 : vector<8x32xf32>
    %c0_415 = arith.constant 0 : index
    %c0_416 = arith.constant 0 : index
    %1043 = vector.load %arg40[%c0_415, %c0_416] : memref<1x32xf32, #tpu.memory_space<vmem>>, vector<1x32xf32>
    %c0_417 = arith.constant 0 : index
    %c0_418 = arith.constant 0 : index
    %1044 = vector.load %arg41[%c0_417, %c0_418] : memref<1x32xf32, #tpu.memory_space<vmem>>, vector<1x32xf32>
    %cst_419 = arith.constant dense<0.000000e+00> : vector<8xf32>
    %1045 = vector.multi_reduction <add>, %1042, %cst_419 [1] : vector<8x32xf32> to vector<8xf32>
    %1046 = vector.shape_cast %1045 : vector<8xf32> to vector<8x1xf32>
    %cst_420 = arith.constant 3.200000e+01 : f32
    %1047 = vector.broadcast %cst_420 : f32 to vector<8x1xf32>
    %1048 = arith.divf %1046, %1047 : vector<8x1xf32>
    %1049 = vector.broadcast %1048 : vector<8x1xf32> to vector<8x32xf32>
    %1050 = arith.subf %1042, %1049 : vector<8x32xf32>
    %1051 = arith.mulf %1050, %1050 : vector<8x32xf32>
    %cst_421 = arith.constant dense<0.000000e+00> : vector<8xf32>
    %1052 = vector.multi_reduction <add>, %1051, %cst_421 [1] : vector<8x32xf32> to vector<8xf32>
    %1053 = vector.shape_cast %1052 : vector<8xf32> to vector<8x1xf32>
    %cst_422 = arith.constant 3.100000e+01 : f32
    %1054 = vector.broadcast %cst_422 : f32 to vector<8x1xf32>
    %1055 = arith.divf %1053, %1054 : vector<8x1xf32>
    %1056 = math.sqrt %1055 : vector<8x1xf32>
    %cst_423 = arith.constant 9.99999997E-7 : f32
    %1057 = vector.broadcast %cst_423 : f32 to vector<8x1xf32>
    %1058 = arith.addf %1056, %1057 : vector<8x1xf32>
    %1059 = tpu.reciprocal %1058 {approx = true} : vector<8x1xf32> -> vector<8x1xf32>
    %1060 = vector.broadcast %1043 : vector<1x32xf32> to vector<8x32xf32>
    %1061 = arith.mulf %1060, %1050 : vector<8x32xf32>
    %1062 = vector.broadcast %1059 : vector<8x1xf32> to vector<8x32xf32>
    %1063 = arith.mulf %1061, %1062 : vector<8x32xf32>
    %1064 = vector.broadcast %1044 : vector<1x32xf32> to vector<8x32xf32>
    %1065 = arith.addf %1063, %1064 : vector<8x32xf32>
    %c0_424 = arith.constant 0 : index
    %c0_425 = arith.constant 0 : index
    %c0_426 = arith.constant 0 : index
    %1066 = vector.load %arg42[%c0_424, %c0_425, %c0_426] : memref<1x8x32xf32, #tpu.memory_space<vmem>>, vector<1x8x32xf32>
    %1067 = vector.shape_cast %1066 : vector<1x8x32xf32> to vector<8x32xf32>
    %1068 = vector.shape_cast %1065 : vector<8x32xf32> to vector<1x8x32xf32>
    tpu.vector_store %arg42[%c0_424, %c0_425, %c0_426], %1068 {strides = array<i32>} : memref<1x8x32xf32, #tpu.memory_space<vmem>>, vector<1x8x32xf32>,
    return
  }
  func.func @transform_0(%arg0: i32) -> (i32, i32, i32) {
    %c0_i32 = arith.constant 0 : i32
    %c0_i32_0 = arith.constant 0 : i32
    %c0_i32_1 = arith.constant 0 : i32
    return %arg0, %c0_i32, %c0_i32_0 : i32, i32, i32
  }
  func.func @transform_1(%arg0: i32) -> (i32, i32, i32) {
    %c0_i32 = arith.constant 0 : i32
    %c0_i32_0 = arith.constant 0 : i32
    %c0_i32_1 = arith.constant 0 : i32
    return %arg0, %c0_i32, %c0_i32_0 : i32, i32, i32
  }
  func.func @transform_2(%arg0: i32) -> (i32, i32, i32) {
    %c0_i32 = arith.constant 0 : i32
    %c0_i32_0 = arith.constant 0 : i32
    %c0_i32_1 = arith.constant 0 : i32
    return %arg0, %c0_i32, %c0_i32_0 : i32, i32, i32
  }
  func.func @transform_3(%arg0: i32) -> (i32, i32, i32) {
    %c0_i32 = arith.constant 0 : i32
    %c0_i32_0 = arith.constant 0 : i32
    %c0_i32_1 = arith.constant 0 : i32
    return %arg0, %c0_i32, %c0_i32_0 : i32, i32, i32
  }
  func.func @transform_4(%arg0: i32) -> (i32, i32, i32) {
    %c0_i32 = arith.constant 0 : i32
    %c0_i32_0 = arith.constant 0 : i32
    %c0_i32_1 = arith.constant 0 : i32
    return %arg0, %c0_i32, %c0_i32_0 : i32, i32, i32
  }
  func.func @transform_5(%arg0: i32) -> (i32, i32) {
    %c0_i32 = arith.constant 0 : i32
    %c0_i32_0 = arith.constant 0 : i32
    %c0_i32_1 = arith.constant 0 : i32
    return %c0_i32, %c0_i32_0 : i32, i32
  }
  func.func @transform_6(%arg0: i32) -> (i32, i32) {
    %c0_i32 = arith.constant 0 : i32
    %c0_i32_0 = arith.constant 0 : i32
    %c0_i32_1 = arith.constant 0 : i32
    return %c0_i32, %c0_i32_0 : i32, i32
  }
  func.func @transform_7(%arg0: i32) -> (i32, i32, i32) {
    %c0_i32 = arith.constant 0 : i32
    %c0_i32_0 = arith.constant 0 : i32
    %c0_i32_1 = arith.constant 0 : i32
    %c0_i32_2 = arith.constant 0 : i32
    return %c0_i32, %c0_i32_0, %c0_i32_1 : i32, i32, i32
  }
  func.func @transform_8(%arg0: i32) -> (i32, i32, i32) {
    %c0_i32 = arith.constant 0 : i32
    %c0_i32_0 = arith.constant 0 : i32
    %c0_i32_1 = arith.constant 0 : i32
    %c0_i32_2 = arith.constant 0 : i32
    return %c0_i32, %c0_i32_0, %c0_i32_1 : i32, i32, i32
  }
  func.func @transform_9(%arg0: i32) -> (i32, i32, i32) {
    %c0_i32 = arith.constant 0 : i32
    %c0_i32_0 = arith.constant 0 : i32
    %c0_i32_1 = arith.constant 0 : i32
    %c0_i32_2 = arith.constant 0 : i32
    return %c0_i32, %c0_i32_0, %c0_i32_1 : i32, i32, i32
  }
  func.func @transform_10(%arg0: i32) -> (i32, i32, i32) {
    %c0_i32 = arith.constant 0 : i32
    %c0_i32_0 = arith.constant 0 : i32
    %c0_i32_1 = arith.constant 0 : i32
    %c0_i32_2 = arith.constant 0 : i32
    return %c0_i32, %c0_i32_0, %c0_i32_1 : i32, i32, i32
  }
  func.func @transform_11(%arg0: i32) -> (i32, i32, i32) {
    %c0_i32 = arith.constant 0 : i32
    %c0_i32_0 = arith.constant 0 : i32
    %c0_i32_1 = arith.constant 0 : i32
    %c0_i32_2 = arith.constant 0 : i32
    return %c0_i32, %c0_i32_0, %c0_i32_1 : i32, i32, i32
  }
  func.func @transform_12(%arg0: i32) -> (i32, i32, i32) {
    %c0_i32 = arith.constant 0 : i32
    %c0_i32_0 = arith.constant 0 : i32
    %c0_i32_1 = arith.constant 0 : i32
    %c0_i32_2 = arith.constant 0 : i32
    return %c0_i32, %c0_i32_0, %c0_i32_1 : i32, i32, i32
  }
  func.func @transform_13(%arg0: i32) -> (i32, i32, i32) {
    %c0_i32 = arith.constant 0 : i32
    %c0_i32_0 = arith.constant 0 : i32
    %c0_i32_1 = arith.constant 0 : i32
    %c0_i32_2 = arith.constant 0 : i32
    return %c0_i32, %c0_i32_0, %c0_i32_1 : i32, i32, i32
  }
  func.func @transform_14(%arg0: i32) -> (i32, i32, i32) {
    %c0_i32 = arith.constant 0 : i32
    %c0_i32_0 = arith.constant 0 : i32
    %c0_i32_1 = arith.constant 0 : i32
    %c0_i32_2 = arith.constant 0 : i32
    return %c0_i32, %c0_i32_0, %c0_i32_1 : i32, i32, i32
  }
  func.func @transform_15(%arg0: i32) -> (i32, i32, i32) {
    %c0_i32 = arith.constant 0 : i32
    %c0_i32_0 = arith.constant 0 : i32
    %c0_i32_1 = arith.constant 0 : i32
    %c0_i32_2 = arith.constant 0 : i32
    return %c0_i32, %c0_i32_0, %c0_i32_1 : i32, i32, i32
  }
  func.func @transform_16(%arg0: i32) -> (i32, i32, i32) {
    %c0_i32 = arith.constant 0 : i32
    %c0_i32_0 = arith.constant 0 : i32
    %c0_i32_1 = arith.constant 0 : i32
    %c0_i32_2 = arith.constant 0 : i32
    return %c0_i32, %c0_i32_0, %c0_i32_1 : i32, i32, i32
  }
  func.func @transform_17(%arg0: i32) -> (i32, i32, i32) {
    %c0_i32 = arith.constant 0 : i32
    %c0_i32_0 = arith.constant 0 : i32
    %c0_i32_1 = arith.constant 0 : i32
    %c0_i32_2 = arith.constant 0 : i32
    return %c0_i32, %c0_i32_0, %c0_i32_1 : i32, i32, i32
  }
  func.func @transform_18(%arg0: i32) -> (i32, i32, i32) {
    %c0_i32 = arith.constant 0 : i32
    %c0_i32_0 = arith.constant 0 : i32
    %c0_i32_1 = arith.constant 0 : i32
    %c0_i32_2 = arith.constant 0 : i32
    return %c0_i32, %c0_i32_0, %c0_i32_1 : i32, i32, i32
  }
  func.func @transform_19(%arg0: i32) -> (i32, i32) {
    %c0_i32 = arith.constant 0 : i32
    %c0_i32_0 = arith.constant 0 : i32
    %c0_i32_1 = arith.constant 0 : i32
    return %c0_i32, %c0_i32_0 : i32, i32
  }
  func.func @transform_20(%arg0: i32) -> (i32, i32) {
    %c0_i32 = arith.constant 0 : i32
    %c0_i32_0 = arith.constant 0 : i32
    %c0_i32_1 = arith.constant 0 : i32
    return %c0_i32, %c0_i32_0 : i32, i32
  }
  func.func @transform_21(%arg0: i32) -> (i32, i32, i32) {
    %c0_i32 = arith.constant 0 : i32
    %c0_i32_0 = arith.constant 0 : i32
    %c0_i32_1 = arith.constant 0 : i32
    %c0_i32_2 = arith.constant 0 : i32
    return %c0_i32, %c0_i32_0, %c0_i32_1 : i32, i32, i32
  }
  func.func @transform_22(%arg0: i32) -> (i32, i32, i32) {
    %c0_i32 = arith.constant 0 : i32
    %c0_i32_0 = arith.constant 0 : i32
    %c0_i32_1 = arith.constant 0 : i32
    %c0_i32_2 = arith.constant 0 : i32
    return %c0_i32, %c0_i32_0, %c0_i32_1 : i32, i32, i32
  }
  func.func @transform_23(%arg0: i32) -> (i32, i32, i32) {
    %c0_i32 = arith.constant 0 : i32
    %c0_i32_0 = arith.constant 0 : i32
    %c0_i32_1 = arith.constant 0 : i32
    %c0_i32_2 = arith.constant 0 : i32
    return %c0_i32, %c0_i32_0, %c0_i32_1 : i32, i32, i32
  }
  func.func @transform_24(%arg0: i32) -> (i32, i32, i32) {
    %c0_i32 = arith.constant 0 : i32
    %c0_i32_0 = arith.constant 0 : i32
    %c0_i32_1 = arith.constant 0 : i32
    %c0_i32_2 = arith.constant 0 : i32
    return %c0_i32, %c0_i32_0, %c0_i32_1 : i32, i32, i32
  }
  func.func @transform_25(%arg0: i32) -> (i32, i32, i32) {
    %c0_i32 = arith.constant 0 : i32
    %c0_i32_0 = arith.constant 0 : i32
    %c0_i32_1 = arith.constant 0 : i32
    %c0_i32_2 = arith.constant 0 : i32
    return %c0_i32, %c0_i32_0, %c0_i32_1 : i32, i32, i32
  }
  func.func @transform_26(%arg0: i32) -> (i32, i32, i32) {
    %c0_i32 = arith.constant 0 : i32
    %c0_i32_0 = arith.constant 0 : i32
    %c0_i32_1 = arith.constant 0 : i32
    %c0_i32_2 = arith.constant 0 : i32
    return %c0_i32, %c0_i32_0, %c0_i32_1 : i32, i32, i32
  }
  func.func @transform_27(%arg0: i32) -> (i32, i32, i32) {
    %c0_i32 = arith.constant 0 : i32
    %c0_i32_0 = arith.constant 0 : i32
    %c0_i32_1 = arith.constant 0 : i32
    %c0_i32_2 = arith.constant 0 : i32
    return %c0_i32, %c0_i32_0, %c0_i32_1 : i32, i32, i32
  }
  func.func @transform_28(%arg0: i32) -> (i32, i32, i32) {
    %c0_i32 = arith.constant 0 : i32
    %c0_i32_0 = arith.constant 0 : i32
    %c0_i32_1 = arith.constant 0 : i32
    %c0_i32_2 = arith.constant 0 : i32
    return %c0_i32, %c0_i32_0, %c0_i32_1 : i32, i32, i32
  }
  func.func @transform_29(%arg0: i32) -> (i32, i32, i32) {
    %c0_i32 = arith.constant 0 : i32
    %c0_i32_0 = arith.constant 0 : i32
    %c0_i32_1 = arith.constant 0 : i32
    %c0_i32_2 = arith.constant 0 : i32
    return %c0_i32, %c0_i32_0, %c0_i32_1 : i32, i32, i32
  }
  func.func @transform_30(%arg0: i32) -> (i32, i32, i32) {
    %c0_i32 = arith.constant 0 : i32
    %c0_i32_0 = arith.constant 0 : i32
    %c0_i32_1 = arith.constant 0 : i32
    %c0_i32_2 = arith.constant 0 : i32
    return %c0_i32, %c0_i32_0, %c0_i32_1 : i32, i32, i32
  }
  func.func @transform_31(%arg0: i32) -> (i32, i32, i32) {
    %c0_i32 = arith.constant 0 : i32
    %c0_i32_0 = arith.constant 0 : i32
    %c0_i32_1 = arith.constant 0 : i32
    %c0_i32_2 = arith.constant 0 : i32
    return %c0_i32, %c0_i32_0, %c0_i32_1 : i32, i32, i32
  }
  func.func @transform_32(%arg0: i32) -> (i32, i32, i32) {
    %c0_i32 = arith.constant 0 : i32
    %c0_i32_0 = arith.constant 0 : i32
    %c0_i32_1 = arith.constant 0 : i32
    %c0_i32_2 = arith.constant 0 : i32
    return %c0_i32, %c0_i32_0, %c0_i32_1 : i32, i32, i32
  }
  func.func @transform_33(%arg0: i32) -> (i32, i32, i32) {
    %c0_i32 = arith.constant 0 : i32
    %c0_i32_0 = arith.constant 0 : i32
    %c0_i32_1 = arith.constant 0 : i32
    %c0_i32_2 = arith.constant 0 : i32
    return %c0_i32, %c0_i32_0, %c0_i32_1 : i32, i32, i32
  }
  func.func @transform_34(%arg0: i32) -> (i32, i32, i32) {
    %c0_i32 = arith.constant 0 : i32
    %c0_i32_0 = arith.constant 0 : i32
    %c0_i32_1 = arith.constant 0 : i32
    %c0_i32_2 = arith.constant 0 : i32
    return %c0_i32, %c0_i32_0, %c0_i32_1 : i32, i32, i32
  }
  func.func @transform_35(%arg0: i32) -> (i32, i32, i32) {
    %c0_i32 = arith.constant 0 : i32
    %c0_i32_0 = arith.constant 0 : i32
    %c0_i32_1 = arith.constant 0 : i32
    %c0_i32_2 = arith.constant 0 : i32
    return %c0_i32, %c0_i32_0, %c0_i32_1 : i32, i32, i32
  }
  func.func @transform_36(%arg0: i32) -> (i32, i32, i32) {
    %c0_i32 = arith.constant 0 : i32
    %c0_i32_0 = arith.constant 0 : i32
    %c0_i32_1 = arith.constant 0 : i32
    %c0_i32_2 = arith.constant 0 : i32
    return %c0_i32, %c0_i32_0, %c0_i32_1 : i32, i32, i32
  }
  func.func @transform_37(%arg0: i32) -> (i32, i32, i32) {
    %c0_i32 = arith.constant 0 : i32
    %c0_i32_0 = arith.constant 0 : i32
    %c0_i32_1 = arith.constant 0 : i32
    %c0_i32_2 = arith.constant 0 : i32
    return %c0_i32, %c0_i32_0, %c0_i32_1 : i32, i32, i32
  }
  func.func @transform_38(%arg0: i32) -> (i32, i32, i32) {
    %c0_i32 = arith.constant 0 : i32
    %c0_i32_0 = arith.constant 0 : i32
    %c0_i32_1 = arith.constant 0 : i32
    %c0_i32_2 = arith.constant 0 : i32
    return %c0_i32, %c0_i32_0, %c0_i32_1 : i32, i32, i32
  }
  func.func @transform_39(%arg0: i32) -> (i32, i32) {
    %c0_i32 = arith.constant 0 : i32
    %c0_i32_0 = arith.constant 0 : i32
    %c0_i32_1 = arith.constant 0 : i32
    return %c0_i32, %c0_i32_0 : i32, i32
  }
  func.func @transform_40(%arg0: i32) -> (i32, i32) {
    %c0_i32 = arith.constant 0 : i32
    %c0_i32_0 = arith.constant 0 : i32
    %c0_i32_1 = arith.constant 0 : i32
    return %c0_i32, %c0_i32_0 : i32, i32
  }
  func.func @transform_41(%arg0: i32) -> (i32, i32, i32) {
    %c0_i32 = arith.constant 0 : i32
    %c0_i32_0 = arith.constant 0 : i32
    %c0_i32_1 = arith.constant 0 : i32
    return %arg0, %c0_i32, %c0_i32_0 : i32, i32, i32
  }
}

</mosaic_0001>

<bundles_post_ra>
// kernel: encoder_decoder_forward.1
= control target key start
LH: loop header
LB: loop body
LE: loop exit
PB: predicated region body
PF: predicated region fallthrough
CT: control target
= control target key end

     0   :  { %s5041_s6 = smov 1   ;;  %s5042_s10 = smov 2   ;;  %s5972_s0 = inlined_call_operand.smem [shape: u32[42], index: -1, kind: input, shape index: {}] }
   0x1   :  { %s5106_s5 = sld [smem:[%s5972_s0]]   ;;  %s5043_s14 = smov 3  }
   0x2   :  { %s5111_s9 = sld [smem:[%s5972_s0 + %s5041_s6]]   ;;  %s5044_s18 = smov 4  }
   0x3   :  { %s5116_s13 = sld [smem:[%s5972_s0 + %s5042_s10]]   ;;  %s5045_s22 = smov 5  }
   0x4   :  { %s5121_s17 = sld [smem:[%s5972_s0 + %s5043_s14]]   ;;  %s5046_s26 = smov 6  }
   0x5   :  { %s5126_s21 = sld [smem:[%s5972_s0 + %s5044_s18]]   ;;  %s5047_s30 = smov 7  }
   0x6   :  { %s5131_s25 = sld [smem:[%s5972_s0 + %s5045_s22]]   ;;  %s5048_s4 = smov 8  }
   0x7   :  { %6044 = sst [smem:[#allocation5_spill]] %s5106_s5  ;;  %s5049_s10 = smov 9  }
   0x8   :  { %6045 = sst [smem:[#allocation6_spill]] %s5111_s9  ;;  %s5050_s15 = smov 10  }
   0x9   :  { %6046 = sst [smem:[#allocation7_spill]] %s5116_s13  ;;  %s5051_s20 = smov 11  }
   0xa   :  { %6047 = sst [smem:[#allocation8_spill]] %s5121_s17  ;;  %s5053_s1 = smov 13  }
   0xb   :  { %6048 = sst [smem:[#allocation9_spill]] %s5126_s21  ;;  %s5054_s7 = smov 14  }
   0xc   :  { %6049 = sst [smem:[#allocation10_spill]] %s5131_s25  ;;  %s5056_s22 = smov 16  }
   0xd   :  { %s5136_s29 = sld [smem:[%s5972_s0 + %s5046_s26]]   ;;  %s5052_s26 = smov 12  }
   0xe   :  { %s5141_s3 = sld [smem:[%s5972_s0 + %s5047_s30]]   ;;  %s5057_s28 = smov 17  }
   0xf   :  { %s5146_s8 = sld [smem:[%s5972_s0 + %s5048_s4]]  }
  0x10   :  { %s5151_s14 = sld [smem:[%s5972_s0 + %s5049_s10]]  }
  0x11   :  { %s5156_s19 = sld [smem:[%s5972_s0 + %s5050_s15]]   ;;  %s5055_s15 = smov 15  }
  0x12   :  { %s5161_s24 = sld [smem:[%s5972_s0 + %s5051_s20]]  }
  0x13   :  { %6050 = sst [smem:[#allocation11_spill]] %s5136_s29 }
  0x14   :  { %6051 = sst [smem:[#allocation12_spill]] %s5141_s3 }
  0x15   :  { %6052 = sst [smem:[#allocation13_spill]] %s5146_s8 }
  0x16   :  { %6053 = sst [smem:[#allocation14_spill]] %s5151_s14 }
  0x17   :  { %6054 = sst [smem:[#allocation15_spill]] %s5156_s19 }
  0x18   :  { %6055 = sst [smem:[#allocation16_spill]] %s5161_s24 }
  0x19   :  { %s5166_s30 = sld [smem:[%s5972_s0 + %s5052_s26]]  }
  0x1a   :  { %s5171_s6 = sld [smem:[%s5972_s0 + %s5053_s1]]  }
  0x1b   :  { %s5176_s12 = sld [smem:[%s5972_s0 + %s5054_s7]]   ;;  %s5058_s7 = smov 18  }
  0x1c   :  { %s5181_s20 = sld [smem:[%s5972_s0 + %s5055_s15]]   ;;  %s5059_s15 = smov 19  }
  0x1d   :  { %s5186_s27 = sld [smem:[%s5972_s0 + %s5056_s22]]   ;;  %s5060_s22 = smov 20  }
  0x1e   :  { %s5191_s4 = sld [smem:[%s5972_s0 + %s5057_s28]]   ;;  %s5061_s28 = smov 21  }
  0x1f   :  { %6056 = sst [smem:[#allocation17_spill]] %s5166_s30 }
  0x20   :  { %6057 = sst [smem:[#allocation18_spill]] %s5171_s6 }
  0x21   :  { %6058 = sst [smem:[#allocation19_spill]] %s5176_s12 }
  0x22   :  { %6059 = sst [smem:[#allocation20_spill]] %s5181_s20 }
  0x23   :  { %6060 = sst [smem:[#allocation21_spill]] %s5186_s27 }
  0x24   :  { %6061 = sst [smem:[#allocation22_spill]] %s5191_s4 }
  0x25   :  { %s5196_s17 = sld [smem:[%s5972_s0 + %s5058_s7]]   ;;  %s5062_s7 = smov 22  }
  0x26   :  { %s5201_s21 = sld [smem:[%s5972_s0 + %s5059_s15]]   ;;  %s5063_s15 = smov 23  }
  0x27   :  { %s5206_s29 = sld [smem:[%s5972_s0 + %s5060_s22]]   ;;  %s5064_s22 = smov 24  }
  0x28   :  { %s5211_s9 = sld [smem:[%s5972_s0 + %s5061_s28]]   ;;  %s5065_s28 = smov 25  }
  0x29   :  { %s5216_s12 = sld [smem:[%s5972_s0 + %s5062_s7]]   ;;  %s5066_s7 = smov 26  }
  0x2b   :  { %6062 = sst [smem:[#allocation23_spill]] %s5196_s17 }
  0x2c   :  { %6063 = sst [smem:[#allocation24_spill]] %s5201_s21 }
  0x2d   :  { %6064 = sst [smem:[#allocation25_spill]] %s5206_s29 }
  0x2e   :  { %6065 = sst [smem:[#allocation26_spill]] %s5211_s9 }
  0x2f   :  { %6066 = sst [smem:[#allocation27_spill]] %s5216_s12 }
  0x30   :  { %s5221_s21 = sld [smem:[%s5972_s0 + %s5063_s15]]   ;;  %s5067_s15 = smov 27  }
  0x31   :  { %s5226_s29 = sld [smem:[%s5972_s0 + %s5064_s22]]   ;;  %s5068_s22 = smov 28  }
  0x32   :  { %s5231_s9 = sld [smem:[%s5972_s0 + %s5065_s28]]   ;;  %s5069_s28 = smov 29  }
  0x33   :  { %s5236_s12 = sld [smem:[%s5972_s0 + %s5066_s7]]   ;;  %s5070_s7 = smov 30  }
  0x36   :  { %6067 = sst [smem:[#allocation28_spill]] %s5221_s21 }
  0x37   :  { %6068 = sst [smem:[#allocation29_spill]] %s5226_s29 }
  0x38   :  { %6069 = sst [smem:[#allocation30_spill]] %s5231_s9 }
  0x39   :  { %6070 = sst [smem:[#allocation31_spill]] %s5236_s12 }
  0x3a   :  { %s5241_s21 = sld [smem:[%s5972_s0 + %s5067_s15]]   ;;  %s5071_s15 = smov 31  }
  0x3b   :  { %s5246_s29 = sld [smem:[%s5972_s0 + %s5068_s22]]   ;;  %s5072_s22 = smov 32  }
  0x3c   :  { %s5251_s9 = sld [smem:[%s5972_s0 + %s5069_s28]]   ;;  %s5073_s28 = smov 33  }
  0x3d   :  { %s5256_s12 = sld [smem:[%s5972_s0 + %s5070_s7]]   ;;  %s5074_s7 = smov 34  }
  0x40   :  { %6071 = sst [smem:[#allocation32_spill]] %s5241_s21 }
  0x41   :  { %6072 = sst [smem:[#allocation33_spill]] %s5246_s29 }
  0x42   :  { %6073 = sst [smem:[#allocation34_spill]] %s5251_s9 }
  0x43   :  { %6074 = sst [smem:[#allocation35_spill]] %s5256_s12 }
  0x44   :  { %s5261_s21 = sld [smem:[%s5972_s0 + %s5071_s15]]   ;;  %s5075_s15 = smov 35  }
  0x45   :  { %s5266_s29 = sld [smem:[%s5972_s0 + %s5072_s22]]   ;;  %s5076_s22 = smov 36  }
  0x46   :  { %s5271_s9 = sld [smem:[%s5972_s0 + %s5073_s28]]   ;;  %s5077_s28 = smov 37  }
  0x47   :  { %s5276_s12 = sld [smem:[%s5972_s0 + %s5074_s7]]   ;;  %s5078_s7 = smov 38  }
  0x4a   :  { %6075 = sst [smem:[#allocation36_spill]] %s5261_s21 }
  0x4b   :  { %6076 = sst [smem:[#allocation37_spill]] %s5266_s29 }
  0x4c   :  { %6077 = sst [smem:[#allocation38_spill]] %s5271_s9 }
  0x4d   :  { %6078 = sst [smem:[#allocation39_spill]] %s5276_s12 }
  0x4e   :  { %s5281_s21 = sld [smem:[%s5972_s0 + %s5075_s15]]   ;;  %s5079_s15 = smov 39  }
  0x4f   :  { %s5286_s29 = sld [smem:[%s5972_s0 + %s5076_s22]]   ;;  %s5080_s22 = smov 40  }
  0x50   :  { %s5291_s9 = sld [smem:[%s5972_s0 + %s5077_s28]]   ;;  %s5081_s28 = smov 41  }
  0x51   :  { %s5296_s12 = sld [smem:[%s5972_s0 + %s5078_s7]]  }
  0x54   :  { %6079 = sst [smem:[#allocation40_spill]] %s5281_s21 }
  0x55   :  { %6080 = sst [smem:[#allocation41_spill]] %s5286_s29 }
  0x56   :  { %6081 = sst [smem:[#allocation42_spill]] %s5291_s9 }
  0x57   :  { %s5301_s21 = sld [smem:[%s5972_s0 + %s5079_s15]]  }
  0x58   :  { %s5306_s29 = sld [smem:[%s5972_s0 + %s5080_s22]]  }
  0x59   :  { %s5311_s9 = sld [smem:[%s5972_s0 + %s5081_s28]]  }
  0x5d   :  { %6082 = sst [smem:[#allocation43_spill]] %s5301_s21 }
  0x5e   :  { %6083 = sst [smem:[#allocation44_spill]] %s5306_s29 }
  0x5f   :  { %6084 = sst [smem:[#allocation45_spill]] %s5311_s9 }
  0x60   :  { %88 = vsyncpa [#allocation3], 0 }
  0x61   :  { %90 = vsyncpa [#allocation3 + $0x1], 0  ;;  %s5313_s7 = smov 0   ;;  %s5315_s10 = smov 0  }
  0x62   :  { %s5317_s11 = smov 0   ;;  %s5319_s15 = smov 0  }
  0x63 LB: > { %s6085_s30 = sld [smem:[#allocation17_spill]]  ;;  %s5334_s0 = sadd.s32 4294967295, %s5039_s15   ;;  %s5035_s11 = sphi %s5317_s11, %s6166_s11   ;;  %s5031_s10 = sphi %s5315_s10, %s6165_s10   ;;  %s5027_s7 = sphi %s5313_s7, %s6164_s7   ;;  %s5039_s15 = sphi %s5319_s15, %s6163_s15  }
  0x64   : > { %s6086_s24 = sld [smem:[#allocation16_spill]]  ;;  %s4297_s16 = sadd.s32 4294967294, %s5039_s15  }
  0x65   : > { %s6087_s17 = sld [smem:[#allocation23_spill]]  ;;  %s5338_s18 = sadd.s32 1, %s5039_s15  }
  0x66   : > { %s6088_s6 = sld [smem:[#allocation18_spill]]  ;;  %s989_s22 = sadd.s32 1, %s5035_s11 }
  0x67   : > { %s6089_s4 = sld [smem:[#allocation22_spill]]  ;;  %s986_s23 = ssub.s32 %s5039_s15, %s5338_s18 }
  0x68   : > { %s6090_s19 = sld [smem:[#allocation15_spill]]  ;;  %p999_p0 = scmp.ne.s32.totalorder %s5035_s11, %s5031_s10 }
  0x69   : > { %s6091_s14 = sld [smem:[#allocation14_spill]]  ;;  %p987_p1 = scmp.eq.s32.totalorder %s986_s23, 0 }
  0x6a   : > { %s6092_s27 = sld [smem:[#allocation21_spill]]  ;;  %p1000_p2 = scmp.eq.s32.totalorder %s5334_s0, 1 }
  0x6b   : > { %s6093_s20 = sld [smem:[#allocation20_spill]]  ;;  %p1005_p3 = scmp.ne.s32.totalorder %s5031_s10, %s5027_s7 }
  0x6c   : > { %s6094_s8 = sld [smem:[#allocation13_spill]]  ;;  %p1006_p4 = scmp.eq.s32.totalorder %s4297_s16, 1 }
  0x6d   : > { %s6095_s3 = sld [smem:[#allocation12_spill]]  ;;  %p5351_p5 = por %p1000_p2, %p999_p0 }
  0x6e   : > { %6096 = sst [smem:[#allocation46_spill]] %s5027_s7  ;;  %p5355_p6 = por %p1006_p4, %p1005_p3 }
  0x6f   : > { %6097 = sst [smem:[#allocation47_spill]] %s5031_s10  ;;  %p4300_p7 = scmp.ge.s32.totalorder %s5039_s15, 1 }
  0x70   : > { %6098 = sst [smem:[#allocation48_spill]] %s5035_s11  ;;  %p1167_p8 = scmp.lt.s32.totalorder %s5039_s15, 3 }
  0x71   : > { %6099 = sst [smem:[#allocation49_spill]] %s5039_s15 }
  0x72   : > { %6100 = sst [smem:[#allocation50_spill]] %s5334_s0  ;;  %p1168_p9 = pnand %p4300_p7, %p1167_p8 }
  0x73   : > { %6101 = sst [smem:[#allocation51_spill]] %s5338_s18  ;;  %p1282_p10 = scmp.lt.s32.totalorder (!%p1168_p9), %s5334_s0, 1 }
  0x74   : > { %s5349_s26 = scalar_select %p987_p1, %s5035_s11, %s989_s22  }
  0x75   : > { %s6103_s28 = scalar_select %p5351_p5, 1, 0 }
  0x76   : > { %6102 = sst [smem:[#allocation52_spill]] %s5349_s26  ;;  %1171 = sbr.rel (%p1168_p9) target bundleno = 9846 (0x2676), region = 184 }
  0x77   : > { %6104 = sst [smem:[#allocation53_spill]] %s6103_s28  ;;  %s5991_s23 = smov (!%p1168_p9), 104  }
  0x78   : > { %s6105_s1 = scalar_select %p5355_p6, 1, 0 }
  0x79   : > { %s6107_s25 = sld [smem:[#allocation10_spill]] (!%p1168_p9)  ;;  %s5997_s26 = smov (!%p1168_p9), 112  }
  0x7a   : > { %6106 = sst [smem:[#allocation54_spill]] %s6105_s1  ;;  %s6122_s18 = smov (!%p1168_p9), 8  }
  0x7b   : > { %s6108_s5 = sld [smem:[#allocation5_spill]]  ;;  %vm1310_vm0 = vcmask 261120   ;;  %v5082_v5 = vmov 32.0   ;;  %v5083_v17 = vmov 31.0   ;;  %v4642_v18 = vld [vmem:[%s6095_s3 + $0x8] sm:$0xff]  ;;  %v4641_v20 = vld [vmem:[%s6095_s3] sm:$0xff] }
  0x7c   : > { %s1283_s2 = scalar_select %p1282_p10, %s5334_s0, 1  ;;  %4829 = vrcp.f32 %v5082_v5  ;;  %1388 = vmatpush.bf16.msra.mxu0 %v4642_v18  ;;  %v4785_v39 = vld [vmem:[%s6093_s20] ss:$0 sm:$0xff]  ;;  %vm1399_vm5 = vcmask 64512   ;;  %vm1438_vm6 = vcmask 1043456   ;;  %vm1642_vm7 = vcmask 130048  }
  0x7d   : > { %4831 = vrcp.f32 %v5083_v17  ;;  %v4786_v41 = vld [vmem:[%s6092_s27] ss:$0 sm:$0xff]  ;;  %s6109_s13 = sld [smem:[#allocation7_spill]]  ;;  %vm1644_vm8 = vcmask 195584   ;;  %vm1794_vm11 = vcmask 523264   ;;  %s6123_s1 = smov 24  }
  0x7e   : > { %s5363_s16 = sshll.u32 %s1283_s2, 3  ;;  %v4787_v46 = vld [vmem:[%s6094_s8] ss:$0 sm:$0xff]  ;;  %s6017_s2 = smov 120  }
  0x7f   : > { %v1305_v0 = vld [vmem:[%s6107_s25] sm:$0xff]  ;;  %s5999_s25 = smov 88   ;;  %s6121_s11 = sld [smem:[#allocation11_spill]] }
  0x80   : > { %1389 = vmatpush.bf16.msra.mxu0 %v4641_v20  ;;  %s6124_s7 = smov 16   ;;  %s6130_s28 = sld [smem:[#allocation27_spill]] }
  0x81   : > { %s1285_s22 = scalar_lea.vmem %s6108_s5, %s5363_s16  ;;  %s5993_s5 = smov 72  }
  0x82   : > { %v1303_v1 = vld [vmem:[%s1285_s22] sm:$0xff]  ;;  %v4830_v6 = vpop.eup %4829  ;;  %s6019_s22 = smov 96   ;;  %s6142_s29 = sld [smem:[#allocation8_spill]] }
  0x83   : > { %v1304_v2 = vmul.f32 5.656854, %v1303_v1  ;;  %v1315_v7 = vmul.f32 32.0, %v4830_v6  ;;  %vm1319_vm1 = vweird.f32 %v4830_v6  ;;  %v4832_v19 = vpop.eup %4831  ;;  %s6146_s21 = sld [smem:[#allocation36_spill]] }
  0x84   : > { %v1328_v21 = vmul.f32 31.0, %v4832_v19  ;;  %vm1332_vm2 = vweird.f32 %v4832_v19  ;;  %s6147_s0 = sld [smem:[#allocation42_spill]] }
  0x85   : > { %v5368_v3 = vadd.f32 %v1305_v0, %v1304_v2  ;;  %v1316_v8 = vsub.f32 1.0, %v1315_v7  ;;  %s6148_s10 = sld [smem:[#allocation35_spill]] }
  0x86   : > { %v1329_v22 = vsub.f32 1.0, %v1328_v21 }
  0x87   : > { %v1311_v4 = vsel %vm1310_vm0, %v5368_v3, 0.0  ;;  %v1317_v9 = vmul.f32 %v4830_v6, %v1316_v8 }
  0x88   : > { %1312 = vadd.xlane.f32.xlu0 %v1311_v4  ;;  %v1330_v23 = vmul.f32 %v4832_v19, %v1329_v22  ;;  %s1297_s9 = scalar_lea.vmem %s6142_s29, %s5363_s16  ;;  %s6144_s29 = sld [smem:[#allocation33_spill]] }
  0x89   : > { %v1318_v10 = vadd.f32 %v4830_v6, %v1317_v9 }
  0x8a   : > { %v1331_v24 = vadd.f32 %v4832_v19, %v1330_v23 }
  0x8b   : > { %v5372_v11 = vsel %vm1319_vm1, %v4830_v6, %v1318_v10 }
  0x8c   : > { %v5379_v25 = vsel %vm1332_vm2, %v4832_v19, %v1331_v24 }
  0xfb   : > { %v1313_v12 = vpop.xlane.xlu0 %1312 }
  0xfc   : > { %v1321_v13 = vmul.f32 %v5372_v11, %v1313_v12 }
  0xfe   : > { %v1322_v14 = vsub.f32 %v5368_v3, %v1321_v13 }
 0x100   : > { %v1323_v15 = vmul.f32 %v1322_v14, %v1322_v14  ;;  %v1352_v40 = vmul.f32 %v4785_v39, %v1322_v14 }
 0x102   : > { %v1324_v16 = vsel %vm1310_vm0, %v1323_v15, 0.0 }
 0x103   : > { %1325 = vadd.xlane.f32.xlu0 %v1324_v16 }
 0x176   : > { %v1326_v26 = vpop.xlane.xlu0 %1325 }
 0x177   : > { %v1334_v27 = vmul.f32 %v5379_v25, %v1326_v26 }
 0x179   : > { %4833 = vrsqrt.f32 %v1334_v27  ;;  %vm1342_vm3 = vcmp.eq.f32.partialorder %v1334_v27, inf  ;;  %v1345_v35 = vand.u32 2147483648, %v1334_v27  ;;  %vm1344_vm4 = vcmp.eq.f32.partialorder %v1334_v27, 0.0 }
 0x17f   : > { %v4834_v28 = vpop.eup %4833 }
 0x180   : > { %v1336_v29 = vmul.f32 %v4834_v28, %v1334_v27 }
 0x182   : > { %v1337_v30 = vmul.f32 %v4834_v28, %v1336_v29 }
 0x184   : > { %v1338_v31 = vmul.f32 0.5, %v1337_v30 }
 0x186   : > { %v1339_v32 = vsub.f32 1.5, %v1338_v31 }
 0x188   : > { %v1340_v33 = vmul.f32 %v4834_v28, %v1339_v32 }
 0x18a   : > { %v1341_v34 = vmul.f32 %v1340_v33, %v1334_v27 }
 0x18c   : > { %v1343_v36 = vsel %vm1342_vm3, %v1334_v27, %v1341_v34 }
 0x18d   : > { %v1346_v37 = vsel %vm1344_vm4, %v1345_v35, %v1343_v36 }
 0x18e   : > { %v1347_v38 = vadd.f32 1e-06, %v1346_v37 }
 0x190   : > { %4835 = vrcp.f32 %v1347_v38 }
 0x196   : > { %v4836_v42 = vpop.eup %4835 }
 0x197   : > { %v1353_v43 = vmul.f32 %v4836_v42, %v1352_v40 }
 0x199   : > { %v1357_v44 = vadd.f32 %v4786_v41, %v1353_v43 }
 0x19b   : > { %v1363_v45 = vpack.c.bf16 %v1357_v44, %v1357_v44 }
 0x19d   : > { %4315 = vmatmul.msk.bf16.vlgmr.msra.gmra.mxu0 %vm1310_vm0, %v1363_v45 }
 0x21a   : > { %v1391_v47 = vpop.f32.mrf.mxu0 }
 0x21b   : > { %v1392_v48 = vadd.f32 %v4787_v46, %v1391_v47 }
 0x21d   : > { %v5386_v49 = vpack.c.bf16 %v1392_v48, %v1392_v48 }
 0x21f   : > { %1571 = vrot.lane.b32.xlu0 %v5386_v49, %s5991_s23  ;;  %1455 = vrot.lane.b32.xlu2 %v5386_v49, %s6017_s2  ;;  %s5995_s23 = smov 80  }
 0x220   : > { %1397 = vrot.lane.b32.xlu1 %v5386_v49, %s6019_s22 }
 0x222   : > { %v1393_v50 = vpop.f32.mrf.mxu0 }
 0x227   : > { %1573 = vrot.lane.b32.xlu2 %v5386_v49, %s5993_s5  ;;  %s1293_s5 = scalar_lea.vmem %s6109_s13, %s5363_s16  ;;  %s6118_s13 = smov 64  }
 0x228   : > { %1457 = vrot.lane.b32.xlu1 %v5386_v49, %s5999_s25  ;;  %v5413_v63 = vld [vmem:[%s1293_s5] sm:$0xff]  ;;  %s6003_s5 = smov 64   ;;  %s6001_s25 = smov 48  }
 0x22f   : > { %1513 = vrot.lane.b32.xlu2 %v5386_v49, %s5997_s26  ;;  %s6005_s26 = smov 40  }
 0x230   : > { %1515 = vrot.lane.b32.xlu1 %v5386_v49, %s5995_s23  ;;  %s6013_s23 = smov 56  }
 0x279   : > { %v1456_v51 = vpop.permute.xlu2 %1455 }
 0x281   : > { %v1574_v54 = vpop.permute.xlu2 %1573 }
 0x282   : > { %v1579_v57 = vsel %vm1399_vm5, %v1574_v54, 0 }
 0x289   : > { %v1514_v60 = vpop.permute.xlu2 %1513 }
 0x291   : > { %v1572_v61 = vpop.permute.xlu0 %1571 }
 0x292   : > { %v1398_v52 = vpop.permute.xlu1 %1397 }
 0x293   : > { %v1404_v53 = vsel %vm1399_vm5, %v1398_v52, 0 }
 0x294   : > { %1413 = vmatpush.bf16.xpose.msra.mxu1 %v1404_v53 }
 0x29a   : > { %v1458_v55 = vpop.permute.xlu1 %1457 }
 0x29b   : > { %4316 = vmatmul.msk.bf16.vlgmr.msra.gmra.mxu1 %vm1399_vm5, %v5386_v49  ;;  %v1463_v56 = vsel %vm1399_vm5, %v1458_v55, 0 }
 0x29c   : > { %1472 = vmatpush.bf16.xpose.msra.mxu3 %v1463_v56 }
 0x2a2   : > { %v1516_v58 = vpop.permute.xlu1 %1515 }
 0x2a3   : > { %4318 = vmatmul.msk.bf16.vlgmr.msra.gmra.mxu3 %vm1399_vm5, %v1456_v51  ;;  %v1521_v59 = vsel %vm1399_vm5, %v1516_v58, 0 }
 0x2a4   : > { %1588 = vmatpush.bf16.xpose.msrb.mxu3 %v1579_v57  ;;  %1530 = vmatpush.bf16.xpose.msrb.mxu0 %v1521_v59 }
 0x2ab   : > { %4320 = vmatmul.msk.bf16.vlgmr.msrb.gmra.mxu0 %vm1399_vm5, %v1514_v60 }
 0x2b3   : > { %4322 = vmatmul.msk.bf16.vlgmr.msrb.gmra.mxu3 %vm1399_vm5, %v1572_v61 }
 0x318   : > { %v1415_v62 = vpop.f32.mrf.mxu1 }
 0x319   : > { %v1419_v0 = vmul.f32 0.35355338, %v1415_v62 }
 0x31b   : > { %v1420_v1 = vadd.f32 %v1419_v0, %v5413_v63 }
 0x31d   : > { %v1421_v2 = vsel %vm1399_vm5, %v1420_v1, -inf }
 0x31e   : > { %1422 = vmax.xlane.f32.xlu1 %v1421_v2 }
 0x320   : > { %v1417_v4 = vpop.f32.mrf.mxu1 }
 0x326   : > { %v1474_v5 = vpop.f32.mrf.mxu3 }
 0x327   : > { %v1478_v6 = vmul.f32 0.35355338, %v1474_v5 }
 0x328   : > { %v1532_v7 = vpop.f32.mrf.mxu0 }
 0x329   : > { %v1479_v8 = vadd.f32 %v1478_v6, %v5413_v63  ;;  %v1536_v9 = vmul.f32 0.35355338, %v1532_v7 }
 0x32b   : > { %v1480_v10 = vsel %vm1399_vm5, %v1479_v8, -inf  ;;  %v1537_v13 = vadd.f32 %v1536_v9, %v5413_v63 }
 0x32c   : > { %1481 = vmax.xlane.f32.xlu2 %v1480_v10 }
 0x32d   : > { %v1538_v15 = vsel %vm1399_vm5, %v1537_v13, -inf }
 0x32e   : > { %v1476_v12 = vpop.f32.mrf.mxu3 }
 0x330   : > { %v1534_v14 = vpop.f32.mrf.mxu0 }
 0x331   : > { %v4643_v14 = vld [vmem:[%s6091_s14] sm:$0xff] }
 0x334   : > { %1539 = vmax.xlane.f32.xlu2 %v1538_v15 }
 0x336   : > { %v1590_v16 = vpop.f32.mrf.mxu3 }
 0x337   : > { %v1594_v17 = vmul.f32 0.35355338, %v1590_v16 }
 0x339   : > { %v1595_v18 = vadd.f32 %v1594_v17, %v5413_v63 }
 0x33b   : > { %v1596_v19 = vsel %vm1399_vm5, %v1595_v18, -inf }
 0x33c   : > { %1597 = vmax.xlane.f32.xlu0 %v1596_v19 }
 0x33e   : > { %v1592_v20 = vpop.f32.mrf.mxu3 }
 0x34c   : > { %1433 = vrot.lane.b32.xlu2 %v5386_v49, %s6003_s5  ;;  %s6009_s5 = smov 24  }
 0x350   : > { %1492 = vrot.lane.b32.xlu0 %v5386_v49, %s6013_s23  ;;  %s6113_s23 = smov 80  }
 0x354   : > { %1608 = vrot.lane.b32.xlu2 %v5386_v49, %s6005_s26  ;;  %s6007_s26 = smov 16  }
 0x358   : > { %1550 = vrot.lane.b32.xlu0 %v5386_v49, %s6001_s25  ;;  %s6011_s25 = smov 8  }
 0x391   : > { %v1423_v21 = vpop.xlane.xlu1 %1422 }
 0x392   : > { %v1424_v22 = vsub.f32 %v1420_v1, %v1423_v21 }
 0x394   : > { %v1425_v23 = vmul.f32 1.442695, %v1424_v22  ;;  %v4788_v22 = vld [vmem:[%s6090_s19] ss:$0 sm:$0xff] }
 0x396   : > { %4837 = vpow2.f32 %v1425_v23 }
 0x39c   : > { %v4838_v24 = vpop.eup %4837 }
 0x39d   : > { %v1427_v26 = vsel %vm1399_vm5, %v4838_v24, 0.0 }
 0x39e   : > { %1428 = vadd.xlane.f32.xlu1 %v1427_v26 }
 0x39f   : > { %v1482_v27 = vpop.xlane.xlu2 %1481 }
 0x3a0   : > { %v1483_v28 = vsub.f32 %v1479_v8, %v1482_v27 }
 0x3a2   : > { %v1484_v29 = vmul.f32 1.442695, %v1483_v28 }
 0x3a4   : > { %4839 = vpow2.f32 %v1484_v29 }
 0x3a7   : > { %v1540_v30 = vpop.xlane.xlu2 %1539 }
 0x3a8   : > { %v1541_v37 = vsub.f32 %v1537_v13, %v1540_v30  ;;  %v4644_v13 = vld [vmem:[%s6091_s14 + $0x8] sm:$0xff] }
 0x3a9   : > { %1676 = vmatpush.bf16.msra.mxu0 %v4644_v13 }
 0x3aa   : > { %v4840_v31 = vpop.eup %4839  ;;  %v1542_v39 = vmul.f32 1.442695, %v1541_v37  ;;  %v4650_v37 = vld [vmem:[%s6088_s6 + $0x18] sm:$0xff] }
 0x3ab   : > { %v1486_v32 = vsel %vm1399_vm5, %v4840_v31, 0.0  ;;  %1802 = vmatpush.bf16.msra.mxu3 %v4650_v37  ;;  %v4795_v37 = vld [vmem:[%s6094_s8 + $0x1] ss:$0 sm:$0xff]  ;;  %s6115_s8 = smov 104  }
 0x3ac   : > { %1487 = vadd.xlane.f32.xlu1 %v1486_v32 }
 0x3ad   : > { %1677 = vmatpush.bf16.msra.mxu0 %v4643_v14 }
 0x3af   : > { %v1598_v33 = vpop.xlane.xlu0 %1597  ;;  %v1434_v34 = vpop.permute.xlu2 %1433 }
 0x3b0   : > { %v1599_v35 = vsub.f32 %v1595_v18, %v1598_v33  ;;  %v1440_v36 = vsel %vm1438_vm6, %v1434_v34, 0  ;;  %v4646_v34 = vld [vmem:[%s6086_s24 + $0x8] sm:$0xff] }
 0x3b1   : > { %1449 = vmatpush.bf16.msra.mxu2 %v1440_v36 }
 0x3b2   : > { %v1600_v38 = vmul.f32 1.442695, %v1599_v35  ;;  %v4645_v35 = vld [vmem:[%s6086_s24] sm:$0xff] }
 0x3b4   : > { %4841 = vpow2.f32 %v1600_v38 }
 0x3b5   : > { %4843 = vpow2.f32 %v1542_v39  ;;  %v4649_v39 = vld [vmem:[%s6088_s6 + $0x10] sm:$0xff] }
 0x3b6   : > { %1803 = vmatpush.bf16.msra.mxu3 %v4649_v39 }
 0x3b7   : > { %v1609_v51 = vpop.permute.xlu2 %1608 }
 0x3b8   : > { %v1614_v53 = vsel %vm1438_vm6, %v1609_v51, 0 }
 0x3ba   : > { %v4842_v40 = vpop.eup %4841 }
 0x3bb   : > { %v1602_v41 = vsel %vm1399_vm5, %v4842_v40, 0.0  ;;  %v4844_v42 = vpop.eup %4843 }
 0x3bc   : > { %1603 = vadd.xlane.f32.xlu1 %v1602_v41  ;;  %v1544_v45 = vsel %vm1399_vm5, %v4844_v42, 0.0 }
 0x3c2   : > { %v1493_v43 = vpop.permute.xlu0 %1492 }
 0x3c3   : > { %v1498_v44 = vsel %vm1438_vm6, %v1493_v43, 0 }
 0x3c4   : > { %1507 = vmatpush.bf16.msrb.mxu2 %v1498_v44  ;;  %1545 = vadd.xlane.f32.xlu1 %v1544_v45 }
 0x3ca   : > { %v1551_v46 = vpop.permute.xlu0 %1550 }
 0x3cb   : > { %v1556_v47 = vsel %vm1438_vm6, %v1551_v46, 0 }
 0x3cc   : > { %1565 = vmatpush.bf16.msrb.mxu1 %v1556_v47 }
 0x3d0   : > { %1749 = vmatpush.bf16.msra.mxu1 %v4646_v34 }
 0x3d4   : > { %1750 = vmatpush.bf16.msra.mxu1 %v4645_v35 }
 0x411   : > { %v1429_v48 = vpop.xlane.xlu1 %1428 }
 0x412   : > { %4845 = vrcp.f32 %v1429_v48 }
 0x418   : > { %v4846_v49 = vpop.eup %4845 }
 0x419   : > { %v1431_v50 = vmul.f32 %v4846_v49, %v4838_v24 }
 0x41b   : > { %v1432_v52 = vpack.c.bf16 %v1431_v50, %v1431_v50  ;;  %v4789_v50 = vld [vmem:[%s6089_s4] ss:$0 sm:$0xff] }
 0x41d   : > { %4317 = vmatmul.msk.bf16.vlgmr.msra.gmra.mxu2 %vm1399_vm5, %v1432_v52  ;;  %v4790_v52 = vld [vmem:[%s6087_s17] ss:$0 sm:$0xff] }
 0x41e   : > { %1623 = vmatpush.bf16.msra.mxu2 %v1614_v53 }
 0x41f   : > { %v1488_v54 = vpop.xlane.xlu1 %1487 }
 0x420   : > { %4847 = vrcp.f32 %v1488_v54 }
 0x426   : > { %v4848_v55 = vpop.eup %4847 }
 0x427   : > { %v1490_v56 = vmul.f32 %v4848_v55, %v4840_v31 }
 0x429   : > { %v1491_v57 = vpack.c.bf16 %v1490_v56, %v1490_v56 }
 0x42d   : > { %4319 = vmatmul.msk.bf16.vlgmr.msrb.gmra.mxu2 %vm1399_vm5, %v1491_v57  ;;  %v4648_v57 = vld [vmem:[%s6088_s6 + $0x8] sm:$0xff] }
 0x42e   : > { %1804 = vmatpush.bf16.msra.mxu3 %v4648_v57 }
 0x42f   : > { %v1604_v58 = vpop.xlane.xlu1 %1603 }
 0x430   : > { %4849 = vrcp.f32 %v1604_v58  ;;  %v4647_v58 = vld [vmem:[%s6088_s6] sm:$0xff] }
 0x432   : > { %1805 = vmatpush.bf16.msra.mxu3 %v4647_v58 }
 0x436   : > { %v4850_v59 = vpop.eup %4849 }
 0x437   : > { %v1606_v60 = vmul.f32 %v4850_v59, %v4842_v40  ;;  %v1546_v61 = vpop.xlane.xlu1 %1545  ;;  %v4791_v59 = vld [vmem:[%s6085_s30] ss:$0 sm:$0xff] }
 0x438   : > { %4851 = vrcp.f32 %v1546_v61 }
 0x439   : > { %v1607_v62 = vpack.c.bf16 %v1606_v60, %v1606_v60 }
 0x43d   : > { %4323 = vmatmul.msk.bf16.vlgmr.msra.gmra.mxu2 %vm1399_vm5, %v1607_v62 }
 0x43e   : > { %v4852_v0 = vpop.eup %4851 }
 0x43f   : > { %v1548_v1 = vmul.f32 %v4852_v0, %v4844_v42 }
 0x441   : > { %v1549_v2 = vpack.c.bf16 %v1548_v1, %v1548_v1 }
 0x443   : > { %4321 = vmatmul.msk.bf16.vlgmr.msrb.gmra.mxu1 %vm1399_vm5, %v1549_v2 }
 0x4a0   : > { %v1451_v4 = vpop.f32.mrf.mxu2 }
 0x4a8   : > { %v1453_v5 = vpop.f32.mrf.mxu2 }
 0x4b0   : > { %v1509_v6 = vpop.f32.mrf.mxu2 }
 0x4b1   : > { %1630 = vrot.lane.b32.xlu1 %v1509_v6, %s6011_s25  ;;  %s6112_s25 = smov 112  }
 0x4b8   : > { %v1511_v7 = vpop.f32.mrf.mxu2 }
 0x4c0   : > { %v1567_v8 = vpop.f32.mrf.mxu1  ;;  %v1625_v9 = vpop.f32.mrf.mxu2 }
 0x4c1   : > { %1638 = vrot.lane.b32.xlu0 %v1625_v9, %s6009_s5  ;;  %1634 = vrot.lane.b32.xlu2 %v1567_v8, %s6007_s26  ;;  %s6110_s26 = sld [smem:[#allocation19_spill]]  ;;  %s6111_s5 = smov 88  }
 0x4c7   : > { %v4792_v2 = vld [vmem:[%s6110_s26] ss:$0 sm:$0xff] }
 0x4c8   : > { %v1569_v10 = vpop.f32.mrf.mxu1  ;;  %v1627_v12 = vpop.f32.mrf.mxu2 }
 0x51b   : > { %v1635_v17 = vpop.permute.xlu2 %1634 }
 0x523   : > { %v1631_v15 = vpop.permute.xlu1 %1630 }
 0x524   : > { %v1641_v16 = vsel %vm1399_vm5, %v1451_v4, %v1631_v15  ;;  %v4652_v15 = vld [vmem:[%s6095_s3 + $0x18] sm:$0xff] }
 0x525   : > { %v1643_v19 = vsel %vm1642_vm7, %v1641_v16, %v1635_v17  ;;  %1881 = vmatpush.bf16.msrb.mxu2 %v4652_v15  ;;  %v4651_v16 = vld [vmem:[%s6095_s3 + $0x10] sm:$0xff]  ;;  %s6114_s3 = smov 72  }
 0x529   : > { %1882 = vmatpush.bf16.msrb.mxu2 %v4651_v16 }
 0x533   : > { %v1639_v18 = vpop.permute.xlu0 %1638 }
 0x534   : > { %v1645_v20 = vsel %vm1644_vm8, %v1643_v19, %v1639_v18 }
 0x535   : > { %v1651_v21 = vpack.c.bf16 %v1645_v20, %v1645_v20 }
 0x537   : > { %4332 = vmatmul.msk.bf16.vlgmr.msra.gmra.mxu0 %vm1310_vm0, %v1651_v21 }
 0x5b4   : > { %v1679_v23 = vpop.f32.mrf.mxu0 }
 0x5b5   : > { %v1680_v24 = vadd.f32 %v4788_v22, %v1679_v23 }
 0x5b7   : > { %v1683_v26 = vadd.f32 %v1680_v24, %v5368_v3 }
 0x5b9   : > { %v1686_v27 = vsel %vm1310_vm0, %v1683_v26, 0.0 }
 0x5ba   : > { %1687 = vadd.xlane.f32.xlu2 %v1686_v27 }
 0x5bc   : > { %v1681_v28 = vpop.f32.mrf.mxu0 }
 0x62d   : > { %v1688_v29 = vpop.xlane.xlu2 %1687 }
 0x62e   : > { %v1689_v30 = vmul.f32 %v1688_v29, %v5372_v11 }
 0x630   : > { %v1690_v31 = vsub.f32 %v1683_v26, %v1689_v30 }
 0x632   : > { %v1691_v32 = vmul.f32 %v1690_v31, %v1690_v31  ;;  %v1713_v51 = vmul.f32 %v4789_v50, %v1690_v31  ;;  %v4793_v31 = vld [vmem:[%s6093_s20 + $0x1] ss:$0 sm:$0xff]  ;;  %s6119_s20 = smov 48  }
 0x634   : > { %v1692_v33 = vsel %vm1310_vm0, %v1691_v32, 0.0 }
 0x635   : > { %1693 = vadd.xlane.f32.xlu0 %v1692_v33  ;;  %v4794_v33 = vld [vmem:[%s6092_s27 + $0x1] ss:$0 sm:$0xff]  ;;  %s6120_s27 = sld [smem:[#allocation6_spill]] }
 0x63b   : > { %s1289_s15 = scalar_lea.vmem %s6120_s27, %s5363_s16  ;;  %s6125_s27 = sld [smem:[#allocation26_spill]] }
 0x6a8   : > { %v1694_v36 = vpop.xlane.xlu0 %1693 }
 0x6a9   : > { %v1695_v3 = vmul.f32 %v1694_v36, %v5379_v25 }
 0x6ab   : > { %4853 = vrsqrt.f32 %v1695_v3  ;;  %vm1703_vm9 = vcmp.eq.f32.partialorder %v1695_v3, inf  ;;  %v1706_v46 = vand.u32 2147483648, %v1695_v3  ;;  %vm1705_vm10 = vcmp.eq.f32.partialorder %v1695_v3, 0.0 }
 0x6b1   : > { %v4854_v38 = vpop.eup %4853 }
 0x6b2   : > { %v1697_v40 = vmul.f32 %v4854_v38, %v1695_v3 }
 0x6b4   : > { %v1698_v41 = vmul.f32 %v4854_v38, %v1697_v40 }
 0x6b6   : > { %v1699_v42 = vmul.f32 0.5, %v1698_v41 }
 0x6b8   : > { %v1700_v43 = vsub.f32 1.5, %v1699_v42 }
 0x6ba   : > { %v1701_v44 = vmul.f32 %v4854_v38, %v1700_v43 }
 0x6bc   : > { %v1702_v45 = vmul.f32 %v1701_v44, %v1695_v3 }
 0x6be   : > { %v1704_v47 = vsel %vm1703_vm9, %v1695_v3, %v1702_v45 }
 0x6bf   : > { %v1707_v48 = vsel %vm1705_vm10, %v1706_v46, %v1704_v47 }
 0x6c0   : > { %v1708_v49 = vadd.f32 1e-06, %v1707_v48 }
 0x6c2   : > { %4855 = vrcp.f32 %v1708_v49 }
 0x6c8   : > { %v4856_v53 = vpop.eup %4855 }
 0x6c9   : > { %v1714_v54 = vmul.f32 %v4856_v53, %v1713_v51 }
 0x6cb   : > { %v1718_v55 = vadd.f32 %v4790_v52, %v1714_v54 }
 0x6cd   : > { %v1724_v56 = vpack.c.bf16 %v1718_v55, %v1718_v55 }
 0x6cf   : > { %4341 = vmatmul.msk.bf16.vlgmr.msra.gmra.mxu1 %vm1310_vm0, %v1724_v56 }
 0x74c   : > { %v1752_v60 = vpop.f32.mrf.mxu1 }
 0x74d   : > { %v1753_v61 = vadd.f32 %v4791_v59, %v1752_v60 }
 0x74f   : > { %v1756_v62 = vmax.f32 %v1753_v61, 0.0 }
 0x751   : > { %v1766_v0 = vpack.c.bf16 %v1756_v62, %v1756_v62 }
 0x753   : > { %4358 = vmatmul.msk.bf16.vlgmr.msra.gmra.mxu3 %vm1794_vm11, %v1766_v0 }
 0x754   : > { %v1754_v1 = vpop.f32.mrf.mxu1 }
 0x7d6   : > { %v1807_v4 = vpop.f32.mrf.mxu3 }
 0x7d7   : > { %v1808_v5 = vadd.f32 %v4792_v2, %v1807_v4 }
 0x7d9   : > { %v5470_v6 = vadd.f32 %v1808_v5, %v1683_v26 }
 0x7db   : > { %v1816_v7 = vsel %vm1310_vm0, %v5470_v6, 0.0 }
 0x7dc   : > { %1817 = vadd.xlane.f32.xlu1 %v1816_v7 }
 0x7de   : > { %v1809_v8 = vpop.f32.mrf.mxu3 }
 0x84f   : > { %v1818_v9 = vpop.xlane.xlu1 %1817 }
 0x850   : > { %v1819_v10 = vmul.f32 %v1818_v9, %v5372_v11 }
 0x852   : > { %v1820_v12 = vsub.f32 %v5470_v6, %v1819_v10 }
 0x854   : > { %v1821_v13 = vmul.f32 %v1820_v12, %v1820_v12  ;;  %v1843_v32 = vmul.f32 %v4793_v31, %v1820_v12 }
 0x856   : > { %v1822_v14 = vsel %vm1310_vm0, %v1821_v13, 0.0 }
 0x857   : > { %1823 = vadd.xlane.f32.xlu2 %v1822_v14 }
 0x8ca   : > { %v1824_v17 = vpop.xlane.xlu2 %1823 }
 0x8cb   : > { %v1825_v18 = vmul.f32 %v1824_v17, %v5379_v25 }
 0x8cd   : > { %4857 = vrsqrt.f32 %v1825_v18  ;;  %vm1833_vm12 = vcmp.eq.f32.partialorder %v1825_v18, inf  ;;  %v1836_v27 = vand.u32 2147483648, %v1825_v18  ;;  %vm1835_vm13 = vcmp.eq.f32.partialorder %v1825_v18, 0.0 }
 0x8d3   : > { %v4858_v19 = vpop.eup %4857 }
 0x8d4   : > { %v1827_v20 = vmul.f32 %v4858_v19, %v1825_v18 }
 0x8d6   : > { %v1828_v21 = vmul.f32 %v4858_v19, %v1827_v20 }
 0x8d8   : > { %v1829_v22 = vmul.f32 0.5, %v1828_v21 }
 0x8da   : > { %v1830_v23 = vsub.f32 1.5, %v1829_v22 }
 0x8dc   : > { %v1831_v24 = vmul.f32 %v4858_v19, %v1830_v23 }
 0x8de   : > { %v1832_v26 = vmul.f32 %v1831_v24, %v1825_v18 }
 0x8e0   : > { %v1834_v28 = vsel %vm1833_vm12, %v1825_v18, %v1832_v26 }
 0x8e1   : > { %v1837_v29 = vsel %vm1835_vm13, %v1836_v27, %v1834_v28 }
 0x8e2   : > { %v1838_v30 = vadd.f32 1e-06, %v1837_v29 }
 0x8e4   : > { %4859 = vrcp.f32 %v1838_v30 }
 0x8ea   : > { %v4860_v34 = vpop.eup %4859 }
 0x8eb   : > { %v1844_v35 = vmul.f32 %v4860_v34, %v1843_v32 }
 0x8ed   : > { %v1848_v36 = vadd.f32 %v4794_v33, %v1844_v35 }
 0x8ef   : > { %v1856_v3 = vpack.c.bf16 %v1848_v36, %v1848_v36 }
 0x8f1   : > { %4374 = vmatmul.msk.bf16.vlgmr.msrb.gmra.mxu2 %vm1310_vm0, %v1856_v3 }
 0x974   : > { %v1884_v38 = vpop.f32.mrf.mxu2 }
 0x975   : > { %v1885_v39 = vadd.f32 %v4795_v37, %v1884_v38 }
 0x977   : > { %v5484_v40 = vpack.c.bf16 %v1885_v39, %v1885_v39 }
 0x979   : > { %1890 = vrot.lane.b32.xlu1 %v5484_v40, %s6019_s22  ;;  %1946 = vrot.lane.b32.xlu2 %v5484_v40, %s6017_s2  ;;  %s6116_s2 = smov 56   ;;  %s6117_s22 = smov 40  }
 0x97a   : > { %1948 = vrot.lane.b32.xlu0 %v5484_v40, %s6111_s5 }
 0x97c   : > { %v1886_v41 = vpop.f32.mrf.mxu2 }
 0x981   : > { %2004 = vrot.lane.b32.xlu1 %v5484_v40, %s6112_s25  ;;  %2006 = vrot.lane.b32.xlu2 %v5484_v40, %s6113_s23 }
 0x982   : > { %2064 = vrot.lane.b32.xlu0 %v5484_v40, %s6114_s3 }
 0x98a   : > { %2062 = vrot.lane.b32.xlu0 %v5484_v40, %s6115_s8 }
 0x9d3   : > { %v1947_v42 = vpop.permute.xlu2 %1946 }
 0x9db   : > { %v2007_v43 = vpop.permute.xlu2 %2006 }
 0x9dc   : > { %v2012_v47 = vsel %vm1399_vm5, %v2007_v43, 0 }
 0x9eb   : > { %v1891_v44 = vpop.permute.xlu1 %1890 }
 0x9ec   : > { %v1896_v45 = vsel %vm1399_vm5, %v1891_v44, 0  ;;  %v1949_v46 = vpop.permute.xlu0 %1948 }
 0x9ed   : > { %v1954_v48 = vsel %vm1399_vm5, %v1949_v46, 0  ;;  %1905 = vmatpush.bf16.xpose.msrb.mxu0 %v1896_v45 }
 0x9ee   : > { %1963 = vmatpush.bf16.xpose.msrb.mxu3 %v1954_v48 }
 0x9f3   : > { %v2005_v51 = vpop.permute.xlu1 %2004 }
 0x9f4   : > { %v2065_v49 = vpop.permute.xlu0 %2064  ;;  %4375 = vmatmul.msk.bf16.vlgmr.msrb.gmra.mxu0 %vm1399_vm5, %v5484_v40 }
 0x9f5   : > { %2021 = vmatpush.bf16.xpose.msra.mxu0 %v2012_v47  ;;  %v2070_v50 = vsel %vm1399_vm5, %v2065_v49, 0  ;;  %4377 = vmatmul.msk.bf16.vlgmr.msrb.gmra.mxu3 %vm1399_vm5, %v1947_v42 }
 0x9f6   : > { %2079 = vmatpush.bf16.xpose.msra.mxu3 %v2070_v50 }
 0x9fc   : > { %v2063_v52 = vpop.permute.xlu0 %2062 }
 0xa04   : > { %4379 = vmatmul.msk.bf16.vlgmr.msra.gmra.mxu0 %vm1399_vm5, %v2005_v51 }
 0xa05   : > { %4381 = vmatmul.msk.bf16.vlgmr.msra.gmra.mxu3 %vm1399_vm5, %v2063_v52 }
 0xa71   : > { %v1907_v53 = vpop.f32.mrf.mxu0 }
 0xa72   : > { %v1911_v54 = vmul.f32 0.35355338, %v1907_v53 }
 0xa74   : > { %v1912_v55 = vadd.f32 %v1911_v54, %v5413_v63 }
 0xa76   : > { %v1913_v56 = vsel %vm1399_vm5, %v1912_v55, -inf }
 0xa77   : > { %1914 = vmax.xlane.f32.xlu2 %v1913_v56 }
 0xa78   : > { %v1965_v57 = vpop.f32.mrf.mxu3 }
 0xa79   : > { %v1969_v58 = vmul.f32 0.35355338, %v1965_v57  ;;  %v1909_v59 = vpop.f32.mrf.mxu0 }
 0xa7b   : > { %v1970_v60 = vadd.f32 %v1969_v58, %v5413_v63 }
 0xa7d   : > { %v1971_v61 = vsel %vm1399_vm5, %v1970_v60, -inf }
 0xa7e   : > { %1972 = vmax.xlane.f32.xlu0 %v1971_v61 }
 0xa80   : > { %v1967_v62 = vpop.f32.mrf.mxu3 }
 0xa81   : > { %v2023_v0 = vpop.f32.mrf.mxu0 }
 0xa82   : > { %v2027_v1 = vmul.f32 0.35355338, %v2023_v0 }
 0xa84   : > { %v2028_v2 = vadd.f32 %v2027_v1, %v5413_v63  ;;  %v2343_v1 = vld [vmem:[%s1289_s15] sm:$0xff]  ;;  %s6128_s15 = sld [smem:[#allocation39_spill]] }
 0xa86   : > { %v2029_v4 = vsel %vm1399_vm5, %v2028_v2, -inf }
 0xa87   : > { %2030 = vmax.xlane.f32.xlu0 %v2029_v4  ;;  %v2345_v4 = vld [vmem:[%s6121_s11] sm:$0xff]  ;;  %s6126_s11 = sld [smem:[#allocation38_spill]] }
 0xa88   : > { %v2081_v5 = vpop.f32.mrf.mxu3 }
 0xa89   : > { %v2085_v7 = vmul.f32 0.35355338, %v2081_v5  ;;  %v2025_v8 = vpop.f32.mrf.mxu0 }
 0xa8a   : > { %v4654_v8 = vld [vmem:[%s6091_s14 + $0x18] sm:$0xff] }
 0xa8b   : > { %v2086_v9 = vadd.f32 %v2085_v7, %v5413_v63  ;;  %2167 = vmatpush.bf16.msrb.mxu0 %v4654_v8  ;;  %v4658_v8 = vld [vmem:[%s6088_s6 + $0x28] sm:$0xff] }
 0xa8d   : > { %v2087_v10 = vsel %vm1399_vm5, %v2086_v9, -inf }
 0xa8e   : > { %2088 = vmax.xlane.f32.xlu1 %v2087_v10 }
 0xa90   : > { %v2083_v12 = vpop.f32.mrf.mxu3 }
 0xa9b   : > { %1983 = vrot.lane.b32.xlu0 %v5484_v40, %s6116_s2 }
 0xaa3   : > { %2099 = vrot.lane.b32.xlu0 %v5484_v40, %s6117_s22 }
 0xaea   : > { %v1915_v13 = vpop.xlane.xlu2 %1914 }
 0xaeb   : > { %v1916_v14 = vsub.f32 %v1912_v55, %v1915_v13 }
 0xaed   : > { %v1917_v15 = vmul.f32 1.442695, %v1916_v14 }
 0xaef   : > { %4861 = vpow2.f32 %v1917_v15 }
 0xaf1   : > { %v1973_v16 = vpop.xlane.xlu0 %1972 }
 0xaf2   : > { %v1974_v17 = vsub.f32 %v1970_v60, %v1973_v16 }
 0xaf4   : > { %v1975_v18 = vmul.f32 1.442695, %v1974_v17 }
 0xaf5   : > { %v4862_v19 = vpop.eup %4861 }
 0xaf6   : > { %4863 = vpow2.f32 %v1975_v18  ;;  %v1919_v63 = vsel %vm1399_vm5, %v4862_v19, 0.0 }
 0xaf7   : > { %1920 = vadd.xlane.f32.xlu1 %v1919_v63 }
 0xafa   : > { %v2031_v20 = vpop.xlane.xlu0 %2030 }
 0xafb   : > { %v2032_v21 = vsub.f32 %v2028_v2, %v2031_v20  ;;  %v2344_v2 = vmul.f32 5.656854, %v2343_v1 }
 0xafc   : > { %v4864_v22 = vpop.eup %4863 }
 0xafd   : > { %v2033_v23 = vmul.f32 1.442695, %v2032_v21  ;;  %v1977_v24 = vsel %vm1399_vm5, %v4864_v22, 0.0  ;;  %v5543_v5 = vadd.f32 %v2345_v4, %v2344_v2  ;;  %v4659_v2 = vld [vmem:[%s6088_s6 + $0x30] sm:$0xff] }
 0xafe   : > { %1978 = vadd.xlane.f32.xlu2 %v1977_v24 }
 0xaff   : > { %4865 = vpow2.f32 %v2033_v23  ;;  %v2351_v7 = vsel %vm1310_vm0, %v5543_v5, 0.0 }
 0xb01   : > { %v2089_v26 = vpop.xlane.xlu1 %2088 }
 0xb02   : > { %v2090_v27 = vsub.f32 %v2086_v9, %v2089_v26  ;;  %v4653_v9 = vld [vmem:[%s6091_s14 + $0x10] sm:$0xff]  ;;  %s6127_s14 = smov %s6126_s11 }
 0xb03   : > { %2168 = vmatpush.bf16.msrb.mxu0 %v4653_v9 }
 0xb04   : > { %v2091_v28 = vmul.f32 1.442695, %v2090_v27 }
 0xb05   : > { %v4866_v29 = vpop.eup %4865 }
 0xb06   : > { %4867 = vpow2.f32 %v2091_v28  ;;  %v2035_v30 = vsel %vm1399_vm5, %v4866_v29, 0.0 }
 0xb07   : > { %2036 = vadd.xlane.f32.xlu1 %v2035_v30  ;;  %v4661_v30 = vld [vmem:[%s6125_s27] sm:$0xff] }
 0xb0c   : > { %v4868_v31 = vpop.eup %4867 }
 0xb0d   : > { %v1984_v32 = vpop.permute.xlu0 %1983  ;;  %v2093_v34 = vsel %vm1399_vm5, %v4868_v31, 0.0 }
 0xb0e   : > { %v1989_v33 = vsel %vm1438_vm6, %v1984_v32, 0 }
 0xb0f   : > { %2094 = vadd.xlane.f32.xlu1 %v2093_v34  ;;  %1998 = vmatpush.bf16.msra.mxu2 %v1989_v33 }
 0xb15   : > { %v2100_v35 = vpop.permute.xlu0 %2099 }
 0xb16   : > { %1925 = vrot.lane.b32.xlu2 %v5484_v40, %s6118_s13  ;;  %v2105_v36 = vsel %vm1438_vm6, %v2100_v35, 0 }
 0xb17   : > { %2114 = vmatpush.bf16.msrb.mxu2 %v2105_v36 }
 0xb28   : > { %2041 = vrot.lane.b32.xlu1 %v5484_v40, %s6119_s20 }
 0xb6a   : > { %v1921_v3 = vpop.xlane.xlu1 %1920 }
 0xb6b   : > { %4869 = vrcp.f32 %v1921_v3 }
 0xb71   : > { %v1979_v37 = vpop.xlane.xlu2 %1978  ;;  %v4870_v38 = vpop.eup %4869 }
 0xb72   : > { %4871 = vrcp.f32 %v1979_v37  ;;  %v1923_v41 = vmul.f32 %v4870_v38, %v4862_v19 }
 0xb74   : > { %v1924_v47 = vpack.c.bf16 %v1923_v41, %v1923_v41 }
 0xb78   : > { %v4872_v39 = vpop.eup %4871 }
 0xb79   : > { %v1981_v42 = vmul.f32 %v4872_v39, %v4864_v22  ;;  %v1926_v43 = vpop.permute.xlu2 %1925  ;;  %v4797_v22 = vld [vmem:[%s6090_s19 + $0x1] ss:$0 sm:$0xff]  ;;  %s6129_s19 = smov %s6128_s15 }
 0xb7a   : > { %v1931_v44 = vsel %vm1438_vm6, %v1926_v43, 0  ;;  %v2037_v45 = vpop.xlane.xlu1 %2036  ;;  %v4796_v43 = vld [vmem:[%s6126_s11] ss:$0 sm:$0xff]  ;;  %s6131_s11 = smov 96  }
 0xb7b   : > { %v1982_v46 = vpack.c.bf16 %v1981_v42, %v1981_v42  ;;  %1940 = vmatpush.bf16.msrb.mxu1 %v1931_v44 }
 0xb7d   : > { %4378 = vmatmul.msk.bf16.vlgmr.msra.gmra.mxu2 %vm1399_vm5, %v1982_v46 }
 0xb7e   : > { %4376 = vmatmul.msk.bf16.vlgmr.msrb.gmra.mxu1 %vm1399_vm5, %v1924_v47 }
 0xb82   : > { %v2095_v40 = vpop.xlane.xlu1 %2094 }
 0xb83   : > { %4873 = vrcp.f32 %v2095_v40 }
 0xb84   : > { %4875 = vrcp.f32 %v2037_v45  ;;  %v4798_v45 = vld [vmem:[%s6128_s15] ss:$0 sm:$0xff]  ;;  %s6132_s15 = smov 120  }
 0xb89   : > { %v4874_v48 = vpop.eup %4873 }
 0xb8a   : > { %v2097_v49 = vmul.f32 %v4874_v48, %v4868_v31  ;;  %v4876_v51 = vpop.eup %4875 }
 0xb8b   : > { %v2039_v52 = vmul.f32 %v4876_v51, %v4866_v29  ;;  %v4662_v29 = vld [vmem:[%s6125_s27 + $0x8] sm:$0xff] }
 0xb8c   : > { %v2098_v50 = vpack.c.bf16 %v2097_v49, %v2097_v49  ;;  %2414 = vmatpush.bf16.msra.mxu2 %v4662_v29 }
 0xb8d   : > { %v2040_v55 = vpack.c.bf16 %v2039_v52, %v2039_v52 }
 0xb8e   : > { %4382 = vmatmul.msk.bf16.vlgmr.msrb.gmra.mxu2 %vm1399_vm5, %v2098_v50 }
 0xb90   : > { %2415 = vmatpush.bf16.msra.mxu2 %v4661_v30 }
 0xb9a   : > { %v2042_v53 = vpop.permute.xlu1 %2041 }
 0xb9b   : > { %v2047_v54 = vsel %vm1438_vm6, %v2042_v53, 0 }
 0xb9c   : > { %2056 = vmatpush.bf16.msra.mxu1 %v2047_v54  ;;  %v4800_v54 = vld [vmem:[%s6130_s28] ss:$0 sm:$0xff] }
 0xb9f   : > { %4380 = vmatmul.msk.bf16.vlgmr.msra.gmra.mxu1 %vm1399_vm5, %v2040_v55 }
 0xbfb   : > { %v1942_v56 = vpop.f32.mrf.mxu1 }
 0xc00   : > { %v2000_v57 = vpop.f32.mrf.mxu2 }
 0xc01   : > { %2121 = vrot.lane.b32.xlu2 %v2000_v57, %s6122_s18 }
 0xc03   : > { %v1944_v58 = vpop.f32.mrf.mxu1 }
 0xc08   : > { %v2002_v59 = vpop.f32.mrf.mxu2 }
 0xc09   : > { %v4656_v59 = vld [vmem:[%s6086_s24 + $0x18] sm:$0xff] }
 0xc0a   : > { %2244 = vmatpush.bf16.msrb.mxu1 %v4656_v59 }
 0xc11   : > { %v2116_v60 = vpop.f32.mrf.mxu2 }
 0xc12   : > { %2129 = vrot.lane.b32.xlu2 %v2116_v60, %s6123_s1  ;;  %v4655_v60 = vld [vmem:[%s6086_s24 + $0x10] sm:$0xff]  ;;  %s6137_s24 = sld [smem:[#allocation24_spill]] }
 0xc13   : > { %2245 = vmatpush.bf16.msrb.mxu1 %v4655_v60 }
 0xc19   : > { %v2118_v61 = vpop.f32.mrf.mxu2 }
 0xc1c   : > { %v2058_v62 = vpop.f32.mrf.mxu1 }
 0xc1d   : > { %2125 = vrot.lane.b32.xlu0 %v2058_v62, %s6124_s7 }
 0xc24   : > { %v2060_v0 = vpop.f32.mrf.mxu1 }
 0xc25   : > { %v4660_v0 = vld [vmem:[%s6088_s6 + $0x38] sm:$0xff] }
 0xc26   : > { %2298 = vmatpush.bf16.msrb.mxu3 %v4660_v0 }
 0xc2a   : > { %2299 = vmatpush.bf16.msrb.mxu3 %v4659_v2 }
 0xc2e   : > { %2300 = vmatpush.bf16.msrb.mxu3 %v4658_v8 }
 0xc47   : > { %2352 = vadd.xlane.f32.xlu0 %v2351_v7 }
 0xc5b   : > { %v2122_v10 = vpop.permute.xlu2 %2121 }
 0xc5c   : > { %v2132_v12 = vsel %vm1399_vm5, %v1942_v56, %v2122_v10 }
 0xc6c   : > { %v2130_v14 = vpop.permute.xlu2 %2129 }
 0xc8f   : > { %v2126_v13 = vpop.permute.xlu0 %2125 }
 0xc90   : > { %v2133_v15 = vsel %vm1642_vm7, %v2132_v12, %v2126_v13 }
 0xc91   : > { %v2134_v16 = vsel %vm1644_vm8, %v2133_v15, %v2130_v14 }
 0xc92   : > { %v2142_v17 = vpack.c.bf16 %v2134_v16, %v2134_v16 }
 0xc94   : > { %4396 = vmatmul.msk.bf16.vlgmr.msrb.gmra.mxu0 %vm1310_vm0, %v2142_v17 }
 0xcba   : > { %v2353_v18 = vpop.xlane.xlu0 %2352 }
 0xcbb   : > { %v2354_v19 = vmul.f32 %v2353_v18, %v5372_v11  ;;  %v4657_v18 = vld [vmem:[%s6088_s6 + $0x20] sm:$0xff] }
 0xcbc   : > { %2301 = vmatpush.bf16.msrb.mxu3 %v4657_v18 }
 0xcbd   : > { %v2355_v63 = vsub.f32 %v5543_v5, %v2354_v19  ;;  %v4799_v19 = vld [vmem:[%s6089_s4 + $0x1] ss:$0 sm:$0xff]  ;;  %s6133_s4 = sld [smem:[#allocation9_spill]] }
 0xcbf   : > { %v2356_v20 = vmul.f32 %v2355_v63, %v2355_v63  ;;  %v2378_v44 = vmul.f32 %v4796_v43, %v2355_v63 }
 0xcc1   : > { %v2357_v21 = vsel %vm1310_vm0, %v2356_v20, 0.0  ;;  %v4801_v20 = vld [vmem:[%s6087_s17 + $0x1] ss:$0 sm:$0xff]  ;;  %s6136_s17 = sld [smem:[#allocation29_spill]] }
 0xcc2   : > { %2358 = vadd.xlane.f32.xlu1 %v2357_v21 }
 0xcc3   : > { %s1301_s6 = scalar_lea.vmem %s6133_s4, %s5363_s16  ;;  %s6135_s4 = sld [smem:[#allocation30_spill]] }
 0xcc4   : > { %s6145_s16 = sld [smem:[#allocation34_spill]] }
 0xd11   : > { %v2170_v23 = vpop.f32.mrf.mxu0 }
 0xd12   : > { %v2171_v24 = vadd.f32 %v4797_v22, %v2170_v23 }
 0xd14   : > { %v5558_v26 = vadd.f32 %v2171_v24, %v5470_v6 }
 0xd16   : > { %v2179_v27 = vsel %vm1310_vm0, %v5558_v26, 0.0 }
 0xd17   : > { %2180 = vadd.xlane.f32.xlu2 %v2179_v27 }
 0xd19   : > { %v2172_v28 = vpop.f32.mrf.mxu0 }
 0xd35   : > { %v2359_v31 = vpop.xlane.xlu1 %2358 }
 0xd36   : > { %v2360_v32 = vmul.f32 %v2359_v31, %v5379_v25 }
 0xd38   : > { %4877 = vrsqrt.f32 %v2360_v32  ;;  %vm2368_vm14 = vcmp.eq.f32.partialorder %v2360_v32, inf  ;;  %v2371_v37 = vand.u32 2147483648, %v2360_v32  ;;  %vm2370_vm15 = vcmp.eq.f32.partialorder %v2360_v32, 0.0 }
 0xd3e   : > { %v4878_v33 = vpop.eup %4877 }
 0xd3f   : > { %v2362_v34 = vmul.f32 %v4878_v33, %v2360_v32 }
 0xd41   : > { %v2363_v35 = vmul.f32 %v4878_v33, %v2362_v34 }
 0xd43   : > { %v2364_v6 = vmul.f32 0.5, %v2363_v35 }
 0xd45   : > { %v2365_v36 = vsub.f32 1.5, %v2364_v6  ;;  %v4802_v6 = vld [vmem:[%s6085_s30 + $0x1] ss:$0 sm:$0xff]  ;;  %s6139_s30 = sld [smem:[#allocation31_spill]] }
 0xd47   : > { %v2366_v3 = vmul.f32 %v4878_v33, %v2365_v36 }
 0xd49   : > { %v2367_v38 = vmul.f32 %v2366_v3, %v2360_v32 }
 0xd4b   : > { %v2369_v39 = vsel %vm2368_vm14, %v2360_v32, %v2367_v38 }
 0xd4c   : > { %v2372_v41 = vsel %vm2370_vm15, %v2371_v37, %v2369_v39 }
 0xd4d   : > { %v2373_v42 = vadd.f32 1e-06, %v2372_v41 }
 0xd4f   : > { %4879 = vrcp.f32 %v2373_v42 }
 0xd55   : > { %v4880_v46 = vpop.eup %4879 }
 0xd56   : > { %v2379_v47 = vmul.f32 %v4880_v46, %v2378_v44  ;;  %v5611_v44 = vld [vmem:[%s1301_s6] sm:$0xff]  ;;  %s6134_s6 = sld [smem:[#allocation28_spill]] }
 0xd58   : > { %v2383_v40 = vadd.f32 %v4798_v45, %v2379_v47 }
 0xd5a   : > { %v2389_v48 = vpack.c.bf16 %v2383_v40, %v2383_v40 }
 0xd5c   : > { %4447 = vmatmul.msk.bf16.vlgmr.msra.gmra.mxu2 %vm1310_vm0, %v2389_v48 }
 0xd8a   : > { %v2181_v49 = vpop.xlane.xlu2 %2180 }
 0xd8b   : > { %v2182_v50 = vmul.f32 %v2181_v49, %v5372_v11 }
 0xd8d   : > { %v2183_v51 = vsub.f32 %v5558_v26, %v2182_v50 }
 0xd8f   : > { %v2184_v52 = vmul.f32 %v2183_v51, %v2183_v51  ;;  %v2206_v63 = vmul.f32 %v4799_v19, %v2183_v51 }
 0xd91   : > { %v2185_v53 = vsel %vm1310_vm0, %v2184_v52, 0.0 }
 0xd92   : > { %2186 = vadd.xlane.f32.xlu0 %v2185_v53 }
 0xddf   : > { %v2417_v55 = vpop.f32.mrf.mxu2 }
 0xde0   : > { %v2418_v56 = vadd.f32 %v4800_v54, %v2417_v55 }
 0xde2   : > { %v5572_v57 = vpack.c.bf16 %v2418_v56, %v2418_v56 }
 0xde4   : > { %2423 = vrot.lane.b32.xlu1 %v5572_v57, %s6131_s11  ;;  %2479 = vrot.lane.b32.xlu0 %v5572_v57, %s6132_s15 }
 0xde5   : > { %2481 = vrot.lane.b32.xlu2 %v5572_v57, %s6111_s5 }
 0xde7   : > { %v2419_v58 = vpop.f32.mrf.mxu2 }
 0xdec   : > { %2537 = vrot.lane.b32.xlu1 %v5572_v57, %s6112_s25  ;;  %2597 = vrot.lane.b32.xlu0 %v5572_v57, %s6114_s3 }
 0xded   : > { %2595 = vrot.lane.b32.xlu2 %v5572_v57, %s6115_s8 }
 0xdf4   : > { %2539 = vrot.lane.b32.xlu0 %v5572_v57, %s6113_s23 }
 0xe05   : > { %v2187_v61 = vpop.xlane.xlu0 %2186 }
 0xe06   : > { %v2188_v62 = vmul.f32 %v2187_v61, %v5379_v25 }
 0xe08   : > { %4881 = vrsqrt.f32 %v2188_v62  ;;  %vm2196_vm1 = vcmp.eq.f32.partialorder %v2188_v62, inf  ;;  %v2199_v14 = vand.u32 2147483648, %v2188_v62  ;;  %vm2198_vm2 = vcmp.eq.f32.partialorder %v2188_v62, 0.0 }
 0xe0e   : > { %v4882_v1 = vpop.eup %4881 }
 0xe0f   : > { %v2190_v4 = vmul.f32 %v4882_v1, %v2188_v62 }
 0xe11   : > { %v2191_v7 = vmul.f32 %v4882_v1, %v2190_v4 }
 0xe13   : > { %v2192_v9 = vmul.f32 0.5, %v2191_v7 }
 0xe15   : > { %v2193_v10 = vsub.f32 1.5, %v2192_v9 }
 0xe17   : > { %v2194_v12 = vmul.f32 %v4882_v1, %v2193_v10 }
 0xe19   : > { %v2195_v13 = vmul.f32 %v2194_v12, %v2188_v62 }
 0xe1b   : > { %v2197_v15 = vsel %vm2196_vm1, %v2188_v62, %v2195_v13 }
 0xe1c   : > { %v2200_v16 = vsel %vm2198_vm2, %v2199_v14, %v2197_v15 }
 0xe1d   : > { %v2201_v17 = vadd.f32 1e-06, %v2200_v16 }
 0xe1f   : > { %4883 = vrcp.f32 %v2201_v17 }
 0xe25   : > { %v4884_v21 = vpop.eup %4883 }
 0xe26   : > { %v2207_v22 = vmul.f32 %v4884_v21, %v2206_v63 }
 0xe28   : > { %v2211_v23 = vadd.f32 %v4801_v20, %v2207_v22 }
 0xe2a   : > { %v2219_v24 = vpack.c.bf16 %v2211_v23, %v2211_v23 }
 0xe2c   : > { %4412 = vmatmul.msk.bf16.vlgmr.msrb.gmra.mxu1 %vm1310_vm0, %v2219_v24 }
 0xe3f   : > { %v2482_v27 = vpop.permute.xlu2 %2481 }
 0xe40   : > { %v2487_v28 = vsel %vm1399_vm5, %v2482_v27, 0 }
 0xe41   : > { %2496 = vmatpush.bf16.xpose.msra.mxu3 %v2487_v28 }
 0xe47   : > { %v2596_v42 = vpop.permute.xlu2 %2595 }
 0xe56   : > { %v2424_v29 = vpop.permute.xlu1 %2423  ;;  %v2480_v30 = vpop.permute.xlu0 %2479 }
 0xe57   : > { %v2429_v31 = vsel %vm1399_vm5, %v2424_v29, 0 }
 0xe58   : > { %2438 = vmatpush.bf16.xpose.msra.mxu0 %v2429_v31 }
 0xe5e   : > { %v2598_v32 = vpop.permute.xlu0 %2597  ;;  %v2538_v35 = vpop.permute.xlu1 %2537 }
 0xe5f   : > { %4448 = vmatmul.msk.bf16.vlgmr.msra.gmra.mxu0 %vm1399_vm5, %v5572_v57  ;;  %v2603_v39 = vsel %vm1399_vm5, %v2598_v32, 0 }
 0xe66   : > { %v2540_v33 = vpop.permute.xlu0 %2539 }
 0xe67   : > { %v2545_v34 = vsel %vm1399_vm5, %v2540_v33, 0 }
 0xe68   : > { %2554 = vmatpush.bf16.xpose.msrb.mxu0 %v2545_v34 }
 0xe6f   : > { %4452 = vmatmul.msk.bf16.vlgmr.msrb.gmra.mxu0 %vm1399_vm5, %v2538_v35 }
 0xea9   : > { %v2247_v36 = vpop.f32.mrf.mxu1 }
 0xeaa   : > { %v2248_v3 = vadd.f32 %v4802_v6, %v2247_v36 }
 0xeac   : > { %v2251_v37 = vmax.f32 %v2248_v3, 0.0 }
 0xeae   : > { %v2263_v38 = vpack.c.bf16 %v2251_v37, %v2251_v37 }
 0xeb0   : > { %4438 = vmatmul.msk.bf16.vlgmr.msrb.gmra.mxu3 %vm1794_vm11, %v2263_v38 }
 0xeb1   : > { %2612 = vmatpush.bf16.xpose.msrb.mxu3 %v2603_v39  ;;  %v2249_v41 = vpop.f32.mrf.mxu1 }
 0xec0   : > { %4450 = vmatmul.msk.bf16.vlgmr.msra.gmra.mxu3 %vm1399_vm5, %v2480_v30 }
 0xed0   : > { %4454 = vmatmul.msk.bf16.vlgmr.msrb.gmra.mxu3 %vm1399_vm5, %v2596_v42 }
 0xedc   : > { %v2440_v43 = vpop.f32.mrf.mxu0 }
 0xedd   : > { %v2444_v45 = vmul.f32 0.35355338, %v2440_v43 }
 0xedf   : > { %v2445_v46 = vadd.f32 %v2444_v45, %v5611_v44 }
 0xee1   : > { %v2446_v47 = vsel %vm1399_vm5, %v2445_v46, -inf }
 0xee2   : > { %2447 = vmax.xlane.f32.xlu0 %v2446_v47 }
 0xee4   : > { %v2442_v40 = vpop.f32.mrf.mxu0 }
 0xeec   : > { %v2556_v48 = vpop.f32.mrf.mxu0 }
 0xeed   : > { %v2560_v55 = vmul.f32 0.35355338, %v2556_v48 }
 0xeef   : > { %v2561_v59 = vadd.f32 %v2560_v55, %v5611_v44 }
 0xef1   : > { %v2562_v60 = vsel %vm1399_vm5, %v2561_v59, -inf }
 0xef4   : > { %v2558_v49 = vpop.f32.mrf.mxu0 }
 0xf33   : > { %v5615_v50 = vpop.f32.mrf.mxu3 }
 0xf3b   : > { %v2305_v51 = vpop.f32.mrf.mxu3 }
 0xf43   : > { %v2498_v52 = vpop.f32.mrf.mxu3 }
 0xf44   : > { %v2502_v53 = vmul.f32 0.35355338, %v2498_v52 }
 0xf46   : > { %v2503_v54 = vadd.f32 %v2502_v53, %v5611_v44 }
 0xf48   : > { %v2504_v56 = vsel %vm1399_vm5, %v2503_v54, -inf }
 0xf49   : > { %2505 = vmax.xlane.f32.xlu2 %v2504_v56 }
 0xf4b   : > { %v2500_v58 = vpop.f32.mrf.mxu3 }
 0xf51   : > { %2563 = vmax.xlane.f32.xlu2 %v2562_v60  ;;  %v4803_v60 = vld [vmem:[%s6110_s26 + $0x1] ss:$0 sm:$0xff]  ;;  %s6138_s26 = sld [smem:[#allocation25_spill]] }
 0xf53   : > { %v2614_v61 = vpop.f32.mrf.mxu3 }
 0xf54   : > { %v2618_v62 = vmul.f32 0.35355338, %v2614_v61  ;;  %v2304_v61 = vadd.f32 %v4803_v60, %v5615_v50 }
 0xf55   : > { %v2448_v0 = vpop.xlane.xlu0 %2447 }
 0xf56   : > { %v2449_v1 = vsub.f32 %v2445_v46, %v2448_v0  ;;  %v2619_v2 = vadd.f32 %v2618_v62, %v5611_v44  ;;  %v2307_v62 = vadd.f32 %v2304_v61, %v5558_v26 }
 0xf58   : > { %v2450_v4 = vmul.f32 1.442695, %v2449_v1  ;;  %v2620_v7 = vsel %vm1399_vm5, %v2619_v2, -inf  ;;  %v2310_v0 = vsel %vm1310_vm0, %v2307_v62, 0.0  ;;  %v4664_v1 = vld [vmem:[%s6134_s6 + $0x8] sm:$0xff] }
 0xf59   : > { %2621 = vmax.xlane.f32.xlu1 %v2620_v7  ;;  %2698 = vmatpush.bf16.msra.mxu0 %v4664_v1 }
 0xf5a   : > { %4885 = vpow2.f32 %v2450_v4 }
 0xf5b   : > { %v2616_v8 = vpop.f32.mrf.mxu3 }
 0xf60   : > { %v4886_v9 = vpop.eup %4885 }
 0xf61   : > { %v2452_v10 = vsel %vm1399_vm5, %v4886_v9, 0.0 }
 0xf62   : > { %2453 = vadd.xlane.f32.xlu0 %v2452_v10 }
 0xf72   : > { %2516 = vrot.lane.b32.xlu1 %v5572_v57, %s6116_s2 }
 0xf7a   : > { %2574 = vrot.lane.b32.xlu1 %v5572_v57, %s6119_s20 }
 0xfbc   : > { %v2506_v12 = vpop.xlane.xlu2 %2505 }
 0xfbd   : > { %v2507_v13 = vsub.f32 %v2503_v54, %v2506_v12 }
 0xfbf   : > { %v2508_v14 = vmul.f32 1.442695, %v2507_v13 }
 0xfc1   : > { %4887 = vpow2.f32 %v2508_v14 }
 0xfc4   : > { %v2564_v15 = vpop.xlane.xlu2 %2563 }
 0xfc5   : > { %v2565_v16 = vsub.f32 %v2561_v59, %v2564_v15 }
 0xfc7   : > { %v4888_v17 = vpop.eup %4887  ;;  %v2566_v18 = vmul.f32 1.442695, %v2565_v16 }
 0xfc8   : > { %v2510_v19 = vsel %vm1399_vm5, %v4888_v17, 0.0 }
 0xfc9   : > { %4889 = vpow2.f32 %v2566_v18  ;;  %2511 = vadd.xlane.f32.xlu2 %v2510_v19  ;;  %v4805_v18 = vld [vmem:[%s6136_s17] ss:$0 sm:$0xff] }
 0xfcc   : > { %v2622_v63 = vpop.xlane.xlu1 %2621 }
 0xfcd   : > { %v2623_v20 = vsub.f32 %v2619_v2, %v2622_v63  ;;  %v4663_v2 = vld [vmem:[%s6134_s6] sm:$0xff] }
 0xfce   : > { %2699 = vmatpush.bf16.msra.mxu0 %v4663_v2 }
 0xfcf   : > { %v4890_v21 = vpop.eup %4889  ;;  %v2624_v22 = vmul.f32 1.442695, %v2623_v20 }
 0xfd0   : > { %v2568_v23 = vsel %vm1399_vm5, %v4890_v21, 0.0 }
 0xfd1   : > { %4891 = vpow2.f32 %v2624_v22  ;;  %2569 = vadd.xlane.f32.xlu0 %v2568_v23  ;;  %v4665_v23 = vld [vmem:[%s6135_s4] sm:$0xff] }
 0xfd5   : > { %v2454_v30 = vpop.xlane.xlu0 %2453 }
 0xfd6   : > { %4893 = vrcp.f32 %v2454_v30 }
 0xfd7   : > { %v4892_v24 = vpop.eup %4891 }
 0xfd8   : > { %v2626_v27 = vsel %vm1399_vm5, %v4892_v24, 0.0 }
 0xfd9   : > { %2627 = vadd.xlane.f32.xlu0 %v2626_v27 }
 0xfdc   : > { %v4894_v32 = vpop.eup %4893 }
 0xfdd   : > { %v2456_v34 = vmul.f32 %v4894_v32, %v4886_v9 }
 0xfdf   : > { %v2457_v39 = vpack.c.bf16 %v2456_v34, %v2456_v34 }
 0xfe1   : > { %2458 = vrot.lane.b32.xlu2 %v5572_v57, %s6118_s13 }
 0xfe4   : > { %v2517_v28 = vpop.permute.xlu1 %2516 }
 0xfe5   : > { %v2522_v29 = vsel %vm1438_vm6, %v2517_v28, 0 }
 0xfe6   : > { %2531 = vmatpush.bf16.msrb.mxu2 %v2522_v29 }
 0xfec   : > { %v2575_v35 = vpop.permute.xlu1 %2574 }
 0xfed   : > { %2632 = vrot.lane.b32.xlu0 %v5572_v57, %s6117_s22  ;;  %v2580_v37 = vsel %vm1438_vm6, %v2575_v35, 0 }
0x103c   : > { %v2512_v31 = vpop.xlane.xlu2 %2511 }
0x103d   : > { %4895 = vrcp.f32 %v2512_v31 }
0x1043   : > { %v4896_v33 = vpop.eup %4895 }
0x1044   : > { %v2514_v6 = vmul.f32 %v4896_v33, %v4888_v17  ;;  %v2459_v36 = vpop.permute.xlu2 %2458  ;;  %v2570_v41 = vpop.xlane.xlu0 %2569  ;;  %v4666_v17 = vld [vmem:[%s6135_s4 + $0x8] sm:$0xff] }
0x1045   : > { %v2464_v3 = vsel %vm1438_vm6, %v2459_v36, 0  ;;  %4897 = vrcp.f32 %v2570_v41 }
0x1046   : > { %v2515_v38 = vpack.c.bf16 %v2514_v6, %v2514_v6  ;;  %2473 = vmatpush.bf16.msra.mxu1 %v2464_v3 }
0x1048   : > { %4451 = vmatmul.msk.bf16.vlgmr.msrb.gmra.mxu2 %vm1399_vm5, %v2515_v38 }
0x1049   : > { %4449 = vmatmul.msk.bf16.vlgmr.msra.gmra.mxu1 %vm1399_vm5, %v2457_v39 }
0x104a   : > { %2589 = vmatpush.bf16.msrb.mxu1 %v2580_v37 }
0x104b   : > { %v4898_v57 = vpop.eup %4897 }
0x104c   : > { %v2628_v42 = vpop.xlane.xlu0 %2627  ;;  %v2572_v43 = vmul.f32 %v4898_v57, %v4890_v21  ;;  %v4804_v57 = vld [vmem:[%s6137_s24] ss:$0 sm:$0xff]  ;;  %s6140_s24 = sld [smem:[#allocation40_spill]] }
0x104d   : > { %4899 = vrcp.f32 %v2628_v42 }
0x104e   : > { %v2573_v45 = vpack.c.bf16 %v2572_v43, %v2572_v43  ;;  %2771 = vmatpush.bf16.msra.mxu1 %v4666_v17 }
0x1052   : > { %2772 = vmatpush.bf16.msra.mxu1 %v4665_v23 }
0x1053   : > { %v4900_v46 = vpop.eup %4899 }
0x1054   : > { %v2630_v47 = vmul.f32 %v4900_v46, %v4892_v24  ;;  %v4807_v46 = vld [vmem:[%s6138_s26] ss:$0 sm:$0xff]  ;;  %s6141_s26 = sld [smem:[#allocation41_spill]] }
0x1056   : > { %v2631_v49 = vpack.c.bf16 %v2630_v47, %v2630_v47 }
0x1059   : > { %4453 = vmatmul.msk.bf16.vlgmr.msrb.gmra.mxu1 %vm1399_vm5, %v2573_v45 }
0x105f   : > { %v2633_v40 = vpop.permute.xlu0 %2632 }
0x1060   : > { %v2638_v48 = vsel %vm1438_vm6, %v2633_v40, 0 }
0x1061   : > { %2647 = vmatpush.bf16.msra.mxu2 %v2638_v48 }
0x1064   : > { %4455 = vmatmul.msk.bf16.vlgmr.msra.gmra.mxu2 %vm1399_vm5, %v2631_v49 }
0x10c6   : > { %v2475_v51 = vpop.f32.mrf.mxu1 }
0x10cb   : > { %v2533_v52 = vpop.f32.mrf.mxu2 }
0x10cc   : > { %2654 = vrot.lane.b32.xlu2 %v2533_v52, %s6122_s18 }
0x10ce   : > { %v2477_v53 = vpop.f32.mrf.mxu1 }
0x10d3   : > { %v2535_v54 = vpop.f32.mrf.mxu2 }
0x10d6   : > { %v2591_v55 = vpop.f32.mrf.mxu1 }
0x10d7   : > { %2658 = vrot.lane.b32.xlu1 %v2591_v55, %s6124_s7 }
0x10de   : > { %v2593_v56 = vpop.f32.mrf.mxu1 }
0x10e7   : > { %v2649_v58 = vpop.f32.mrf.mxu2 }
0x10e8   : > { %2662 = vrot.lane.b32.xlu2 %v2649_v58, %s6123_s1 }
0x10ef   : > { %v2651_v59 = vpop.f32.mrf.mxu2 }
0x1101   : > { %2311 = vadd.xlane.f32.xlu1 %v2310_v0 }
0x1126   : > { %v2655_v4 = vpop.permute.xlu2 %2654 }
0x1127   : > { %v2665_v7 = vsel %vm1399_vm5, %v2475_v51, %v2655_v4  ;;  %v4808_v51 = vld [vmem:[%s6139_s30] ss:$0 sm:$0xff] }
0x1128   : > { %v4806_v4 = vld [vmem:[%s6140_s24] ss:$0 sm:$0xff] }
0x1142   : > { %v2663_v9 = vpop.permute.xlu2 %2662 }
0x1149   : > { %v2659_v8 = vpop.permute.xlu1 %2658 }
0x114a   : > { %v2666_v10 = vsel %vm1642_vm7, %v2665_v7, %v2659_v8  ;;  %v4809_v8 = vld [vmem:[%s6141_s26] ss:$0 sm:$0xff] }
0x114b   : > { %v2667_v50 = vsel %vm1644_vm8, %v2666_v10, %v2663_v9 }
0x114c   : > { %v2673_v12 = vpack.c.bf16 %v2667_v50, %v2667_v50 }
0x114e   : > { %4464 = vmatmul.msk.bf16.vlgmr.msra.gmra.mxu0 %vm1310_vm0, %v2673_v12 }
0x1174   : > { %v2312_v26 = vpop.xlane.xlu1 %2311 }
0x1175   : > { %v2313_v13 = vmul.f32 %v2312_v26, %v5372_v11 }
0x1177   : > { %v2314_v14 = vsub.f32 %v2307_v62, %v2313_v13 }
0x1179   : > { %v2315_v15 = vmul.f32 %v2314_v14, %v2314_v14  ;;  %v2337_v43 = vmul.f32 %v4804_v57, %v2314_v14 }
0x117b   : > { %v2316_v16 = vsel %vm1310_vm0, %v2315_v15, 0.0 }
0x117c   : > { %2317 = vadd.xlane.f32.xlu2 %v2316_v16 }
0x1194   : > { %2779 = vrot.lane.b32.xlu2 %v4665_v23, %s6131_s11 }
0x11cb   : > { %v2701_v19 = vpop.f32.mrf.mxu0 }
0x11cc   : > { %v2702_v63 = vadd.f32 %v4805_v18, %v2701_v19 }
0x11ce   : > { %v5661_v20 = vadd.f32 %v2702_v63, %v5543_v5 }
0x11d0   : > { %v2708_v21 = vsel %vm1310_vm0, %v5661_v20, 0.0 }
0x11d1   : > { %2709 = vadd.xlane.f32.xlu0 %v2708_v21 }
0x11d3   : > { %v2703_v22 = vpop.f32.mrf.mxu0 }
0x11e5   : > { %2781 = vrot.lane.b32.xlu0 %v4666_v17, %s6131_s11 }
0x11ef   : > { %v2318_v24 = vpop.xlane.xlu2 %2317 }
0x11f0   : > { %v2319_v27 = vmul.f32 %v2318_v24, %v5379_v25 }
0x11f2   : > { %4901 = vrsqrt.f32 %v2319_v27  ;;  %vm2327_vm3 = vcmp.eq.f32.partialorder %v2319_v27, inf  ;;  %v2330_v35 = vand.u32 2147483648, %v2319_v27  ;;  %vm2329_vm4 = vcmp.eq.f32.partialorder %v2319_v27, 0.0 }
0x11f7   : > { %v2780_v40 = vpop.permute.xlu2 %2779 }
0x11f8   : > { %v4902_v28 = vpop.eup %4901 }
0x11f9   : > { %v2321_v29 = vmul.f32 %v4902_v28, %v2319_v27 }
0x11fb   : > { %v2322_v30 = vmul.f32 %v4902_v28, %v2321_v29 }
0x11fd   : > { %v2323_v5 = vmul.f32 0.5, %v2322_v30 }
0x11ff   : > { %v2324_v31 = vsub.f32 1.5, %v2323_v5 }
0x1201   : > { %v2325_v32 = vmul.f32 %v4902_v28, %v2324_v31 }
0x1203   : > { %v2326_v33 = vmul.f32 %v2325_v32, %v2319_v27 }
0x1205   : > { %v2328_v34 = vsel %vm2327_vm3, %v2319_v27, %v2326_v33  ;;  %v5706_v33 = vld [vmem:[%s1297_s9] sm:$0xff]  ;;  %s6143_s9 = sld [smem:[#allocation32_spill]] }
0x1206   : > { %v2331_v3 = vsel %vm2329_vm4, %v2330_v35, %v2328_v34 }
0x1207   : > { %v2332_v38 = vadd.f32 1e-06, %v2331_v3 }
0x1209   : > { %4903 = vrcp.f32 %v2332_v38 }
0x120f   : > { %v4904_v42 = vpop.eup %4903 }
0x1210   : > { %v2338_v45 = vmul.f32 %v4904_v42, %v2337_v43 }
0x1212   : > { %v2342_v48 = vadd.f32 %v4807_v46, %v2338_v45 }
0x1214   : > { %v5674_v49 = vpack.c.bf16 %v2342_v48, %v2342_v48 }
0x1244   : > { %v2710_v6 = vpop.xlane.xlu0 %2709 }
0x1245   : > { %v2711_v36 = vmul.f32 %v2710_v6, %v5372_v11 }
0x1247   : > { %v2712_v37 = vsub.f32 %v5661_v20, %v2711_v36 }
0x1249   : > { %v2713_v39 = vmul.f32 %v2712_v37, %v2712_v37  ;;  %v2735_v7 = vmul.f32 %v4806_v4, %v2712_v37 }
0x124b   : > { %v2714_v41 = vsel %vm1310_vm0, %v2713_v39, 0.0 }
0x124c   : > { %2715 = vadd.xlane.f32.xlu1 %v2714_v41 }
0x1257   : > { %v2782_v47 = vpop.permute.xlu0 %2781 }
0x1258   : > { %2797 = vmatpush.bf16.msra.mxu3 %v2782_v47 }
0x125c   : > { %2798 = vmatpush.bf16.msra.mxu3 %v2780_v40 }
0x125f   : > { %4474 = vmatmul.msk.bf16.vlgmr.msra.gmra.mxu3 %vm1310_vm0, %v5674_v49 }
0x1265   : > { %2785 = vrot.lane.b32.xlu1 %v4808_v51, %s6131_s11 }
0x12bf   : > { %v2716_v52 = vpop.xlane.xlu1 %2715 }
0x12c0   : > { %v2717_v53 = vmul.f32 %v2716_v52, %v5379_v25 }
0x12c2   : > { %4905 = vrsqrt.f32 %v2717_v53  ;;  %vm2725_vm9 = vcmp.eq.f32.partialorder %v2717_v53, inf  ;;  %v2728_v62 = vand.u32 2147483648, %v2717_v53  ;;  %vm2727_vm10 = vcmp.eq.f32.partialorder %v2717_v53, 0.0 }
0x12c8   : > { %v4906_v54 = vpop.eup %4905 }
0x12c9   : > { %v2719_v55 = vmul.f32 %v4906_v54, %v2717_v53 }
0x12cb   : > { %v2720_v56 = vmul.f32 %v4906_v54, %v2719_v55 }
0x12cd   : > { %v2721_v58 = vmul.f32 0.5, %v2720_v56 }
0x12cf   : > { %v2722_v59 = vsub.f32 1.5, %v2721_v58 }
0x12d1   : > { %v2723_v60 = vmul.f32 %v4906_v54, %v2722_v59 }
0x12d3   : > { %v2724_v61 = vmul.f32 %v2723_v60, %v2717_v53 }
0x12d5   : > { %v2726_v0 = vsel %vm2725_vm9, %v2717_v53, %v2724_v61 }
0x12d6   : > { %v2729_v1 = vsel %vm2727_vm10, %v2728_v62, %v2726_v0 }
0x12d7   : > { %v2730_v2 = vadd.f32 1e-06, %v2729_v1  ;;  %v2786_v10 = vpop.permute.xlu1 %2785 }
0x12d9   : > { %4907 = vrcp.f32 %v2730_v2 }
0x12df   : > { %v4908_v9 = vpop.eup %4907 }
0x12e0   : > { %v2736_v50 = vmul.f32 %v4908_v9, %v2735_v7 }
0x12e2   : > { %v2800_v12 = vpop.f32.mrf.mxu3  ;;  %v2740_v26 = vadd.f32 %v4809_v8, %v2736_v50 }
0x12e3   : > { %v2801_v13 = vadd.f32 %v2800_v12, %v2786_v10 }
0x12e4   : > { %v2746_v14 = vpack.c.bf16 %v2740_v26, %v2740_v26 }
0x12e5   : > { %v5683_v15 = vpack.c.bf16 %v2801_v13, %v2801_v13 }
0x12e6   : > { %4473 = vmatmul.msk.bf16.vlgmr.msra.gmra.mxu1 %vm1310_vm0, %v2746_v14 }
0x12e7   : > { %2980 = vrot.lane.b32.xlu1 %v5683_v15, %s6115_s8  ;;  %2864 = vrot.lane.b32.xlu0 %v5683_v15, %s6132_s15  ;;  %v2810_v16 = vsel %vm1399_vm5, %v5683_v15, 0 }
0x12e8   : > { %2819 = vmatpush.bf16.xpose.msrb.mxu2 %v2810_v16 }
0x12ea   : > { %v2802_v17 = vpop.f32.mrf.mxu3 }
0x12ef   : > { %2922 = vrot.lane.b32.xlu0 %v5683_v15, %s6112_s25 }
0x1359   : > { %v2981_v18 = vpop.permute.xlu1 %2980  ;;  %v2865_v19 = vpop.permute.xlu0 %2864 }
0x135a   : > { %v2986_v63 = vsel %vm1399_vm5, %v2981_v18, 0  ;;  %v2870_v21 = vsel %vm1399_vm5, %v2865_v19, 0 }
0x135b   : > { %2879 = vmatpush.bf16.xpose.msrb.mxu1 %v2870_v21 }
0x1361   : > { %v2923_v22 = vpop.permute.xlu0 %2922 }
0x1362   : > { %v2928_v23 = vsel %vm1399_vm5, %v2923_v22, 0 }
0x1363   : > { %2995 = vmatpush.bf16.xpose.msra.mxu1 %v2986_v63  ;;  %v2774_v24 = vpop.f32.mrf.mxu1  ;;  %2937 = vmatpush.bf16.xpose.msra.mxu2 %v2928_v23 }
0x1364   : > { %v2775_v27 = vadd.f32 %v4808_v51, %v2774_v24 }
0x1366   : > { %v2804_v28 = vpack.c.bf16 %v2775_v27, %v2775_v27 }
0x1368   : > { %2862 = vrot.lane.b32.xlu2 %v2804_v28, %s6132_s15  ;;  %2978 = vrot.lane.b32.xlu0 %v2804_v28, %s6115_s8 }
0x1369   : > { %4475 = vmatmul.msk.bf16.vlgmr.msrb.gmra.mxu2 %vm1399_vm5, %v2804_v28 }
0x136b   : > { %v2776_v29 = vpop.f32.mrf.mxu1 }
0x1370   : > { %2920 = vrot.lane.b32.xlu2 %v2804_v28, %s6112_s25 }
0x13c2   : > { %v2863_v30 = vpop.permute.xlu2 %2862 }
0x13c3   : > { %4477 = vmatmul.msk.bf16.vlgmr.msrb.gmra.mxu1 %vm1399_vm5, %v2863_v30 }
0x13ca   : > { %v2921_v5 = vpop.permute.xlu2 %2920 }
0x13cb   : > { %4479 = vmatmul.msk.bf16.vlgmr.msra.gmra.mxu2 %vm1399_vm5, %v2921_v5 }
0x13da   : > { %v2979_v31 = vpop.permute.xlu0 %2978 }
0x13db   : > { %4481 = vmatmul.msk.bf16.vlgmr.msra.gmra.mxu1 %vm1399_vm5, %v2979_v31 }
0x13ec   : > { %v2821_v32 = vpop.f32.mrf.mxu2 }
0x13ed   : > { %v2825_v34 = vmul.f32 0.35355338, %v2821_v32 }
0x13ef   : > { %v2826_v35 = vadd.f32 %v2825_v34, %v5706_v33 }
0x13f1   : > { %v2827_v6 = vsel %vm1399_vm5, %v2826_v35, -inf }
0x13f2   : > { %2828 = vmax.xlane.f32.xlu2 %v2827_v6 }
0x13f4   : > { %v2823_v36 = vpop.f32.mrf.mxu2 }
0x1440   : > { %v2881_v3 = vpop.f32.mrf.mxu1 }
0x1441   : > { %v2885_v37 = vmul.f32 0.35355338, %v2881_v3 }
0x1443   : > { %v2886_v38 = vadd.f32 %v2885_v37, %v5706_v33 }
0x1445   : > { %v2887_v39 = vsel %vm1399_vm5, %v2886_v38, -inf }
0x1446   : > { %2888 = vmax.xlane.f32.xlu1 %v2887_v39 }
0x1448   : > { %v2883_v41 = vpop.f32.mrf.mxu1 }
0x144e   : > { %v2939_v57 = vpop.f32.mrf.mxu2 }
0x144f   : > { %v2943_v42 = vmul.f32 0.35355338, %v2939_v57 }
0x1451   : > { %v2944_v43 = vadd.f32 %v2943_v42, %v5706_v33 }
0x1453   : > { %v2945_v45 = vsel %vm1399_vm5, %v2944_v43, -inf }
0x1454   : > { %2946 = vmax.xlane.f32.xlu1 %v2945_v45 }
0x1456   : > { %v2941_v46 = vpop.f32.mrf.mxu2 }
0x1457   : > { %v4668_v46 = vld [vmem:[%s6143_s9 + $0x8] sm:$0xff] }
0x1458   : > { %v2997_v47 = vpop.f32.mrf.mxu1  ;;  %3081 = vmatpush.bf16.msrb.mxu2 %v4668_v46 }
0x1459   : > { %v3001_v40 = vmul.f32 0.35355338, %v2997_v47  ;;  %v4667_v47 = vld [vmem:[%s6143_s9] sm:$0xff] }
0x145b   : > { %v3002_v48 = vadd.f32 %v3001_v40, %v5706_v33 }
0x145c   : > { %3082 = vmatpush.bf16.msrb.mxu2 %v4667_v47 }
0x145d   : > { %v3003_v51 = vsel %vm1399_vm5, %v3002_v48, -inf }
0x145e   : > { %3004 = vmax.xlane.f32.xlu0 %v3003_v51 }
0x1460   : > { %v2999_v52 = vpop.f32.mrf.mxu1 }
0x1465   : > { %v2829_v53 = vpop.xlane.xlu2 %2828 }
0x1466   : > { %v2830_v54 = vsub.f32 %v2826_v35, %v2829_v53 }
0x1468   : > { %v2831_v55 = vmul.f32 1.442695, %v2830_v54 }
0x146a   : > { %4909 = vpow2.f32 %v2831_v55 }
0x146d   : > { %2899 = vrot.lane.b32.xlu1 %v5683_v15, %s6111_s5 }
0x1470   : > { %v4910_v56 = vpop.eup %4909 }
0x1471   : > { %v2833_v58 = vsel %vm1399_vm5, %v4910_v56, 0.0 }
0x1472   : > { %2834 = vadd.xlane.f32.xlu0 %v2833_v58 }
0x1475   : > { %2957 = vrot.lane.b32.xlu1 %v5683_v15, %s6113_s23 }
0x14b9   : > { %v2889_v59 = vpop.xlane.xlu1 %2888 }
0x14ba   : > { %v2890_v60 = vsub.f32 %v2886_v38, %v2889_v59 }
0x14bc   : > { %v2891_v61 = vmul.f32 1.442695, %v2890_v60 }
0x14be   : > { %4911 = vpow2.f32 %v2891_v61 }
0x14c4   : > { %v4912_v62 = vpop.eup %4911 }
0x14c5   : > { %v2893_v0 = vsel %vm1399_vm5, %v4912_v62, 0.0 }
0x14c6   : > { %2894 = vadd.xlane.f32.xlu2 %v2893_v0 }
0x14c7   : > { %v2947_v1 = vpop.xlane.xlu1 %2946 }
0x14c8   : > { %v2948_v2 = vsub.f32 %v2944_v43, %v2947_v1 }
0x14ca   : > { %v2949_v4 = vmul.f32 1.442695, %v2948_v2 }
0x14cc   : > { %4913 = vpow2.f32 %v2949_v4 }
0x14d1   : > { %v3005_v7 = vpop.xlane.xlu0 %3004 }
0x14d2   : > { %v4914_v8 = vpop.eup %4913  ;;  %v3006_v9 = vsub.f32 %v3002_v48, %v3005_v7 }
0x14d3   : > { %v2951_v10 = vsel %vm1399_vm5, %v4914_v8, 0.0 }
0x14d4   : > { %v3007_v50 = vmul.f32 1.442695, %v3006_v9  ;;  %2952 = vadd.xlane.f32.xlu0 %v2951_v10  ;;  %v4669_v9 = vld [vmem:[%s6145_s16] sm:$0xff] }
0x14d6   : > { %4915 = vpow2.f32 %v3007_v50  ;;  %v4674_v50 = vld [vmem:[%s6146_s21 + $0x18] sm:$0xff] }
0x14d7   : > { %3206 = vmatpush.bf16.msrb.mxu1 %v4674_v50 }
0x14dc   : > { %v4916_v12 = vpop.eup %4915 }
0x14dd   : > { %v3009_v26 = vsel %vm1399_vm5, %v4916_v12, 0.0 }
0x14de   : > { %2840 = vrot.lane.b32.xlu2 %v5683_v15, %s6131_s11  ;;  %3010 = vadd.xlane.f32.xlu0 %v3009_v26  ;;  %v4673_v26 = vld [vmem:[%s6146_s21 + $0x10] sm:$0xff] }
0x14df   : > { %v2900_v13 = vpop.permute.xlu1 %2899  ;;  %3207 = vmatpush.bf16.msrb.mxu1 %v4673_v26  ;;  %v4817_v26 = vld [vmem:[%s6130_s28 + $0x1] ss:$0 sm:$0xff] }
0x14e0   : > { %v2905_v14 = vsel %vm1438_vm6, %v2900_v13, 0 }
0x14e1   : > { %2914 = vmatpush.bf16.msrb.mxu3 %v2905_v14 }
0x14e5   : > { %v2835_v16 = vpop.xlane.xlu0 %2834 }
0x14e6   : > { %4917 = vrcp.f32 %v2835_v16 }
0x14e7   : > { %v2958_v21 = vpop.permute.xlu1 %2957 }
0x14e8   : > { %v2963_v27 = vsel %vm1438_vm6, %v2958_v21, 0 }
0x14ec   : > { %v4918_v18 = vpop.eup %4917 }
0x14ed   : > { %v2837_v63 = vmul.f32 %v4918_v18, %v4910_v56  ;;  %v4810_v56 = vld [vmem:[%s6144_s29] ss:$0 sm:$0xff]  ;;  %s6150_s29 = sld [smem:[#allocation37_spill]] }
0x14ef   : > { %v2838_v29 = vpack.c.bf16 %v2837_v63, %v2837_v63 }
0x14f2   : > { %3015 = vrot.lane.b32.xlu0 %v5683_v15, %s6114_s3 }
0x1539   : > { %v2895_v17 = vpop.xlane.xlu2 %2894 }
0x153a   : > { %4919 = vrcp.f32 %v2895_v17 }
0x1540   : > { %v4920_v19 = vpop.eup %4919 }
0x1541   : > { %v2897_v22 = vmul.f32 %v4920_v19, %v4912_v62  ;;  %v2841_v23 = vpop.permute.xlu2 %2840 }
0x1542   : > { %v2846_v24 = vsel %vm1438_vm6, %v2841_v23, 0 }
0x1543   : > { %v2898_v28 = vpack.c.bf16 %v2897_v22, %v2897_v22  ;;  %2855 = vmatpush.bf16.msrb.mxu0 %v2846_v24  ;;  %v4811_v24 = vld [vmem:[%s6147_s0] ss:$0 sm:$0xff] }
0x1545   : > { %4478 = vmatmul.msk.bf16.vlgmr.msrb.gmra.mxu3 %vm1399_vm5, %v2898_v28  ;;  %v4812_v28 = vld [vmem:[%s5296_s12] ss:$0 sm:$0xff] }
0x1546   : > { %4476 = vmatmul.msk.bf16.vlgmr.msrb.gmra.mxu0 %vm1399_vm5, %v2838_v29 }
0x1547   : > { %2972 = vmatpush.bf16.msra.mxu0 %v2963_v27  ;;  %v2953_v15 = vpop.xlane.xlu0 %2952 }
0x1548   : > { %4921 = vrcp.f32 %v2953_v15 }
0x154e   : > { %v4922_v30 = vpop.eup %4921 }
0x154f   : > { %v2955_v5 = vmul.f32 %v4922_v30, %v4914_v8  ;;  %v4670_v8 = vld [vmem:[%s6145_s16 + $0x8] sm:$0xff]  ;;  %s6149_s16 = smov %s6148_s10 }
0x1550   : > { %3154 = vmatpush.bf16.msrb.mxu0 %v4670_v8 }
0x1551   : > { %v2956_v31 = vpack.c.bf16 %v2955_v5, %v2955_v5  ;;  %v3011_v32 = vpop.xlane.xlu0 %3010 }
0x1552   : > { %4923 = vrcp.f32 %v3011_v32  ;;  %v4671_v32 = vld [vmem:[%s6146_s21] sm:$0xff] }
0x1554   : > { %3155 = vmatpush.bf16.msrb.mxu0 %v4669_v9  ;;  %v4816_v9 = vld [vmem:[%s6129_s19 + $0x1] ss:$0 sm:$0xff] }
0x1556   : > { %4480 = vmatmul.msk.bf16.vlgmr.msra.gmra.mxu0 %vm1399_vm5, %v2956_v31  ;;  %v4672_v31 = vld [vmem:[%s6146_s21 + $0x8] sm:$0xff] }
0x1557   : > { %3208 = vmatpush.bf16.msrb.mxu1 %v4672_v31 }
0x1558   : > { %v4924_v34 = vpop.eup %4923 }
0x1559   : > { %v3013_v35 = vmul.f32 %v4924_v34, %v4916_v12  ;;  %v4813_v34 = vld [vmem:[%s6148_s10] ss:$0 sm:$0xff]  ;;  %s6158_s10 = sld [smem:[#allocation44_spill]] }
0x155b   : > { %v3014_v3 = vpack.c.bf16 %v3013_v35, %v3013_v35  ;;  %3209 = vmatpush.bf16.msrb.mxu1 %v4671_v32 }
0x1564   : > { %v3016_v6 = vpop.permute.xlu0 %3015 }
0x1565   : > { %v3021_v36 = vsel %vm1438_vm6, %v3016_v6, 0 }
0x1566   : > { %3030 = vmatpush.bf16.msra.mxu3 %v3021_v36 }
0x1569   : > { %4482 = vmatmul.msk.bf16.vlgmr.msra.gmra.mxu3 %vm1399_vm5, %v3014_v3 }
0x15c3   : > { %v2857_v37 = vpop.f32.mrf.mxu0 }
0x15c8   : > { %v2916_v38 = vpop.f32.mrf.mxu3 }
0x15c9   : > { %3037 = vrot.lane.b32.xlu2 %v2916_v38, %s6122_s18  ;;  %v4814_v38 = vld [vmem:[%s6150_s29] ss:$0 sm:$0xff] }
0x15cb   : > { %v2859_v39 = vpop.f32.mrf.mxu0 }
0x15d0   : > { %v2918_v41 = vpop.f32.mrf.mxu3 }
0x15d3   : > { %v2974_v57 = vpop.f32.mrf.mxu0 }
0x15d4   : > { %3041 = vrot.lane.b32.xlu1 %v2974_v57, %s6124_s7 }
0x15db   : > { %v2976_v42 = vpop.f32.mrf.mxu0 }
0x15ec   : > { %v3032_v43 = vpop.f32.mrf.mxu3 }
0x15ed   : > { %3045 = vrot.lane.b32.xlu2 %v3032_v43, %s6123_s1 }
0x15f4   : > { %v3034_v45 = vpop.f32.mrf.mxu3 }
0x1623   : > { %v3038_v40 = vpop.permute.xlu2 %3037 }
0x1624   : > { %v3048_v48 = vsel %vm1399_vm5, %v2857_v37, %v3038_v40 }
0x1646   : > { %v3042_v51 = vpop.permute.xlu1 %3041 }
0x1647   : > { %v3049_v52 = vsel %vm1642_vm7, %v3048_v48, %v3042_v51  ;;  %v3046_v53 = vpop.permute.xlu2 %3045  ;;  %v4676_v51 = vld [vmem:[%s6125_s27 + $0x18] sm:$0xff] }
0x1648   : > { %v3050_v54 = vsel %vm1644_vm8, %v3049_v52, %v3046_v53  ;;  %3285 = vmatpush.bf16.msrb.mxu3 %v4676_v51  ;;  %v4675_v52 = vld [vmem:[%s6125_s27 + $0x10] sm:$0xff] }
0x1649   : > { %v3056_v55 = vpack.c.bf16 %v3050_v54, %v3050_v54 }
0x164b   : > { %4491 = vmatmul.msk.bf16.vlgmr.msrb.gmra.mxu2 %vm1310_vm0, %v3056_v55 }
0x164c   : > { %3286 = vmatpush.bf16.msrb.mxu3 %v4675_v52 }
0x16ce   : > { %v3084_v58 = vpop.f32.mrf.mxu2 }
0x16cf   : > { %v3085_v59 = vadd.f32 %v4810_v56, %v3084_v58 }
0x16d1   : > { %v3088_v60 = vadd.f32 %v3085_v59, %v5661_v20 }
0x16d3   : > { %v3091_v61 = vsel %vm1310_vm0, %v3088_v60, 0.0 }
0x16d4   : > { %3092 = vadd.xlane.f32.xlu1 %v3091_v61 }
0x16d6   : > { %v3086_v62 = vpop.f32.mrf.mxu2 }
0x1747   : > { %v3093_v0 = vpop.xlane.xlu1 %3092 }
0x1748   : > { %v3094_v1 = vmul.f32 %v3093_v0, %v5372_v11 }
0x174a   : > { %v3095_v2 = vsub.f32 %v3088_v60, %v3094_v1 }
0x174c   : > { %v3096_v4 = vmul.f32 %v3095_v2, %v3095_v2  ;;  %v3118_v27 = vmul.f32 %v4811_v24, %v3095_v2 }
0x174e   : > { %v3097_v7 = vsel %vm1310_vm0, %v3096_v4, 0.0 }
0x174f   : > { %3098 = vadd.xlane.f32.xlu0 %v3097_v7  ;;  %v4815_v7 = vld [vmem:[%s6127_s14 + $0x1] ss:$0 sm:$0xff] }
0x17c2   : > { %v3099_v10 = vpop.xlane.xlu0 %3098 }
0x17c3   : > { %v3100_v20 = vmul.f32 %v3099_v10, %v5379_v25 }
0x17c5   : > { %4925 = vrsqrt.f32 %v3100_v20  ;;  %vm3108_vm12 = vcmp.eq.f32.partialorder %v3100_v20, inf  ;;  %v3111_v63 = vand.u32 2147483648, %v3100_v20  ;;  %vm3110_vm13 = vcmp.eq.f32.partialorder %v3100_v20, 0.0 }
0x17cb   : > { %v4926_v12 = vpop.eup %4925 }
0x17cc   : > { %v3102_v13 = vmul.f32 %v4926_v12, %v3100_v20 }
0x17ce   : > { %v3103_v14 = vmul.f32 %v4926_v12, %v3102_v13 }
0x17d0   : > { %v3104_v16 = vmul.f32 0.5, %v3103_v14 }
0x17d2   : > { %v3105_v17 = vsub.f32 1.5, %v3104_v16 }
0x17d4   : > { %v3106_v18 = vmul.f32 %v4926_v12, %v3105_v17 }
0x17d6   : > { %v3107_v19 = vmul.f32 %v3106_v18, %v3100_v20 }
0x17d8   : > { %v3109_v21 = vsel %vm3108_vm12, %v3100_v20, %v3107_v19 }
0x17d9   : > { %v3112_v22 = vsel %vm3110_vm13, %v3111_v63, %v3109_v21 }
0x17da   : > { %v3113_v23 = vadd.f32 1e-06, %v3112_v22 }
0x17dc   : > { %4927 = vrcp.f32 %v3113_v23 }
0x17e2   : > { %v4928_v29 = vpop.eup %4927 }
0x17e3   : > { %v3119_v15 = vmul.f32 %v4928_v29, %v3118_v27 }
0x17e5   : > { %v3123_v30 = vadd.f32 %v4812_v28, %v3119_v15 }
0x17e7   : > { %v3129_v5 = vpack.c.bf16 %v3123_v30, %v3123_v30 }
0x17e9   : > { %4500 = vmatmul.msk.bf16.vlgmr.msrb.gmra.mxu0 %vm1310_vm0, %v3129_v5 }
0x1866   : > { %v3157_v35 = vpop.f32.mrf.mxu0 }
0x1867   : > { %v3158_v6 = vadd.f32 %v4813_v34, %v3157_v35 }
0x1869   : > { %v3161_v36 = vmax.f32 %v3158_v6, 0.0 }
0x186b   : > { %v3171_v3 = vpack.c.bf16 %v3161_v36, %v3161_v36 }
0x186d   : > { %4517 = vmatmul.msk.bf16.vlgmr.msrb.gmra.mxu1 %vm1794_vm11, %v3171_v3 }
0x186e   : > { %v3159_v37 = vpop.f32.mrf.mxu0 }
0x18ea   : > { %v3211_v39 = vpop.f32.mrf.mxu1 }
0x18eb   : > { %v3212_v41 = vadd.f32 %v4814_v38, %v3211_v39 }
0x18ed   : > { %v5763_v57 = vadd.f32 %v3212_v41, %v3088_v60 }
0x18ef   : > { %v3220_v42 = vsel %vm1310_vm0, %v5763_v57, 0.0 }
0x18f0   : > { %3221 = vadd.xlane.f32.xlu2 %v3220_v42 }
0x18f2   : > { %v3213_v43 = vpop.f32.mrf.mxu1 }
0x1963   : > { %v3222_v45 = vpop.xlane.xlu2 %3221 }
0x1964   : > { %v3223_v46 = vmul.f32 %v3222_v45, %v5372_v11 }
0x1966   : > { %v3224_v47 = vsub.f32 %v5763_v57, %v3223_v46 }
0x1968   : > { %v3225_v40 = vmul.f32 %v3224_v47, %v3224_v47  ;;  %v3247_v8 = vmul.f32 %v4815_v7, %v3224_v47 }
0x196a   : > { %v3226_v48 = vsel %vm1310_vm0, %v3225_v40, 0.0 }
0x196b   : > { %3227 = vadd.xlane.f32.xlu1 %v3226_v48 }
0x19de   : > { %v3228_v53 = vpop.xlane.xlu1 %3227 }
0x19df   : > { %v3229_v54 = vmul.f32 %v3228_v53, %v5379_v25 }
0x19e1   : > { %4929 = vrsqrt.f32 %v3229_v54  ;;  %vm3237_vm14 = vcmp.eq.f32.partialorder %v3229_v54, inf  ;;  %v3240_v0 = vand.u32 2147483648, %v3229_v54  ;;  %vm3239_vm15 = vcmp.eq.f32.partialorder %v3229_v54, 0.0 }
0x19e7   : > { %v4930_v55 = vpop.eup %4929 }
0x19e8   : > { %v3231_v56 = vmul.f32 %v4930_v55, %v3229_v54 }
0x19ea   : > { %v3232_v58 = vmul.f32 %v4930_v55, %v3231_v56 }
0x19ec   : > { %v3233_v59 = vmul.f32 0.5, %v3232_v58 }
0x19ee   : > { %v3234_v60 = vsub.f32 1.5, %v3233_v59 }
0x19f0   : > { %v3235_v61 = vmul.f32 %v4930_v55, %v3234_v60 }
0x19f2   : > { %v3236_v62 = vmul.f32 %v3235_v61, %v3229_v54 }
0x19f4   : > { %v3238_v1 = vsel %vm3237_vm14, %v3229_v54, %v3236_v62 }
0x19f5   : > { %v3241_v2 = vsel %vm3239_vm15, %v3240_v0, %v3238_v1 }
0x19f6   : > { %v3242_v4 = vadd.f32 1e-06, %v3241_v2 }
0x19f8   : > { %4931 = vrcp.f32 %v3242_v4 }
0x19fe   : > { %v4932_v10 = vpop.eup %4931 }
0x19ff   : > { %v3248_v20 = vmul.f32 %v4932_v10, %v3247_v8 }
0x1a01   : > { %v3252_v50 = vadd.f32 %v4816_v9, %v3248_v20 }
0x1a03   : > { %v3260_v12 = vpack.c.bf16 %v3252_v50, %v3252_v50 }
0x1a05   : > { %4533 = vmatmul.msk.bf16.vlgmr.msrb.gmra.mxu3 %vm1310_vm0, %v3260_v12 }
0x1a88   : > { %v3288_v13 = vpop.f32.mrf.mxu3 }
0x1a89   : > { %v3289_v14 = vadd.f32 %v4817_v26, %v3288_v13  ;;  %v4680_v13 = vld [vmem:[%s6135_s4 + $0x18] sm:$0xff] }
0x1a8b   : > { %v5777_v16 = vpack.c.bf16 %v3289_v14, %v3289_v14  ;;  %v4679_v14 = vld [vmem:[%s6135_s4 + $0x10] sm:$0xff] }
0x1a8d   : > { %3350 = vrot.lane.b32.xlu1 %v5777_v16, %s6132_s15  ;;  %3352 = vrot.lane.b32.xlu2 %v5777_v16, %s6111_s5 }
0x1a8e   : > { %3294 = vrot.lane.b32.xlu0 %v5777_v16, %s6131_s11 }
0x1a90   : > { %v3290_v17 = vpop.f32.mrf.mxu3 }
0x1a95   : > { %3466 = vrot.lane.b32.xlu1 %v5777_v16, %s6115_s8  ;;  %3468 = vrot.lane.b32.xlu2 %v5777_v16, %s6114_s3 }
0x1a96   : > { %3410 = vrot.lane.b32.xlu0 %v5777_v16, %s6113_s23 }
0x1a9e   : > { %3408 = vrot.lane.b32.xlu0 %v5777_v16, %s6112_s25 }
0x1ae7   : > { %v3353_v18 = vpop.permute.xlu2 %3352 }
0x1ae8   : > { %v3358_v19 = vsel %vm1399_vm5, %v3353_v18, 0 }
0x1ae9   : > { %3367 = vmatpush.bf16.xpose.msra.mxu1 %v3358_v19 }
0x1aef   : > { %v3469_v63 = vpop.permute.xlu2 %3468 }
0x1af0   : > { %v3474_v21 = vsel %vm1399_vm5, %v3469_v63, 0 }
0x1af1   : > { %3483 = vmatpush.bf16.xpose.msrb.mxu1 %v3474_v21 }
0x1aff   : > { %v3351_v22 = vpop.permute.xlu1 %3350 }
0x1b00   : > { %v3295_v23 = vpop.permute.xlu0 %3294  ;;  %4536 = vmatmul.msk.bf16.vlgmr.msra.gmra.mxu1 %vm1399_vm5, %v3351_v22 }
0x1b01   : > { %v3300_v24 = vsel %vm1399_vm5, %v3295_v23, 0 }
0x1b02   : > { %3309 = vmatpush.bf16.xpose.msra.mxu2 %v3300_v24 }
0x1b07   : > { %v3467_v29 = vpop.permute.xlu1 %3466 }
0x1b08   : > { %v3411_v27 = vpop.permute.xlu0 %3410 }
0x1b09   : > { %v3416_v28 = vsel %vm1399_vm5, %v3411_v27, 0  ;;  %4534 = vmatmul.msk.bf16.vlgmr.msra.gmra.mxu2 %vm1399_vm5, %v5777_v16 }
0x1b0a   : > { %3425 = vmatpush.bf16.xpose.msrb.mxu2 %v3416_v28 }
0x1b10   : > { %4540 = vmatmul.msk.bf16.vlgmr.msrb.gmra.mxu1 %vm1399_vm5, %v3467_v29  ;;  %v3409_v15 = vpop.permute.xlu0 %3408  ;;  %v5832_v29 = vld [vmem:[%s6139_s30 + $0x1] ss:$0 sm:$0xff] }
0x1b19   : > { %4538 = vmatmul.msk.bf16.vlgmr.msrb.gmra.mxu2 %vm1399_vm5, %v3409_v15 }
0x1b7d   : > { %v3369_v30 = vpop.f32.mrf.mxu1 }
0x1b7e   : > { %v3373_v5 = vmul.f32 0.35355338, %v3369_v30 }
0x1b80   : > { %v3374_v31 = vadd.f32 %v3373_v5, %v5611_v44 }
0x1b82   : > { %v3375_v32 = vsel %vm1399_vm5, %v3374_v31, -inf }
0x1b83   : > { %3376 = vmax.xlane.f32.xlu2 %v3375_v32 }
0x1b85   : > { %v3371_v34 = vpop.f32.mrf.mxu1 }
0x1b8c   : > { %v3311_v35 = vpop.f32.mrf.mxu2 }
0x1b8d   : > { %v3315_v6 = vmul.f32 0.35355338, %v3311_v35  ;;  %v3485_v36 = vpop.f32.mrf.mxu1 }
0x1b8e   : > { %v3489_v3 = vmul.f32 0.35355338, %v3485_v36 }
0x1b8f   : > { %v3316_v37 = vadd.f32 %v3315_v6, %v5611_v44 }
0x1b90   : > { %v3490_v38 = vadd.f32 %v3489_v3, %v5611_v44 }
0x1b91   : > { %v3317_v39 = vsel %vm1399_vm5, %v3316_v37, -inf }
0x1b92   : > { %3318 = vmax.xlane.f32.xlu0 %v3317_v39  ;;  %v3491_v41 = vsel %vm1399_vm5, %v3490_v38, -inf }
0x1b93   : > { %3492 = vmax.xlane.f32.xlu1 %v3491_v41 }
0x1b94   : > { %v3313_v42 = vpop.f32.mrf.mxu2 }
0x1b95   : > { %v3487_v43 = vpop.f32.mrf.mxu1 }
0x1b9c   : > { %v3427_v45 = vpop.f32.mrf.mxu2 }
0x1b9d   : > { %v3431_v46 = vmul.f32 0.35355338, %v3427_v45 }
0x1b9f   : > { %v3432_v47 = vadd.f32 %v3431_v46, %v5611_v44 }
0x1ba1   : > { %v3433_v40 = vsel %vm1399_vm5, %v3432_v47, -inf }
0x1ba2   : > { %3434 = vmax.xlane.f32.xlu2 %v3433_v40 }
0x1ba4   : > { %v3429_v48 = vpop.f32.mrf.mxu2 }
0x1ba6   : > { %3329 = vrot.lane.b32.xlu0 %v5777_v16, %s6118_s13  ;;  %s6151_s13 = sld [smem:[#allocation33_spill]] }
0x1bac   : > { %3387 = vrot.lane.b32.xlu1 %v5777_v16, %s6116_s2 }
0x1bf6   : > { %v3377_v51 = vpop.xlane.xlu2 %3376 }
0x1bf7   : > { %v3378_v52 = vsub.f32 %v3374_v31, %v3377_v51 }
0x1bf9   : > { %v3379_v53 = vmul.f32 1.442695, %v3378_v52 }
0x1bfb   : > { %4933 = vpow2.f32 %v3379_v53 }
0x1c01   : > { %v4934_v54 = vpop.eup %4933 }
0x1c02   : > { %v3381_v55 = vsel %vm1399_vm5, %v4934_v54, 0.0 }
0x1c03   : > { %3382 = vadd.xlane.f32.xlu0 %v3381_v55  ;;  %v4677_v55 = vld [vmem:[%s6134_s6 + $0x10] sm:$0xff] }
0x1c05   : > { %v3319_v56 = vpop.xlane.xlu0 %3318 }
0x1c06   : > { %v3320_v44 = vsub.f32 %v3316_v37, %v3319_v56  ;;  %v3493_v58 = vpop.xlane.xlu1 %3492 }
0x1c07   : > { %v3494_v60 = vsub.f32 %v3490_v38, %v3493_v58 }
0x1c08   : > { %v3321_v59 = vmul.f32 1.442695, %v3320_v44 }
0x1c09   : > { %v3495_v61 = vmul.f32 1.442695, %v3494_v60 }
0x1c0a   : > { %4935 = vpow2.f32 %v3321_v59 }
0x1c0b   : > { %4937 = vpow2.f32 %v3495_v61 }
0x1c10   : > { %v4936_v62 = vpop.eup %4935 }
0x1c11   : > { %v3323_v0 = vsel %vm1399_vm5, %v4936_v62, 0.0  ;;  %v4938_v2 = vpop.eup %4937 }
0x1c12   : > { %3324 = vadd.xlane.f32.xlu2 %v3323_v0  ;;  %v3497_v10 = vsel %vm1399_vm5, %v4938_v2, 0.0 }
0x1c15   : > { %v3435_v1 = vpop.xlane.xlu2 %3434 }
0x1c16   : > { %v3436_v4 = vsub.f32 %v3432_v47, %v3435_v1 }
0x1c17   : > { %3445 = vrot.lane.b32.xlu0 %v5777_v16, %s6119_s20  ;;  %s6155_s20 = sld [smem:[#allocation43_spill]] }
0x1c18   : > { %v3437_v7 = vmul.f32 1.442695, %v3436_v4  ;;  %v3330_v8 = vpop.permute.xlu0 %3329 }
0x1c19   : > { %v3335_v9 = vsel %vm1438_vm6, %v3330_v8, 0 }
0x1c1a   : > { %4939 = vpow2.f32 %v3437_v7  ;;  %3498 = vadd.xlane.f32.xlu2 %v3497_v10  ;;  %3344 = vmatpush.bf16.msra.mxu0 %v3335_v9  ;;  %v4819_v7 = vld [vmem:[%s6136_s17 + $0x1] ss:$0 sm:$0xff] }
0x1c1e   : > { %v3388_v20 = vpop.permute.xlu1 %3387 }
0x1c1f   : > { %v3393_v50 = vsel %vm1438_vm6, %v3388_v20, 0 }
0x1c20   : > { %v4940_v12 = vpop.eup %4939  ;;  %3402 = vmatpush.bf16.msra.mxu3 %v3393_v50 }
0x1c21   : > { %v3439_v26 = vsel %vm1399_vm5, %v4940_v12, 0.0 }
0x1c22   : > { %3440 = vadd.xlane.f32.xlu2 %v3439_v26 }
0x1c3a   : > { %3503 = vrot.lane.b32.xlu2 %v5777_v16, %s6117_s22 }
0x1c42   : > { %3657 = vrot.lane.b32.xlu2 %v4680_v13, %s6131_s11 }
0x1c4a   : > { %3655 = vrot.lane.b32.xlu2 %v4679_v14, %s6131_s11 }
0x1c52   : > { %3661 = vrot.lane.b32.xlu2 %v5832_v29, %s6131_s11 }
0x1c76   : > { %v3383_v17 = vpop.xlane.xlu0 %3382 }
0x1c77   : > { %4941 = vrcp.f32 %v3383_v17 }
0x1c7d   : > { %v4942_v18 = vpop.eup %4941 }
0x1c7e   : > { %v3385_v19 = vmul.f32 %v4942_v18, %v4934_v54  ;;  %v4678_v54 = vld [vmem:[%s6134_s6 + $0x18] sm:$0xff] }
0x1c7f   : > { %3571 = vmatpush.bf16.msra.mxu2 %v4678_v54 }
0x1c80   : > { %v3386_v63 = vpack.c.bf16 %v3385_v19, %v3385_v19 }
0x1c82   : > { %4537 = vmatmul.msk.bf16.vlgmr.msra.gmra.mxu3 %vm1399_vm5, %v3386_v63 }
0x1c83   : > { %3572 = vmatpush.bf16.msra.mxu2 %v4677_v55 }
0x1c85   : > { %v3325_v21 = vpop.xlane.xlu2 %3324 }
0x1c86   : > { %4943 = vrcp.f32 %v3325_v21 }
0x1c89   : > { %v3446_v22 = vpop.permute.xlu0 %3445 }
0x1c8a   : > { %v3451_v23 = vsel %vm1438_vm6, %v3446_v22, 0 }
0x1c8b   : > { %3460 = vmatpush.bf16.msrb.mxu0 %v3451_v23 }
0x1c8c   : > { %v4944_v16 = vpop.eup %4943 }
0x1c8d   : > { %v3327_v24 = vmul.f32 %v4944_v16, %v4936_v62  ;;  %v3499_v27 = vpop.xlane.xlu2 %3498 }
0x1c8e   : > { %4945 = vrcp.f32 %v3499_v27 }
0x1c8f   : > { %v3328_v28 = vpack.c.bf16 %v3327_v24, %v3327_v24 }
0x1c91   : > { %4535 = vmatmul.msk.bf16.vlgmr.msra.gmra.mxu0 %vm1399_vm5, %v3328_v28 }
0x1c92   : > { %3648 = vmatpush.bf16.msra.mxu0 %v4680_v13 }
0x1c94   : > { %v4946_v30 = vpop.eup %4945 }
0x1c95   : > { %v3441_v15 = vpop.xlane.xlu2 %3440  ;;  %v3501_v31 = vmul.f32 %v4946_v30, %v4938_v2 }
0x1c96   : > { %4947 = vrcp.f32 %v3441_v15  ;;  %3649 = vmatpush.bf16.msra.mxu0 %v4679_v14 }
0x1c97   : > { %v3502_v36 = vpack.c.bf16 %v3501_v31, %v3501_v31 }
0x1c9c   : > { %v4948_v5 = vpop.eup %4947 }
0x1c9d   : > { %v3443_v32 = vmul.f32 %v4948_v5, %v4940_v12  ;;  %v3504_v34 = vpop.permute.xlu2 %3503  ;;  %v4820_v5 = vld [vmem:[%s6140_s24 + $0x1] ss:$0 sm:$0xff] }
0x1c9e   : > { %v3509_v35 = vsel %vm1438_vm6, %v3504_v34, 0 }
0x1c9f   : > { %v3444_v6 = vpack.c.bf16 %v3443_v32, %v3443_v32  ;;  %3518 = vmatpush.bf16.msrb.mxu3 %v3509_v35  ;;  %v4821_v32 = vld [vmem:[%s6141_s26 + $0x1] ss:$0 sm:$0xff] }
0x1ca1   : > { %4539 = vmatmul.msk.bf16.vlgmr.msrb.gmra.mxu0 %vm1399_vm5, %v3444_v6 }
0x1ca2   : > { %4541 = vmatmul.msk.bf16.vlgmr.msrb.gmra.mxu3 %vm1399_vm5, %v3502_v36 }
0x1ca5   : > { %v3658_v3 = vpop.permute.xlu2 %3657 }
0x1ca6   : > { %3670 = vmatpush.bf16.msra.mxu1 %v3658_v3 }
0x1cad   : > { %v3656_v37 = vpop.permute.xlu2 %3655 }
0x1cae   : > { %3671 = vmatpush.bf16.msra.mxu1 %v3656_v37 }
0x1cb1   : > { %4572 = vmatmul.msk.bf16.vlgmr.msra.gmra.mxu1 %vm1310_vm0, %v5674_v49 }
0x1cb5   : > { %v3662_v47 = vpop.permute.xlu2 %3661 }
0x1d05   : > { %v3404_v38 = vpop.f32.mrf.mxu3 }
0x1d06   : > { %3525 = vrot.lane.b32.xlu1 %v3404_v38, %s6122_s18 }
0x1d0d   : > { %v3406_v39 = vpop.f32.mrf.mxu3 }
0x1d0e   : > { %v3346_v41 = vpop.f32.mrf.mxu0 }
0x1d16   : > { %v3348_v42 = vpop.f32.mrf.mxu0 }
0x1d1e   : > { %v3462_v43 = vpop.f32.mrf.mxu0 }
0x1d1f   : > { %3529 = vrot.lane.b32.xlu0 %v3462_v43, %s6124_s7 }
0x1d25   : > { %v3520_v45 = vpop.f32.mrf.mxu3 }
0x1d26   : > { %3533 = vrot.lane.b32.xlu1 %v3520_v45, %s6123_s1  ;;  %v3464_v46 = vpop.f32.mrf.mxu0 }
0x1d2d   : > { %v3522_v40 = vpop.f32.mrf.mxu3 }
0x1d2e   : > { %v3673_v48 = vpop.f32.mrf.mxu1 }
0x1d2f   : > { %v3674_v51 = vadd.f32 %v3673_v48, %v3662_v47 }
0x1d31   : > { %v5844_v49 = vpack.c.bf16 %v3674_v51, %v3674_v51 }
0x1d33   : > { %3737 = vrot.lane.b32.xlu2 %v5844_v49, %s6132_s15  ;;  %v3683_v52 = vsel %vm1399_vm5, %v5844_v49, 0 }
0x1d34   : > { %3692 = vmatpush.bf16.xpose.msra.mxu3 %v3683_v52 }
0x1d36   : > { %v3675_v53 = vpop.f32.mrf.mxu1 }
0x1d3b   : > { %3795 = vrot.lane.b32.xlu2 %v5844_v49, %s6112_s25 }
0x1d43   : > { %3853 = vrot.lane.b32.xlu2 %v5844_v49, %s6115_s8 }
0x1d78   : > { %v3526_v58 = vpop.permute.xlu1 %3525 }
0x1d79   : > { %v3536_v62 = vsel %vm1399_vm5, %v3346_v41, %v3526_v58 }
0x1d8d   : > { %v3738_v56 = vpop.permute.xlu2 %3737 }
0x1d8e   : > { %v3743_v44 = vsel %vm1399_vm5, %v3738_v56, 0 }
0x1d8f   : > { %3752 = vmatpush.bf16.xpose.msrb.mxu0 %v3743_v44 }
0x1d91   : > { %v3530_v59 = vpop.permute.xlu0 %3529 }
0x1d92   : > { %v3537_v0 = vsel %vm1642_vm7, %v3536_v62, %v3530_v59 }
0x1d95   : > { %v3796_v60 = vpop.permute.xlu2 %3795 }
0x1d96   : > { %v3801_v61 = vsel %vm1399_vm5, %v3796_v60, 0 }
0x1d97   : > { %3810 = vmatpush.bf16.xpose.msrb.mxu3 %v3801_v61 }
0x1d98   : > { %v3534_v1 = vpop.permute.xlu1 %3533 }
0x1d99   : > { %v3538_v2 = vsel %vm1644_vm8, %v3537_v0, %v3534_v1 }
0x1d9a   : > { %v3546_v4 = vpack.c.bf16 %v3538_v2, %v3538_v2 }
0x1d9c   : > { %4555 = vmatmul.msk.bf16.vlgmr.msra.gmra.mxu2 %vm1310_vm0, %v3546_v4 }
0x1d9d   : > { %v3854_v36 = vpop.permute.xlu2 %3853 }
0x1d9e   : > { %v3859_v37 = vsel %vm1399_vm5, %v3854_v36, 0 }
0x1e1f   : > { %v3574_v8 = vpop.f32.mrf.mxu2 }
0x1e20   : > { %v3575_v9 = vadd.f32 %v4819_v7, %v3574_v8 }
0x1e22   : > { %v5864_v10 = vadd.f32 %v3575_v9, %v5763_v57 }
0x1e24   : > { %v3583_v20 = vsel %vm1310_vm0, %v5864_v10, 0.0 }
0x1e25   : > { %3584 = vadd.xlane.f32.xlu0 %v3583_v20 }
0x1e27   : > { %v3576_v50 = vpop.f32.mrf.mxu2 }
0x1e98   : > { %v3585_v12 = vpop.xlane.xlu0 %3584 }
0x1e99   : > { %v3586_v26 = vmul.f32 %v3585_v12, %v5372_v11 }
0x1e9b   : > { %v3587_v13 = vsub.f32 %v5864_v10, %v3586_v26 }
0x1e9d   : > { %v3588_v14 = vmul.f32 %v3587_v13, %v3587_v13  ;;  %v3610_v31 = vmul.f32 %v4820_v5, %v3587_v13 }
0x1e9f   : > { %v3589_v17 = vsel %vm1310_vm0, %v3588_v14, 0.0 }
0x1ea0   : > { %3590 = vadd.xlane.f32.xlu1 %v3589_v17 }
0x1f13   : > { %v3591_v18 = vpop.xlane.xlu1 %3590 }
0x1f14   : > { %v3592_v19 = vmul.f32 %v3591_v18, %v5379_v25 }
0x1f16   : > { %4949 = vrsqrt.f32 %v3592_v19  ;;  %vm3600_vm1 = vcmp.eq.f32.partialorder %v3592_v19, inf  ;;  %v3603_v27 = vand.u32 2147483648, %v3592_v19  ;;  %vm3602_vm2 = vcmp.eq.f32.partialorder %v3592_v19, 0.0 }
0x1f1c   : > { %v4950_v57 = vpop.eup %4949 }
0x1f1d   : > { %v3594_v63 = vmul.f32 %v4950_v57, %v3592_v19 }
0x1f1f   : > { %v3595_v21 = vmul.f32 %v4950_v57, %v3594_v63 }
0x1f21   : > { %v3596_v22 = vmul.f32 0.5, %v3595_v21 }
0x1f23   : > { %v3597_v23 = vsub.f32 1.5, %v3596_v22 }
0x1f25   : > { %v3598_v16 = vmul.f32 %v4950_v57, %v3597_v23 }
0x1f27   : > { %v3599_v24 = vmul.f32 %v3598_v16, %v3592_v19 }
0x1f29   : > { %v3601_v28 = vsel %vm3600_vm1, %v3592_v19, %v3599_v24 }
0x1f2a   : > { %v3604_v15 = vsel %vm3602_vm2, %v3603_v27, %v3601_v28 }
0x1f2b   : > { %v3605_v30 = vadd.f32 1e-06, %v3604_v15 }
0x1f2d   : > { %4951 = vrcp.f32 %v3605_v30 }
0x1f33   : > { %v4952_v34 = vpop.eup %4951 }
0x1f34   : > { %v3611_v35 = vmul.f32 %v4952_v34, %v3610_v31 }
0x1f36   : > { %v3615_v6 = vadd.f32 %v4821_v32, %v3611_v35 }
0x1f38   : > { %v3623_v3 = vpack.c.bf16 %v3615_v6, %v3615_v6 }
0x1f3a   : > { %4571 = vmatmul.msk.bf16.vlgmr.msra.gmra.mxu0 %vm1310_vm0, %v3623_v3 }
0x1f3b   : > { %3868 = vmatpush.bf16.xpose.msra.mxu0 %v3859_v37 }
0x1fb7   : > { %v3651_v38 = vpop.f32.mrf.mxu0 }
0x1fb8   : > { %v3652_v39 = vadd.f32 %v5832_v29, %v3651_v38 }
0x1fba   : > { %v3677_v41 = vpack.c.bf16 %v3652_v39, %v3652_v39 }
0x1fbc   : > { %3851 = vrot.lane.b32.xlu2 %v3677_v41, %s6115_s8  ;;  %3793 = vrot.lane.b32.xlu1 %v3677_v41, %s6112_s25  ;;  %s6152_s25 = sld [smem:[#allocation34_spill]] }
0x1fbd   : > { %3735 = vrot.lane.b32.xlu0 %v3677_v41, %s6132_s15  ;;  %4573 = vmatmul.msk.bf16.vlgmr.msra.gmra.mxu3 %vm1399_vm5, %v3677_v41  ;;  %s6154_s8 = sld [smem:[#allocation50_spill]] }
0x1fbf   : > { %v3653_v42 = vpop.f32.mrf.mxu0 }
0x1fc3   : > { %s4638_s2 = sshll.u32 %s6154_s8, 3 }
0x2016   : > { %v3852_v46 = vpop.permute.xlu2 %3851 }
0x202e   : > { %v3794_v43 = vpop.permute.xlu1 %3793 }
0x202f   : > { %v3736_v45 = vpop.permute.xlu0 %3735  ;;  %4577 = vmatmul.msk.bf16.vlgmr.msrb.gmra.mxu3 %vm1399_vm5, %v3794_v43 }
0x2030   : > { %4575 = vmatmul.msk.bf16.vlgmr.msrb.gmra.mxu0 %vm1399_vm5, %v3736_v45 }
0x2040   : > { %v3694_v47 = vpop.f32.mrf.mxu3  ;;  %4579 = vmatmul.msk.bf16.vlgmr.msra.gmra.mxu0 %vm1399_vm5, %v3852_v46 }
0x2041   : > { %v3698_v29 = vmul.f32 0.35355338, %v3694_v47 }
0x2043   : > { %v3699_v40 = vadd.f32 %v3698_v29, %v5706_v33 }
0x2045   : > { %v3700_v48 = vsel %vm1399_vm5, %v3699_v40, -inf }
0x2046   : > { %3701 = vmax.xlane.f32.xlu0 %v3700_v48 }
0x2048   : > { %v3696_v51 = vpop.f32.mrf.mxu3 }
0x20ad   : > { %v3754_v52 = vpop.f32.mrf.mxu0 }
0x20ae   : > { %v3758_v53 = vmul.f32 0.35355338, %v3754_v52 }
0x20b0   : > { %v3759_v54 = vadd.f32 %v3758_v53, %v5706_v33 }
0x20b2   : > { %v3760_v55 = vsel %vm1399_vm5, %v3759_v54, -inf  ;;  %v3812_v56 = vpop.f32.mrf.mxu3 }
0x20b3   : > { %3761 = vmax.xlane.f32.xlu2 %v3760_v55  ;;  %v3816_v44 = vmul.f32 0.35355338, %v3812_v56 }
0x20b5   : > { %v3756_v58 = vpop.f32.mrf.mxu0  ;;  %v3817_v59 = vadd.f32 %v3816_v44, %v5706_v33 }
0x20b6   : > { %v4682_v58 = vld [vmem:[%s6143_s9 + $0x18] sm:$0xff] }
0x20b7   : > { %v3818_v60 = vsel %vm1399_vm5, %v3817_v59, -inf  ;;  %3956 = vmatpush.bf16.msra.mxu3 %v4682_v58 }
0x20b8   : > { %3819 = vmax.xlane.f32.xlu1 %v3818_v60 }
0x20b9   : > { %v3702_v61 = vpop.xlane.xlu0 %3701 }
0x20ba   : > { %v3703_v62 = vsub.f32 %v3699_v40, %v3702_v61  ;;  %v3814_v0 = vpop.f32.mrf.mxu3 }
0x20bc   : > { %v3704_v1 = vmul.f32 1.442695, %v3703_v62 }
0x20bd   : > { %v3870_v2 = vpop.f32.mrf.mxu0 }
0x20be   : > { %4953 = vpow2.f32 %v3704_v1  ;;  %v3874_v4 = vmul.f32 0.35355338, %v3870_v2 }
0x20c0   : > { %v3875_v7 = vadd.f32 %v3874_v4, %v5706_v33 }
0x20c2   : > { %v3876_v8 = vsel %vm1399_vm5, %v3875_v7, -inf }
0x20c3   : > { %3877 = vmax.xlane.f32.xlu0 %v3876_v8 }
0x20c4   : > { %v4954_v9 = vpop.eup %4953 }
0x20c5   : > { %v3872_v20 = vpop.f32.mrf.mxu0  ;;  %v3706_v50 = vsel %vm1399_vm5, %v4954_v9, 0.0 }
0x20c6   : > { %3707 = vadd.xlane.f32.xlu2 %v3706_v50 }
0x20d7   : > { %3713 = vrot.lane.b32.xlu0 %v5844_v49, %s6131_s11 }
0x20de   : > { %3772 = vrot.lane.b32.xlu2 %v5844_v49, %s6111_s5 }
0x20df   : > { %3830 = vrot.lane.b32.xlu0 %v5844_v49, %s6113_s23 }
0x2126   : > { %v3762_v12 = vpop.xlane.xlu2 %3761 }
0x2127   : > { %v3763_v26 = vsub.f32 %v3759_v54, %v3762_v12 }
0x2129   : > { %v3764_v33 = vmul.f32 1.442695, %v3763_v26 }
0x212b   : > { %4955 = vpow2.f32 %v3764_v33  ;;  %v3820_v13 = vpop.xlane.xlu1 %3819 }
0x212c   : > { %v3821_v14 = vsub.f32 %v3817_v59, %v3820_v13  ;;  %v4681_v59 = vld [vmem:[%s6143_s9 + $0x10] sm:$0xff] }
0x212d   : > { %3957 = vmatpush.bf16.msra.mxu3 %v4681_v59 }
0x212e   : > { %v3822_v17 = vmul.f32 1.442695, %v3821_v14 }
0x2130   : > { %4957 = vpow2.f32 %v3822_v17 }
0x2131   : > { %v4956_v18 = vpop.eup %4955 }
0x2132   : > { %v3766_v19 = vsel %vm1399_vm5, %v4956_v18, 0.0 }
0x2133   : > { %3767 = vadd.xlane.f32.xlu1 %v3766_v19  ;;  %v4683_v19 = vld [vmem:[%s6152_s25 + $0x10] sm:$0xff] }
0x2136   : > { %v3878_v57 = vpop.xlane.xlu0 %3877  ;;  %v4958_v63 = vpop.eup %4957 }
0x2137   : > { %v3879_v21 = vsub.f32 %v3875_v7, %v3878_v57  ;;  %v3824_v16 = vsel %vm1399_vm5, %v4958_v63, 0.0  ;;  %v4822_v7 = vld [vmem:[%s6151_s13 + $0x1] ss:$0 sm:$0xff] }
0x2139   : > { %v3880_v22 = vmul.f32 1.442695, %v3879_v21  ;;  %v3708_v23 = vpop.xlane.xlu2 %3707 }
0x213b   : > { %4959 = vpow2.f32 %v3880_v22  ;;  %3825 = vadd.xlane.f32.xlu1 %v3824_v16  ;;  %v4687_v22 = vld [vmem:[%s6146_s21 + $0x30] sm:$0xff] }
0x213c   : > { %4961 = vrcp.f32 %v3708_v23 }
0x2141   : > { %v4960_v24 = vpop.eup %4959  ;;  %v3773_v27 = vpop.permute.xlu2 %3772 }
0x2142   : > { %v3778_v28 = vsel %vm1438_vm6, %v3773_v27, 0  ;;  %v3882_v15 = vsel %vm1399_vm5, %v4960_v24, 0.0  ;;  %v4962_v30 = vpop.eup %4961 }
0x2143   : > { %3787 = vmatpush.bf16.msrb.mxu1 %v3778_v28  ;;  %3883 = vadd.xlane.f32.xlu1 %v3882_v15  ;;  %v3710_v5 = vmul.f32 %v4962_v30, %v4954_v9 }
0x2145   : > { %v3711_v34 = vpack.c.bf16 %v3710_v5, %v3710_v5 }
0x2149   : > { %v3714_v31 = vpop.permute.xlu0 %3713 }
0x214a   : > { %v3719_v32 = vsel %vm1438_vm6, %v3714_v31, 0 }
0x214b   : > { %3728 = vmatpush.bf16.msrb.mxu2 %v3719_v32 }
0x214e   : > { %4574 = vmatmul.msk.bf16.vlgmr.msrb.gmra.mxu2 %vm1399_vm5, %v3711_v34  ;;  %v4823_v34 = vld [vmem:[%s6147_s0 + $0x1] ss:$0 sm:$0xff] }
0x2151   : > { %v3831_v35 = vpop.permute.xlu0 %3830 }
0x2152   : > { %v3836_v6 = vsel %vm1438_vm6, %v3831_v35, 0 }
0x2153   : > { %3845 = vmatpush.bf16.msra.mxu2 %v3836_v6  ;;  %v4824_v6 = vld [vmem:[%s5296_s12 + $0x1] ss:$0 sm:$0xff] }
0x215c   : > { %3888 = vrot.lane.b32.xlu1 %v5844_v49, %s6114_s3  ;;  %s6153_s3 = sld [smem:[#allocation47_spill]] }
0x21a6   : > { %v3768_v36 = vpop.xlane.xlu1 %3767 }
0x21a7   : > { %4963 = vrcp.f32 %v3768_v36 }
0x21ad   : > { %v4964_v3 = vpop.eup %4963 }
0x21ae   : > { %v3770_v37 = vmul.f32 %v4964_v3, %v4956_v18  ;;  %v3826_v38 = vpop.xlane.xlu1 %3825  ;;  %v4684_v18 = vld [vmem:[%s6152_s25 + $0x18] sm:$0xff] }
0x21af   : > { %4965 = vrcp.f32 %v3826_v38  ;;  %4033 = vmatpush.bf16.msrb.mxu2 %v4684_v18 }
0x21b0   : > { %v3771_v39 = vpack.c.bf16 %v3770_v37, %v3770_v37 }
0x21b2   : > { %4576 = vmatmul.msk.bf16.vlgmr.msrb.gmra.mxu1 %vm1399_vm5, %v3771_v39  ;;  %v4686_v39 = vld [vmem:[%s6146_s21 + $0x28] sm:$0xff] }
0x21b3   : > { %4034 = vmatpush.bf16.msrb.mxu2 %v4683_v19 }
0x21b5   : > { %v4966_v41 = vpop.eup %4965 }
0x21b6   : > { %v3828_v42 = vmul.f32 %v4966_v41, %v4958_v63  ;;  %v3884_v45 = vpop.xlane.xlu1 %3883  ;;  %v4688_v63 = vld [vmem:[%s6146_s21 + $0x38] sm:$0xff]  ;;  %v4685_v41 = vld [vmem:[%s6146_s21 + $0x20] sm:$0xff] }
0x21b7   : > { %4967 = vrcp.f32 %v3884_v45  ;;  %4087 = vmatpush.bf16.msrb.mxu0 %v4688_v63 }
0x21b8   : > { %v3829_v43 = vpack.c.bf16 %v3828_v42, %v3828_v42  ;;  %v4825_v42 = vld [vmem:[%s6149_s16 + $0x1] ss:$0 sm:$0xff] }
0x21ba   : > { %4578 = vmatmul.msk.bf16.vlgmr.msra.gmra.mxu2 %vm1399_vm5, %v3829_v43 }
0x21bb   : > { %4088 = vmatpush.bf16.msrb.mxu0 %v4687_v22 }
0x21bd   : > { %v4968_v46 = vpop.eup %4967 }
0x21be   : > { %v3886_v47 = vmul.f32 %v4968_v46, %v4960_v24 }
0x21bf   : > { %4089 = vmatpush.bf16.msrb.mxu0 %v4686_v39 }
0x21c0   : > { %v3887_v40 = vpack.c.bf16 %v3886_v47, %v3886_v47 }
0x21c3   : > { %4090 = vmatpush.bf16.msrb.mxu0 %v4685_v41 }
0x21ce   : > { %v3889_v29 = vpop.permute.xlu1 %3888 }
0x21cf   : > { %v3894_v49 = vsel %vm1438_vm6, %v3889_v29, 0 }
0x21d0   : > { %3903 = vmatpush.bf16.msra.mxu1 %v3894_v49  ;;  %v4826_v49 = vld [vmem:[%s6150_s29 + $0x1] ss:$0 sm:$0xff] }
0x21d1   : > { %v3730_v48 = vpop.f32.mrf.mxu2 }
0x21d3   : > { %4580 = vmatmul.msk.bf16.vlgmr.msra.gmra.mxu1 %vm1399_vm5, %v3887_v40 }
0x21d9   : > { %v3732_v51 = vpop.f32.mrf.mxu2 }
0x222f   : > { %v3789_v52 = vpop.f32.mrf.mxu1 }
0x2230   : > { %3910 = vrot.lane.b32.xlu2 %v3789_v52, %s6122_s18 }
0x2237   : > { %v3791_v53 = vpop.f32.mrf.mxu1 }
0x223d   : > { %v3847_v54 = vpop.f32.mrf.mxu2 }
0x223e   : > { %3914 = vrot.lane.b32.xlu0 %v3847_v54, %s6124_s7  ;;  %s6156_s7 = sld [smem:[#allocation45_spill]] }
0x2244   : > { %s6157_s18 = smov %s6156_s7  ;;  %s4144_s22 = scalar_lea.hbm %s6156_s7, %s4638_s2 }
0x2245   : > { %v3849_v55 = vpop.f32.mrf.mxu2  ;;  %s4148_s13 = sshll.u32 %s4144_s22, 4  ;;  %s4149_s13 = int_to_ptr.hbm [resolvable:$true] %s4148_s13 }
0x2246   : > { %s4991_s0 = sshra.s32 %s4149_s13, 4  ;;  %s4992_s0 = int_to_ptr.hbm [resolvable:$true] %s4991_s0 }
0x2247   : > { %s4993_s8 = scalar_lea.hbm %s4992_s0, 8  ;;  %p4998_p0 = scmp.lt.s32.totalorder %s4992_s0, %s6157_s18 }
0x2248   : > { %p4994_p11 = scmp.ne.s32.totalorder %s4992_s0, %s4993_s8 }
0x224a   : > { %p4995_p12 = pnand %p4994_p11, %p5351_p5 }
0x224c   : > { %p4996_p13 = pneg %p4995_p12 }
0x2250   : > { %v3905_v56 = vpop.f32.mrf.mxu1 }
0x2251   : > { %3918 = vrot.lane.b32.xlu2 %v3905_v56, %s6123_s1  ;;  %s1279_s1 = sand.u32 1, %s6153_s3  }
0x2252   : > { %s4301_s23 = sshll.u32 %s1279_s1, 3  ;;  %s4134_s3 = scalar_lea.sflag [#allocation3], %s1279_s1 }
0x2253   : > { %s1281_s11 = scalar_lea.vmem [#allocation2], %s4301_s23 }
0x2254   : > { %s4146_s15 = sshll.u32 %s1281_s11, 4  ;;  %s4147_s15 = int_to_ptr.vmem [resolvable:$true] %s4146_s15 }
0x2258   : > { %v3907_v44 = vpop.f32.mrf.mxu1 }
0x228a   : > { %v3911_v60 = vpop.permute.xlu2 %3910 }
0x228b   : > { %v3921_v61 = vsel %vm1399_vm5, %v3730_v48, %v3911_v60 }
0x22ab   : > { %v3919_v0 = vpop.permute.xlu2 %3918 }
0x22b0   : > { %v3915_v62 = vpop.permute.xlu0 %3914 }
0x22b1   : > { %v3922_v1 = vsel %vm1642_vm7, %v3921_v61, %v3915_v62 }
0x22b2   : > { %v3923_v2 = vsel %vm1644_vm8, %v3922_v1, %v3919_v0 }
0x22b3   : > { %v3931_v4 = vpack.c.bf16 %v3923_v2, %v3923_v2 }
0x22b5   : > { %4594 = vmatmul.msk.bf16.vlgmr.msra.gmra.mxu3 %vm1310_vm0, %v3931_v4 }
0x2338   : > { %v3959_v8 = vpop.f32.mrf.mxu3 }
0x2339   : > { %v3960_v9 = vadd.f32 %v4822_v7, %v3959_v8 }
0x233b   : > { %v3963_v20 = vadd.f32 %v3960_v9, %v5864_v10 }
0x233d   : > { %v3968_v50 = vsel %vm1310_vm0, %v3963_v20, 0.0 }
0x233e   : > { %3969 = vadd.xlane.f32.xlu0 %v3968_v50 }
0x2340   : > { %v3961_v12 = vpop.f32.mrf.mxu3 }
0x2341   : > { %v4828_v12 = vld [vmem:[%s6158_s10] ss:$0 sm:$0xff] }
0x23b1   : > { %v3970_v26 = vpop.xlane.xlu0 %3969 }
0x23b2   : > { %v3971_v33 = vmul.f32 %v3970_v26, %v5372_v11 }
0x23b4   : > { %v3972_v13 = vsub.f32 %v3963_v20, %v3971_v33 }
0x23b6   : > { %v3973_v14 = vmul.f32 %v3972_v13, %v3972_v13  ;;  %v3995_v35 = vmul.f32 %v4823_v34, %v3972_v13 }
0x23b8   : > { %v3974_v17 = vsel %vm1310_vm0, %v3973_v14, 0.0 }
0x23b9   : > { %3975 = vadd.xlane.f32.xlu2 %v3974_v17 }
0x242c   : > { %v3976_v57 = vpop.xlane.xlu2 %3975 }
0x242d   : > { %v3977_v10 = vmul.f32 %v3976_v57, %v5379_v25 }
0x242f   : > { %4969 = vrsqrt.f32 %v3977_v10  ;;  %vm3985_vm5 = vcmp.eq.f32.partialorder %v3977_v10, inf  ;;  %v3988_v30 = vand.u32 2147483648, %v3977_v10  ;;  %vm3987_vm6 = vcmp.eq.f32.partialorder %v3977_v10, 0.0 }
0x2435   : > { %v4970_v21 = vpop.eup %4969 }
0x2436   : > { %v3979_v23 = vmul.f32 %v4970_v21, %v3977_v10 }
0x2438   : > { %v3980_v16 = vmul.f32 %v4970_v21, %v3979_v23 }
0x243a   : > { %v3981_v24 = vmul.f32 0.5, %v3980_v16 }
0x243c   : > { %v3982_v27 = vsub.f32 1.5, %v3981_v24 }
0x243e   : > { %v3983_v28 = vmul.f32 %v4970_v21, %v3982_v27 }
0x2440   : > { %v3984_v15 = vmul.f32 %v3983_v28, %v3977_v10 }
0x2442   : > { %v3986_v5 = vsel %vm3985_vm5, %v3977_v10, %v3984_v15 }
0x2443   : > { %v3989_v31 = vsel %vm3987_vm6, %v3988_v30, %v3986_v5 }
0x2444   : > { %v3990_v32 = vadd.f32 1e-06, %v3989_v31 }
0x2446   : > { %4971 = vrcp.f32 %v3990_v32 }
0x244c   : > { %v4972_v36 = vpop.eup %4971 }
0x244d   : > { %v3996_v3 = vmul.f32 %v4972_v36, %v3995_v35 }
0x244f   : > { %v4000_v37 = vadd.f32 %v4824_v6, %v3996_v3 }
0x2451   : > { %v4008_v38 = vpack.c.bf16 %v4000_v37, %v4000_v37 }
0x2453   : > { %4610 = vmatmul.msk.bf16.vlgmr.msrb.gmra.mxu2 %vm1310_vm0, %v4008_v38 }
0x24d6   : > { %v4036_v43 = vpop.f32.mrf.mxu2 }
0x24d7   : > { %v4037_v45 = vadd.f32 %v4825_v42, %v4036_v43 }
0x24d9   : > { %v4040_v46 = vmax.f32 %v4037_v45, 0.0 }
0x24db   : > { %v4052_v47 = vpack.c.bf16 %v4040_v46, %v4040_v46 }
0x24dd   : > { %4636 = vmatmul.msk.bf16.vlgmr.msrb.gmra.mxu0 %vm1794_vm11, %v4052_v47 }
0x24de   : > { %v4038_v29 = vpop.f32.mrf.mxu2 }
0x255a   : > { %v4092_v40 = vpop.f32.mrf.mxu0 }
0x255b   : > { %v4093_v48 = vadd.f32 %v4826_v49, %v4092_v40 }
0x255d   : > { %v4096_v51 = vadd.f32 %v4093_v48, %v3963_v20 }
0x255f   : > { %v4099_v52 = vsel %vm1310_vm0, %v4096_v51, 0.0 }
0x2560   : > { %4100 = vadd.xlane.f32.xlu1 %v4099_v52 }
0x2562   : > { %v4094_v53 = vpop.f32.mrf.mxu0 }
0x25d3   : > { %v4101_v54 = vpop.xlane.xlu1 %4100 }
0x25d4   : > { %v4102_v55 = vmul.f32 %v4101_v54, %v5372_v11 }
0x25d6   : > { %v4103_v56 = vsub.f32 %v4096_v51, %v4102_v55 }
0x25d8   : > { %v4104_v44 = vmul.f32 %v4103_v56, %v4103_v56 }
0x25da   : > { %v4105_v58 = vsel %vm1310_vm0, %v4104_v44, 0.0 }
0x25db   : > { %4106 = vadd.xlane.f32.xlu0 %v4105_v58 }
0x264e   : > { %v4107_v59 = vpop.xlane.xlu0 %4106 }
0x264f   : > { %v4108_v60 = vmul.f32 %v4107_v59, %v5379_v25  ;;  %v4827_v25 = vld [vmem:[%s6155_s20] ss:$0 sm:$0xff]  ;;  %s4997_s20 = scalar_lea.hbm %s6157_s18, 16 }
0x2650   : > { %v4126_v50 = vmul.f32 %v4827_v25, %v4103_v56  ;;  %p4999_p1 = scmp.lt.s32.totalorder %s4997_s20, %s4993_s8 }
0x2651   : > { %4973 = vrsqrt.f32 %v4108_v60  ;;  %vm4116_vm7 = vcmp.eq.f32.partialorder %v4108_v60, inf  ;;  %v4119_v7 = vand.u32 2147483648, %v4108_v60  ;;  %vm4118_vm8 = vcmp.eq.f32.partialorder %v4108_v60, 0.0 }
0x2652   : > { %p5000_p2 = por %p4999_p1, %p4998_p0 }
0x2654   : > { %p5001_p3 = pnand %p5000_p2, %p4996_p13 }
0x2657   : > { %v4974_v61 = vpop.eup %4973 }
0x2658   : > { %v4110_v62 = vmul.f32 %v4974_v61, %v4108_v60 }
0x265a   : > { %v4111_v0 = vmul.f32 %v4974_v61, %v4110_v62 }
0x265c   : > { %v4112_v1 = vmul.f32 0.5, %v4111_v0 }
0x265e   : > { %v4113_v2 = vsub.f32 1.5, %v4112_v1 }
0x2660   : > { %v4114_v11 = vmul.f32 %v4974_v61, %v4113_v2 }
0x2662   : > { %v4115_v4 = vmul.f32 %v4114_v11, %v4108_v60 }
0x2664   : > { %v4117_v8 = vsel %vm4116_vm7, %v4108_v60, %v4115_v4 }
0x2665   : > { %v4120_v9 = vsel %vm4118_vm8, %v4119_v7, %v4117_v8 }
0x2666   : > { %v4121_v20 = vadd.f32 1e-06, %v4120_v9 }
0x2668   : > { %4975 = vrcp.f32 %v4121_v20 }
0x266e   : > { %v4976_v26 = vpop.eup %4975 }
0x266f   : > { %v4127_v33 = vmul.f32 %v4976_v26, %v4126_v50 }
0x2671   : > { %v4131_v13 = vadd.f32 %v4828_v12, %v4127_v33 }
0x2673   : > { %4132 = vst.msk [vmem:[%s1281_s11] sm:$0xff] %vm1310_vm0, %v4131_v13 }
0x2674   : > { %5004 = shalt.err (!%p5001_p3)
}
0x2675   : > { %4689 = dma.vmem_to_hbm [thread:$0]  (%p5351_p5), %s4147_s15, 128, %s4149_s13, %s4134_s3  }
0x2676 PF: > { %s6160_s7 = sld [smem:[#allocation49_spill]] }
0x2677   : > { %s6161_s10 = sld [smem:[#allocation46_spill]] }
0x267c   : > { %p4695_p4 = scmp.ge.s32.totalorder %s6160_s7, 2 }
0x267d   : > { %s4160_s23 = sand.u32 1, %s6161_s10  }
0x267e   : > { %p4692_p7 = pnand %p4695_p4, %p5355_p6  ;;  %s4161_s2 = scalar_lea.sflag [#allocation3], %s4160_s23 }
0x2680   : > { %p4693_p8 = pneg %p4692_p7 }
0x2682   : > { %5022 = dma.done.wait (%p4693_p8), %s4161_s2, 128  }
0x2683   : > { %5024 = vsyncadd (%p4693_p8), %s4161_s2, 4294967168  ;;  %s6163_s15 = sld [smem:[#allocation51_spill]] }
0x2684   : > { %s6164_s7 = sld [smem:[#allocation47_spill]] }
0x2685   : > { %s6165_s10 = sld [smem:[#allocation48_spill]] }
0x2686   : > { %s6166_s11 = sld [smem:[#allocation52_spill]] }
0x2689   : > { %p93_p9 = scmp.ge.s32.totalorder %s6163_s15, 4  }
0x268b   :  { %95 = sbr.rel (!%p93_p9) target bundleno = 99 (0x63), region = 302 }
0x2690   :  { %4167 = vsyncpa [#allocation3], 1 }
0x2691   :  { %4169 = vsyncpa [#allocation3 + $0x1], 1 }

</bundles_post_ra>
